<compile_context>
chip_gen: v7x
topology: tpu7x:2x2x1
jax: 0.10.0
libtpu: 0.0.40
codegen_flags: <defaults>
</compile_context>

<pallas_src>
import jax
import jax.numpy as jnp
from jax.experimental import pallas as pl
from jax.experimental.pallas import tpu as pltpu

_OUT_LANES = 128   # lane-dense output slab; wrapper slices back to (B, 1)


# ------------------------------------------------------------------ kernel ---

def _discriminator_kernel(emb_ref,
                          w_ih0_ref, w_hh0_ref, b_gi0_ref, b_hn0_ref,
                          w_ih1f_ref, w_ih1b_ref, w_hh1_ref, b_gi1_ref, b_hn1_ref,
                          w_g2h_ref, b_g2h_ref, w_h2o_ref, b_h2o_ref,
                          out_ref):
    f32 = jnp.float32
    T, B, E = emb_ref.shape
    H = w_hh0_ref.shape[-1]

    def gru_step(h, gi_r, gi_z, gi_n, w_r, w_z, w_n, b_hn):
        """One recurrence step.  Only the h-dependent half of the GRU math is on
        the serial chain; gi_* are hoisted input projections with the input (and
        the r/z hidden) biases already folded in."""
        gh_r = jnp.dot(h, w_r, preferred_element_type=f32)
        gh_z = jnp.dot(h, w_z, preferred_element_type=f32)
        gh_n = jnp.dot(h, w_n, preferred_element_type=f32)
        r = jax.nn.sigmoid(gi_r + gh_r)
        z = jax.nn.sigmoid(gi_z + gh_z)
        n = jnp.tanh(gi_n + r * (gh_n + b_hn))
        return n + z * (h - n)                      # == (1 - z) * n + z * h

    # ---- hoisted layer-0 input projections: one batched matmul per (dir, gate)
    emb2 = emb_ref[...].reshape(T * B, E)           # (T*B, E), time-major rows
    gi0 = [[(jnp.dot(emb2, w_ih0_ref[d, g], preferred_element_type=f32)
             + b_gi0_ref[d, g]).reshape(T, B, H)
            for g in range(3)] for d in range(2)]
    bhn0 = [jnp.broadcast_to(b_hn0_ref[d], (B, H)) for d in range(2)]   # hoisted
    whh0 = [[w_hh0_ref[d, g] for g in range(3)] for d in range(2)]

    # ---- layer 0: fwd/bwd chains advanced together, fully unrolled (T static)
    h0f = jnp.zeros((B, H), f32)
    h0b = jnp.zeros((B, H), f32)
    seq0f = [None] * T
    seq0b = [None] * T
    for i in range(T):
        tb = T - 1 - i
        h0f = gru_step(h0f, gi0[0][0][i], gi0[0][1][i], gi0[0][2][i],
                       whh0[0][0], whh0[0][1], whh0[0][2], bhn0[0])
        h0b = gru_step(h0b, gi0[1][0][tb], gi0[1][1][tb], gi0[1][2][tb],
                       whh0[1][0], whh0[1][1], whh0[1][2], bhn0[1])
        seq0f[i] = h0f
        seq0b[tb] = h0b

    # TODO(synk): inter-layer GRU dropout (p=0.2) and dropout_linear are
    # training-only stochastic ops; eval-mode identity is implemented here.

    # ---- hoisted layer-1 input projections; weight_ih_l1 is split into
    # fwd/bwd halves so the per-step concat of layer-0 outputs disappears.
    xf = jnp.concatenate(seq0f, axis=0)             # (T*B, H)
    xb = jnp.concatenate(seq0b, axis=0)             # (T*B, H)
    gi1 = [[(jnp.dot(xf, w_ih1f_ref[d, g], preferred_element_type=f32)
             + jnp.dot(xb, w_ih1b_ref[d, g], preferred_element_type=f32)
             + b_gi1_ref[d, g]).reshape(T, B, H)
            for g in range(3)] for d in range(2)]
    bhn1 = [jnp.broadcast_to(b_hn1_ref[d], (B, H)) for d in range(2)]
    whh1 = [[w_hh1_ref[d, g] for g in range(3)] for d in range(2)]

    # ---- layer 1
    h1f = jnp.zeros((B, H), f32)
    h1b = jnp.zeros((B, H), f32)
    for i in range(T):
        tb = T - 1 - i
        h1f = gru_step(h1f, gi1[0][0][i], gi1[0][1][i], gi1[0][2][i],
                       whh1[0][0], whh1[0][1], whh1[0][2], bhn1[0])
        h1b = gru_step(h1b, gi1[1][0][tb], gi1[1][1][tb], gi1[1][2][tb],
                       whh1[1][0], whh1[1][1], whh1[1][2], bhn1[1])

    # ---- head: hidden.permute(1,0,2).view(B,4H) order = [l0f, l0b, l1f, l1b]
    hid = jnp.concatenate([h0f, h0b, h1f, h1b], axis=-1)          # (B, 4H)
    hdn = jnp.tanh(jnp.dot(hid, w_g2h_ref[...], preferred_element_type=f32)
                   + b_g2h_ref[...])                               # (B, H)
    # hidden2out is (H -> 1): VPU multiply + lane reduce instead of an N=1 MXU
    # matmul; store a lane-dense (B, 128) slab (unmasked lane store).
    logit = (jnp.sum(hdn * w_h2o_ref[...], axis=-1, keepdims=True)
             + b_h2o_ref[...])                                     # (B, 1)
    out_ref[...] = jnp.broadcast_to(jax.nn.sigmoid(logit), out_ref.shape)


# ----------------------------------------------------------------- wrapper ---

def discriminator_forward(reply, params):
    """reply: (B, T) int32 token ids.  Returns (B, 1) float32 scores (eval)."""
    B, T = reply.shape
    emb = params["emb_table"][reply]            # (B, T, E) gather (glue, JAX)
    emb = jnp.transpose(emb, (1, 0, 2))         # (T, B, E) == torch permute(1,0,2)

    vmem = pl.BlockSpec(memory_space=pltpu.MemorySpace.VMEM)
    args = (emb,
            params["w_ih_l0"], params["w_hh_l0"], params["b_gi_l0"], params["b_hn_l0"],
            params["w_ih_l1_f"], params["w_ih_l1_b"], params["w_hh_l1"],
            params["b_gi_l1"], params["b_hn_l1"],
            params["w_g2h_t"], params["b_g2h"], params["w_h2o"], params["b_h2o"])

    out = pl.pallas_call(
        _discriminator_kernel,
        out_shape=jax.ShapeDtypeStruct((B, _OUT_LANES), jnp.float32),
        in_specs=[vmem] * len(args),
        out_specs=vmem,
        # Everything is tiny and fully VMEM-resident here; for production shapes
        # (esp. v7x's 64 MiB VMEM) re-budget and stream emb over a T grid.
        compiler_params=pltpu.CompilerParams(vmem_limit_bytes=32 * 1024 * 1024),
    )(*args)
    return out[:, :1]


# --------------------------------------------------------------- init/prep ---

def init_raw_params(key, vocab, E, H):
    """PyTorch-layout parameters (gate order [r, z, n]; leading axis = direction)."""
    keys = iter(jax.random.split(key, 16))
    bound = float(H) ** -0.5
    u = lambda shape: jax.random.uniform(next(keys), shape, jnp.float32, -bound, bound)
    p = {"emb_table": jax.random.normal(next(keys), (vocab, E), jnp.float32)}
    p["w_ih_l0"] = u((2, 3 * H, E))
    p["w_hh_l0"] = u((2, 3 * H, H))
    p["b_ih_l0"] = u((2, 3 * H))
    p["b_hh_l0"] = u((2, 3 * H))
    p["w_ih_l1"] = u((2, 3 * H, 2 * H))
    p["w_hh_l1"] = u((2, 3 * H, H))
    p["b_ih_l1"] = u((2, 3 * H))
    p["b_hh_l1"] = u((2, 3 * H))
    p["w_g2h"] = u((H, 4 * H))          # gru2hidden: Linear(4H, H).weight
    p["b_g2h"] = u((H,))
    p["w_h2o"] = u((1, H))              # hidden2out: Linear(H, 1).weight
    p["b_h2o"] = u((1,))
    return p


def prepare_params(raw, H):
    """Raw PyTorch layout -> kernel layout: per-gate transposed weight blocks with
    (direction, gate) leading axes, folded gi biases, split layer-1 input weight."""
    def gates_t(w):                      # (2, 3H, In) -> (2, 3, In, H)
        two, three_h, n_in = w.shape
        return jnp.transpose(w.reshape(two, 3, three_h // 3, n_in), (0, 1, 3, 2))

    p = {"emb_table": raw["emb_table"]}
    for l in ("l0", "l1"):
        b_ih = raw[f"b_ih_{l}"].reshape(2, 3, H)
        b_hh = raw[f"b_hh_{l}"].reshape(2, 3, H)
        p[f"w_hh_{l}"] = gates_t(raw[f"w_hh_{l}"])                        # (2,3,H,H)
        # r,z: fold b_ih+b_hh into the hoisted gi; n: only b_ih (b_hn stays in r*(.)).
        b_gi = jnp.concatenate([b_ih[:, :2] + b_hh[:, :2], b_ih[:, 2:3]], axis=1)
        p[f"b_gi_{l}"] = b_gi[:, :, None, :]                              # (2,3,1,H)
        p[f"b_hn_{l}"] = b_hh[:, 2][:, None, :]                           # (2,1,H)
    p["w_ih_l0"] = gates_t(raw["w_ih_l0"])                                # (2,3,E,H)
    w1 = raw["w_ih_l1"].reshape(2, 3, H, 2 * H)
    p["w_ih_l1_f"] = jnp.transpose(w1[..., :H], (0, 1, 3, 2))             # (2,3,H,H)
    p["w_ih_l1_b"] = jnp.transpose(w1[..., H:], (0, 1, 3, 2))             # (2,3,H,H)
    p["w_g2h_t"] = raw["w_g2h"].T                                         # (4H, H)
    p["b_g2h"] = raw["b_g2h"][None, :]                                    # (1, H)
    p["w_h2o"] = raw["w_h2o"]                                             # (1, H)
    p["b_h2o"] = raw["b_h2o"][None, :]                                    # (1, 1)
    return p


# -------------------------------------------------------------- reference ----

def reference_forward(reply, raw, *, H):
    """Pure-JAX reference with PyTorch GRU/Linear semantics (eval mode)."""
    def cell(x, h, w_ih, w_hh, b_ih, b_hh):
        gi = x @ w_ih.T + b_ih
        gh = h @ w_hh.T + b_hh
        r = jax.nn.sigmoid(gi[:, :H] + gh[:, :H])
        z = jax.nn.sigmoid(gi[:, H:2 * H] + gh[:, H:2 * H])
        n = jnp.tanh(gi[:, 2 * H:] + r * gh[:, 2 * H:])
        return (1 - z) * n + z * h

    emb = jnp.transpose(raw["emb_table"][reply], (1, 0, 2))   # (T, B, E)
    T, B, _ = emb.shape

    def run_dir(xs, layer, d, reverse):
        w_ih = raw[f"w_ih_{layer}"][d]; w_hh = raw[f"w_hh_{layer}"][d]
        b_ih = raw[f"b_ih_{layer}"][d]; b_hh = raw[f"b_hh_{layer}"][d]
        h = jnp.zeros((B, H), jnp.float32)
        outs = [None] * T
        for t in (range(T - 1, -1, -1) if reverse else range(T)):
            h = cell(xs[t], h, w_ih, w_hh, b_ih, b_hh)
            outs[t] = h
        return jnp.stack(outs), h

    s0f, h0f = run_dir(emb, "l0", 0, False)
    s0b, h0b = run_dir(emb, "l0", 1, True)
    x1 = jnp.concatenate([s0f, s0b], axis=-1)                 # (T, B, 2H)
    _, h1f = run_dir(x1, "l1", 0, False)
    _, h1b = run_dir(x1, "l1", 1, True)

    hid = jnp.concatenate([h0f, h0b, h1f, h1b], axis=-1)      # (B, 4H)
    out = jnp.tanh(hid @ raw["w_g2h"].T + raw["b_g2h"])
    return jax.nn.sigmoid(out @ raw["w_h2o"].T + raw["b_h2o"])


# -------------------------------------------------------------------- main ---

if __name__ == "__main__":
    B, T, E, H, VOCAB = 2, 8, 32, 32, 20

    key = jax.random.PRNGKey(0)
    k_tok, k_ctx, k_par = jax.random.split(key, 3)
    reply = jax.random.randint(k_tok, (B, T), 0, VOCAB, dtype=jnp.int32)
    context = jax.random.randint(k_ctx, (B, T), 0, VOCAB, dtype=jnp.int32)  # unused by forward
    raw = init_raw_params(k_par, VOCAB, E, H)
    params = prepare_params(raw, H)

    out = jax.block_until_ready(discriminator_forward(reply, params))
    ref = reference_forward(reply, raw, H=H)

    assert out.shape == (B, 1), out.shape
    assert bool(jnp.all(jnp.isfinite(out)))
    assert bool(jnp.allclose(out, ref, atol=2e-3, rtol=2e-3)), (out, ref)

    print("KERNEL_OK")
</pallas_src>

<mosaic_0001>
module attributes {stable_mosaic.version = 11 : i64} {
  func.func @_discriminator_kernel(%arg0: memref<8x2x32xf32, #tpu.memory_space<vmem>>, %arg1: memref<2x3x32x32xf32, #tpu.memory_space<vmem>>, %arg2: memref<2x3x32x32xf32, #tpu.memory_space<vmem>>, %arg3: memref<2x3x1x32xf32, #tpu.memory_space<vmem>>, %arg4: memref<2x1x32xf32, #tpu.memory_space<vmem>>, %arg5: memref<2x3x32x32xf32, #tpu.memory_space<vmem>>, %arg6: memref<2x3x32x32xf32, #tpu.memory_space<vmem>>, %arg7: memref<2x3x32x32xf32, #tpu.memory_space<vmem>>, %arg8: memref<2x3x1x32xf32, #tpu.memory_space<vmem>>, %arg9: memref<2x1x32xf32, #tpu.memory_space<vmem>>, %arg10: memref<128x32xf32, #tpu.memory_space<vmem>>, %arg11: memref<1x32xf32, #tpu.memory_space<vmem>>, %arg12: memref<1x32xf32, #tpu.memory_space<vmem>>, %arg13: memref<1x1xf32, #tpu.memory_space<vmem>>, %arg14: memref<2x128xf32, #tpu.memory_space<vmem>>) attributes {dimension_semantics = [], scalar_prefetch = 0 : i64, scratch_operands = 0 : i64, tpu.core_type = #tpu.core_type<tc>} {
    %c0 = arith.constant 0 : index
    %c0_0 = arith.constant 0 : index
    %c0_1 = arith.constant 0 : index
    %0 = vector.load %arg0[%c0, %c0_0, %c0_1] : memref<8x2x32xf32, #tpu.memory_space<vmem>>, vector<8x2x32xf32>
    %1 = vector.shape_cast %0 : vector<8x2x32xf32> to vector<16x32xf32>
    %c0_2 = arith.constant 0 : index
    %c0_3 = arith.constant 0 : index
    %c0_4 = arith.constant 0 : index
    %c0_5 = arith.constant 0 : index
    %2 = vector.load %arg1[%c0_2, %c0_3, %c0_4, %c0_5] : memref<2x3x32x32xf32, #tpu.memory_space<vmem>>, vector<1x1x32x32xf32>
    %3 = vector.shape_cast %2 : vector<1x1x32x32xf32> to vector<32x32xf32>
    %cst = arith.constant dense<0.000000e+00> : vector<16x32xf32>
    %4 = tpu.matmul %1, %3, %cst {dimension_numbers = #tpu.dot_dimension_numbers<[1], [0], [0], [1], [0, 0, 1, 1], [], []>} : vector<16x32xf32>, vector<32x32xf32>, vector<16x32xf32> -> vector<16x32xf32>
    %c0_6 = arith.constant 0 : index
    %c0_7 = arith.constant 0 : index
    %c0_8 = arith.constant 0 : index
    %c0_9 = arith.constant 0 : index
    %5 = vector.load %arg3[%c0_6, %c0_7, %c0_8, %c0_9] : memref<2x3x1x32xf32, #tpu.memory_space<vmem>>, vector<1x1x1x32xf32>
    %6 = vector.shape_cast %5 : vector<1x1x1x32xf32> to vector<1x32xf32>
    %7 = vector.broadcast %6 : vector<1x32xf32> to vector<16x32xf32>
    %8 = arith.addf %4, %7 : vector<16x32xf32>
    %9 = vector.shape_cast %8 : vector<16x32xf32> to vector<8x2x32xf32>
    %c0_10 = arith.constant 0 : index
    %c1 = arith.constant 1 : index
    %c0_11 = arith.constant 0 : index
    %c0_12 = arith.constant 0 : index
    %10 = vector.load %arg1[%c0_10, %c1, %c0_11, %c0_12] : memref<2x3x32x32xf32, #tpu.memory_space<vmem>>, vector<1x1x32x32xf32>
    %11 = vector.shape_cast %10 : vector<1x1x32x32xf32> to vector<32x32xf32>
    %cst_13 = arith.constant dense<0.000000e+00> : vector<16x32xf32>
    %12 = tpu.matmul %1, %11, %cst_13 {dimension_numbers = #tpu.dot_dimension_numbers<[1], [0], [0], [1], [0, 0, 1, 1], [], []>} : vector<16x32xf32>, vector<32x32xf32>, vector<16x32xf32> -> vector<16x32xf32>
    %c0_14 = arith.constant 0 : index
    %c1_15 = arith.constant 1 : index
    %c0_16 = arith.constant 0 : index
    %c0_17 = arith.constant 0 : index
    %13 = vector.load %arg3[%c0_14, %c1_15, %c0_16, %c0_17] : memref<2x3x1x32xf32, #tpu.memory_space<vmem>>, vector<1x1x1x32xf32>
    %14 = vector.shape_cast %13 : vector<1x1x1x32xf32> to vector<1x32xf32>
    %15 = vector.broadcast %14 : vector<1x32xf32> to vector<16x32xf32>
    %16 = arith.addf %12, %15 : vector<16x32xf32>
    %17 = vector.shape_cast %16 : vector<16x32xf32> to vector<8x2x32xf32>
    %c0_18 = arith.constant 0 : index
    %c2 = arith.constant 2 : index
    %c0_19 = arith.constant 0 : index
    %c0_20 = arith.constant 0 : index
    %18 = vector.load %arg1[%c0_18, %c2, %c0_19, %c0_20] : memref<2x3x32x32xf32, #tpu.memory_space<vmem>>, vector<1x1x32x32xf32>
    %19 = vector.shape_cast %18 : vector<1x1x32x32xf32> to vector<32x32xf32>
    %cst_21 = arith.constant dense<0.000000e+00> : vector<16x32xf32>
    %20 = tpu.matmul %1, %19, %cst_21 {dimension_numbers = #tpu.dot_dimension_numbers<[1], [0], [0], [1], [0, 0, 1, 1], [], []>} : vector<16x32xf32>, vector<32x32xf32>, vector<16x32xf32> -> vector<16x32xf32>
    %c0_22 = arith.constant 0 : index
    %c2_23 = arith.constant 2 : index
    %c0_24 = arith.constant 0 : index
    %c0_25 = arith.constant 0 : index
    %21 = vector.load %arg3[%c0_22, %c2_23, %c0_24, %c0_25] : memref<2x3x1x32xf32, #tpu.memory_space<vmem>>, vector<1x1x1x32xf32>
    %22 = vector.shape_cast %21 : vector<1x1x1x32xf32> to vector<1x32xf32>
    %23 = vector.broadcast %22 : vector<1x32xf32> to vector<16x32xf32>
    %24 = arith.addf %20, %23 : vector<16x32xf32>
    %25 = vector.shape_cast %24 : vector<16x32xf32> to vector<8x2x32xf32>
    %c1_26 = arith.constant 1 : index
    %c0_27 = arith.constant 0 : index
    %c0_28 = arith.constant 0 : index
    %c0_29 = arith.constant 0 : index
    %26 = vector.load %arg1[%c1_26, %c0_27, %c0_28, %c0_29] : memref<2x3x32x32xf32, #tpu.memory_space<vmem>>, vector<1x1x32x32xf32>
    %27 = vector.shape_cast %26 : vector<1x1x32x32xf32> to vector<32x32xf32>
    %cst_30 = arith.constant dense<0.000000e+00> : vector<16x32xf32>
    %28 = tpu.matmul %1, %27, %cst_30 {dimension_numbers = #tpu.dot_dimension_numbers<[1], [0], [0], [1], [0, 0, 1, 1], [], []>} : vector<16x32xf32>, vector<32x32xf32>, vector<16x32xf32> -> vector<16x32xf32>
    %c1_31 = arith.constant 1 : index
    %c0_32 = arith.constant 0 : index
    %c0_33 = arith.constant 0 : index
    %c0_34 = arith.constant 0 : index
    %29 = vector.load %arg3[%c1_31, %c0_32, %c0_33, %c0_34] : memref<2x3x1x32xf32, #tpu.memory_space<vmem>>, vector<1x1x1x32xf32>
    %30 = vector.shape_cast %29 : vector<1x1x1x32xf32> to vector<1x32xf32>
    %31 = vector.broadcast %30 : vector<1x32xf32> to vector<16x32xf32>
    %32 = arith.addf %28, %31 : vector<16x32xf32>
    %33 = vector.shape_cast %32 : vector<16x32xf32> to vector<8x2x32xf32>
    %c1_35 = arith.constant 1 : index
    %c1_36 = arith.constant 1 : index
    %c0_37 = arith.constant 0 : index
    %c0_38 = arith.constant 0 : index
    %34 = vector.load %arg1[%c1_35, %c1_36, %c0_37, %c0_38] : memref<2x3x32x32xf32, #tpu.memory_space<vmem>>, vector<1x1x32x32xf32>
    %35 = vector.shape_cast %34 : vector<1x1x32x32xf32> to vector<32x32xf32>
    %cst_39 = arith.constant dense<0.000000e+00> : vector<16x32xf32>
    %36 = tpu.matmul %1, %35, %cst_39 {dimension_numbers = #tpu.dot_dimension_numbers<[1], [0], [0], [1], [0, 0, 1, 1], [], []>} : vector<16x32xf32>, vector<32x32xf32>, vector<16x32xf32> -> vector<16x32xf32>
    %c1_40 = arith.constant 1 : index
    %c1_41 = arith.constant 1 : index
    %c0_42 = arith.constant 0 : index
    %c0_43 = arith.constant 0 : index
    %37 = vector.load %arg3[%c1_40, %c1_41, %c0_42, %c0_43] : memref<2x3x1x32xf32, #tpu.memory_space<vmem>>, vector<1x1x1x32xf32>
    %38 = vector.shape_cast %37 : vector<1x1x1x32xf32> to vector<1x32xf32>
    %39 = vector.broadcast %38 : vector<1x32xf32> to vector<16x32xf32>
    %40 = arith.addf %36, %39 : vector<16x32xf32>
    %41 = vector.shape_cast %40 : vector<16x32xf32> to vector<8x2x32xf32>
    %c1_44 = arith.constant 1 : index
    %c2_45 = arith.constant 2 : index
    %c0_46 = arith.constant 0 : index
    %c0_47 = arith.constant 0 : index
    %42 = vector.load %arg1[%c1_44, %c2_45, %c0_46, %c0_47] : memref<2x3x32x32xf32, #tpu.memory_space<vmem>>, vector<1x1x32x32xf32>
    %43 = vector.shape_cast %42 : vector<1x1x32x32xf32> to vector<32x32xf32>
    %cst_48 = arith.constant dense<0.000000e+00> : vector<16x32xf32>
    %44 = tpu.matmul %1, %43, %cst_48 {dimension_numbers = #tpu.dot_dimension_numbers<[1], [0], [0], [1], [0, 0, 1, 1], [], []>} : vector<16x32xf32>, vector<32x32xf32>, vector<16x32xf32> -> vector<16x32xf32>
    %c1_49 = arith.constant 1 : index
    %c2_50 = arith.constant 2 : index
    %c0_51 = arith.constant 0 : index
    %c0_52 = arith.constant 0 : index
    %45 = vector.load %arg3[%c1_49, %c2_50, %c0_51, %c0_52] : memref<2x3x1x32xf32, #tpu.memory_space<vmem>>, vector<1x1x1x32xf32>
    %46 = vector.shape_cast %45 : vector<1x1x1x32xf32> to vector<1x32xf32>
    %47 = vector.broadcast %46 : vector<1x32xf32> to vector<16x32xf32>
    %48 = arith.addf %44, %47 : vector<16x32xf32>
    %49 = vector.shape_cast %48 : vector<16x32xf32> to vector<8x2x32xf32>
    %c0_53 = arith.constant 0 : index
    %c0_54 = arith.constant 0 : index
    %c0_55 = arith.constant 0 : index
    %50 = vector.load %arg4[%c0_53, %c0_54, %c0_55] : memref<2x1x32xf32, #tpu.memory_space<vmem>>, vector<1x1x32xf32>
    %51 = vector.shape_cast %50 : vector<1x1x32xf32> to vector<1x32xf32>
    %52 = vector.shape_cast %51 : vector<1x32xf32> to vector<1x32xf32>
    %53 = vector.broadcast %52 : vector<1x32xf32> to vector<2x32xf32>
    %c1_56 = arith.constant 1 : index
    %c0_57 = arith.constant 0 : index
    %c0_58 = arith.constant 0 : index
    %54 = vector.load %arg4[%c1_56, %c0_57, %c0_58] : memref<2x1x32xf32, #tpu.memory_space<vmem>>, vector<1x1x32xf32>
    %55 = vector.shape_cast %54 : vector<1x1x32xf32> to vector<1x32xf32>
    %56 = vector.shape_cast %55 : vector<1x32xf32> to vector<1x32xf32>
    %57 = vector.broadcast %56 : vector<1x32xf32> to vector<2x32xf32>
    %c0_59 = arith.constant 0 : index
    %c0_60 = arith.constant 0 : index
    %c0_61 = arith.constant 0 : index
    %c0_62 = arith.constant 0 : index
    %58 = vector.load %arg2[%c0_59, %c0_60, %c0_61, %c0_62] : memref<2x3x32x32xf32, #tpu.memory_space<vmem>>, vector<1x1x32x32xf32>
    %59 = vector.shape_cast %58 : vector<1x1x32x32xf32> to vector<32x32xf32>
    %c0_63 = arith.constant 0 : index
    %c1_64 = arith.constant 1 : index
    %c0_65 = arith.constant 0 : index
    %c0_66 = arith.constant 0 : index
    %60 = vector.load %arg2[%c0_63, %c1_64, %c0_65, %c0_66] : memref<2x3x32x32xf32, #tpu.memory_space<vmem>>, vector<1x1x32x32xf32>
    %61 = vector.shape_cast %60 : vector<1x1x32x32xf32> to vector<32x32xf32>
    %c0_67 = arith.constant 0 : index
    %c2_68 = arith.constant 2 : index
    %c0_69 = arith.constant 0 : index
    %c0_70 = arith.constant 0 : index
    %62 = vector.load %arg2[%c0_67, %c2_68, %c0_69, %c0_70] : memref<2x3x32x32xf32, #tpu.memory_space<vmem>>, vector<1x1x32x32xf32>
    %63 = vector.shape_cast %62 : vector<1x1x32x32xf32> to vector<32x32xf32>
    %c1_71 = arith.constant 1 : index
    %c0_72 = arith.constant 0 : index
    %c0_73 = arith.constant 0 : index
    %c0_74 = arith.constant 0 : index
    %64 = vector.load %arg2[%c1_71, %c0_72, %c0_73, %c0_74] : memref<2x3x32x32xf32, #tpu.memory_space<vmem>>, vector<1x1x32x32xf32>
    %65 = vector.shape_cast %64 : vector<1x1x32x32xf32> to vector<32x32xf32>
    %c1_75 = arith.constant 1 : index
    %c1_76 = arith.constant 1 : index
    %c0_77 = arith.constant 0 : index
    %c0_78 = arith.constant 0 : index
    %66 = vector.load %arg2[%c1_75, %c1_76, %c0_77, %c0_78] : memref<2x3x32x32xf32, #tpu.memory_space<vmem>>, vector<1x1x32x32xf32>
    %67 = vector.shape_cast %66 : vector<1x1x32x32xf32> to vector<32x32xf32>
    %c1_79 = arith.constant 1 : index
    %c2_80 = arith.constant 2 : index
    %c0_81 = arith.constant 0 : index
    %c0_82 = arith.constant 0 : index
    %68 = vector.load %arg2[%c1_79, %c2_80, %c0_81, %c0_82] : memref<2x3x32x32xf32, #tpu.memory_space<vmem>>, vector<1x1x32x32xf32>
    %69 = vector.shape_cast %68 : vector<1x1x32x32xf32> to vector<32x32xf32>
    %cst_83 = arith.constant 0.000000e+00 : f32
    %70 = vector.broadcast %cst_83 : f32 to vector<2x32xf32>
    %cst_84 = arith.constant 0.000000e+00 : f32
    %71 = vector.broadcast %cst_84 : f32 to vector<2x32xf32>
    %72 = vector.extract_strided_slice %9 {offsets = [0, 0, 0], sizes = [1, 2, 32], strides = [1, 1, 1]} : vector<8x2x32xf32> to vector<1x2x32xf32>
    %73 = vector.shape_cast %72 : vector<1x2x32xf32> to vector<2x32xf32>
    %74 = vector.extract_strided_slice %17 {offsets = [0, 0, 0], sizes = [1, 2, 32], strides = [1, 1, 1]} : vector<8x2x32xf32> to vector<1x2x32xf32>
    %75 = vector.shape_cast %74 : vector<1x2x32xf32> to vector<2x32xf32>
    %76 = vector.extract_strided_slice %25 {offsets = [0, 0, 0], sizes = [1, 2, 32], strides = [1, 1, 1]} : vector<8x2x32xf32> to vector<1x2x32xf32>
    %77 = vector.shape_cast %76 : vector<1x2x32xf32> to vector<2x32xf32>
    %cst_85 = arith.constant dense<0.000000e+00> : vector<2x32xf32>
    %78 = tpu.matmul %70, %59, %cst_85 {dimension_numbers = #tpu.dot_dimension_numbers<[1], [0], [0], [1], [0, 0, 1, 1], [], []>} : vector<2x32xf32>, vector<32x32xf32>, vector<2x32xf32> -> vector<2x32xf32>
    %cst_86 = arith.constant dense<0.000000e+00> : vector<2x32xf32>
    %79 = tpu.matmul %70, %61, %cst_86 {dimension_numbers = #tpu.dot_dimension_numbers<[1], [0], [0], [1], [0, 0, 1, 1], [], []>} : vector<2x32xf32>, vector<32x32xf32>, vector<2x32xf32> -> vector<2x32xf32>
    %cst_87 = arith.constant dense<0.000000e+00> : vector<2x32xf32>
    %80 = tpu.matmul %70, %63, %cst_87 {dimension_numbers = #tpu.dot_dimension_numbers<[1], [0], [0], [1], [0, 0, 1, 1], [], []>} : vector<2x32xf32>, vector<32x32xf32>, vector<2x32xf32> -> vector<2x32xf32>
    %81 = arith.addf %73, %78 : vector<2x32xf32>
    %82 = arith.negf %81 : vector<2x32xf32>
    %83 = math.exp %82 : vector<2x32xf32>
    %cst_88 = arith.constant 1.000000e+00 : f32
    %84 = vector.broadcast %cst_88 : f32 to vector<2x32xf32>
    %85 = arith.addf %84, %83 : vector<2x32xf32>
    %86 = arith.divf %84, %85 : vector<2x32xf32>
    %87 = arith.addf %75, %79 : vector<2x32xf32>
    %88 = arith.negf %87 : vector<2x32xf32>
    %89 = math.exp %88 : vector<2x32xf32>
    %cst_89 = arith.constant 1.000000e+00 : f32
    %90 = vector.broadcast %cst_89 : f32 to vector<2x32xf32>
    %91 = arith.addf %90, %89 : vector<2x32xf32>
    %92 = arith.divf %90, %91 : vector<2x32xf32>
    %93 = arith.addf %80, %53 : vector<2x32xf32>
    %94 = arith.mulf %86, %93 : vector<2x32xf32>
    %95 = arith.addf %77, %94 : vector<2x32xf32>
    %96 = math.tanh %95 : vector<2x32xf32>
    %97 = arith.subf %70, %96 : vector<2x32xf32>
    %98 = arith.mulf %92, %97 : vector<2x32xf32>
    %99 = arith.addf %96, %98 : vector<2x32xf32>
    %100 = vector.extract_strided_slice %33 {offsets = [7, 0, 0], sizes = [1, 2, 32], strides = [1, 1, 1]} : vector<8x2x32xf32> to vector<1x2x32xf32>
    %101 = vector.shape_cast %100 : vector<1x2x32xf32> to vector<2x32xf32>
    %102 = vector.extract_strided_slice %41 {offsets = [7, 0, 0], sizes = [1, 2, 32], strides = [1, 1, 1]} : vector<8x2x32xf32> to vector<1x2x32xf32>
    %103 = vector.shape_cast %102 : vector<1x2x32xf32> to vector<2x32xf32>
    %104 = vector.extract_strided_slice %49 {offsets = [7, 0, 0], sizes = [1, 2, 32], strides = [1, 1, 1]} : vector<8x2x32xf32> to vector<1x2x32xf32>
    %105 = vector.shape_cast %104 : vector<1x2x32xf32> to vector<2x32xf32>
    %cst_90 = arith.constant dense<0.000000e+00> : vector<2x32xf32>
    %106 = tpu.matmul %71, %65, %cst_90 {dimension_numbers = #tpu.dot_dimension_numbers<[1], [0], [0], [1], [0, 0, 1, 1], [], []>} : vector<2x32xf32>, vector<32x32xf32>, vector<2x32xf32> -> vector<2x32xf32>
    %cst_91 = arith.constant dense<0.000000e+00> : vector<2x32xf32>
    %107 = tpu.matmul %71, %67, %cst_91 {dimension_numbers = #tpu.dot_dimension_numbers<[1], [0], [0], [1], [0, 0, 1, 1], [], []>} : vector<2x32xf32>, vector<32x32xf32>, vector<2x32xf32> -> vector<2x32xf32>
    %cst_92 = arith.constant dense<0.000000e+00> : vector<2x32xf32>
    %108 = tpu.matmul %71, %69, %cst_92 {dimension_numbers = #tpu.dot_dimension_numbers<[1], [0], [0], [1], [0, 0, 1, 1], [], []>} : vector<2x32xf32>, vector<32x32xf32>, vector<2x32xf32> -> vector<2x32xf32>
    %109 = arith.addf %101, %106 : vector<2x32xf32>
    %110 = arith.negf %109 : vector<2x32xf32>
    %111 = math.exp %110 : vector<2x32xf32>
    %cst_93 = arith.constant 1.000000e+00 : f32
    %112 = vector.broadcast %cst_93 : f32 to vector<2x32xf32>
    %113 = arith.addf %112, %111 : vector<2x32xf32>
    %114 = arith.divf %112, %113 : vector<2x32xf32>
    %115 = arith.addf %103, %107 : vector<2x32xf32>
    %116 = arith.negf %115 : vector<2x32xf32>
    %117 = math.exp %116 : vector<2x32xf32>
    %cst_94 = arith.constant 1.000000e+00 : f32
    %118 = vector.broadcast %cst_94 : f32 to vector<2x32xf32>
    %119 = arith.addf %118, %117 : vector<2x32xf32>
    %120 = arith.divf %118, %119 : vector<2x32xf32>
    %121 = arith.addf %108, %57 : vector<2x32xf32>
    %122 = arith.mulf %114, %121 : vector<2x32xf32>
    %123 = arith.addf %105, %122 : vector<2x32xf32>
    %124 = math.tanh %123 : vector<2x32xf32>
    %125 = arith.subf %71, %124 : vector<2x32xf32>
    %126 = arith.mulf %120, %125 : vector<2x32xf32>
    %127 = arith.addf %124, %126 : vector<2x32xf32>
    %128 = vector.extract_strided_slice %9 {offsets = [1, 0, 0], sizes = [1, 2, 32], strides = [1, 1, 1]} : vector<8x2x32xf32> to vector<1x2x32xf32>
    %129 = vector.shape_cast %128 : vector<1x2x32xf32> to vector<2x32xf32>
    %130 = vector.extract_strided_slice %17 {offsets = [1, 0, 0], sizes = [1, 2, 32], strides = [1, 1, 1]} : vector<8x2x32xf32> to vector<1x2x32xf32>
    %131 = vector.shape_cast %130 : vector<1x2x32xf32> to vector<2x32xf32>
    %132 = vector.extract_strided_slice %25 {offsets = [1, 0, 0], sizes = [1, 2, 32], strides = [1, 1, 1]} : vector<8x2x32xf32> to vector<1x2x32xf32>
    %133 = vector.shape_cast %132 : vector<1x2x32xf32> to vector<2x32xf32>
    %cst_95 = arith.constant dense<0.000000e+00> : vector<2x32xf32>
    %134 = tpu.matmul %99, %59, %cst_95 {dimension_numbers = #tpu.dot_dimension_numbers<[1], [0], [0], [1], [0, 0, 1, 1], [], []>} : vector<2x32xf32>, vector<32x32xf32>, vector<2x32xf32> -> vector<2x32xf32>
    %cst_96 = arith.constant dense<0.000000e+00> : vector<2x32xf32>
    %135 = tpu.matmul %99, %61, %cst_96 {dimension_numbers = #tpu.dot_dimension_numbers<[1], [0], [0], [1], [0, 0, 1, 1], [], []>} : vector<2x32xf32>, vector<32x32xf32>, vector<2x32xf32> -> vector<2x32xf32>
    %cst_97 = arith.constant dense<0.000000e+00> : vector<2x32xf32>
    %136 = tpu.matmul %99, %63, %cst_97 {dimension_numbers = #tpu.dot_dimension_numbers<[1], [0], [0], [1], [0, 0, 1, 1], [], []>} : vector<2x32xf32>, vector<32x32xf32>, vector<2x32xf32> -> vector<2x32xf32>
    %137 = arith.addf %129, %134 : vector<2x32xf32>
    %138 = arith.negf %137 : vector<2x32xf32>
    %139 = math.exp %138 : vector<2x32xf32>
    %cst_98 = arith.constant 1.000000e+00 : f32
    %140 = vector.broadcast %cst_98 : f32 to vector<2x32xf32>
    %141 = arith.addf %140, %139 : vector<2x32xf32>
    %142 = arith.divf %140, %141 : vector<2x32xf32>
    %143 = arith.addf %131, %135 : vector<2x32xf32>
    %144 = arith.negf %143 : vector<2x32xf32>
    %145 = math.exp %144 : vector<2x32xf32>
    %cst_99 = arith.constant 1.000000e+00 : f32
    %146 = vector.broadcast %cst_99 : f32 to vector<2x32xf32>
    %147 = arith.addf %146, %145 : vector<2x32xf32>
    %148 = arith.divf %146, %147 : vector<2x32xf32>
    %149 = arith.addf %136, %53 : vector<2x32xf32>
    %150 = arith.mulf %142, %149 : vector<2x32xf32>
    %151 = arith.addf %133, %150 : vector<2x32xf32>
    %152 = math.tanh %151 : vector<2x32xf32>
    %153 = arith.subf %99, %152 : vector<2x32xf32>
    %154 = arith.mulf %148, %153 : vector<2x32xf32>
    %155 = arith.addf %152, %154 : vector<2x32xf32>
    %156 = vector.extract_strided_slice %33 {offsets = [6, 0, 0], sizes = [1, 2, 32], strides = [1, 1, 1]} : vector<8x2x32xf32> to vector<1x2x32xf32>
    %157 = vector.shape_cast %156 : vector<1x2x32xf32> to vector<2x32xf32>
    %158 = vector.extract_strided_slice %41 {offsets = [6, 0, 0], sizes = [1, 2, 32], strides = [1, 1, 1]} : vector<8x2x32xf32> to vector<1x2x32xf32>
    %159 = vector.shape_cast %158 : vector<1x2x32xf32> to vector<2x32xf32>
    %160 = vector.extract_strided_slice %49 {offsets = [6, 0, 0], sizes = [1, 2, 32], strides = [1, 1, 1]} : vector<8x2x32xf32> to vector<1x2x32xf32>
    %161 = vector.shape_cast %160 : vector<1x2x32xf32> to vector<2x32xf32>
    %cst_100 = arith.constant dense<0.000000e+00> : vector<2x32xf32>
    %162 = tpu.matmul %127, %65, %cst_100 {dimension_numbers = #tpu.dot_dimension_numbers<[1], [0], [0], [1], [0, 0, 1, 1], [], []>} : vector<2x32xf32>, vector<32x32xf32>, vector<2x32xf32> -> vector<2x32xf32>
    %cst_101 = arith.constant dense<0.000000e+00> : vector<2x32xf32>
    %163 = tpu.matmul %127, %67, %cst_101 {dimension_numbers = #tpu.dot_dimension_numbers<[1], [0], [0], [1], [0, 0, 1, 1], [], []>} : vector<2x32xf32>, vector<32x32xf32>, vector<2x32xf32> -> vector<2x32xf32>
    %cst_102 = arith.constant dense<0.000000e+00> : vector<2x32xf32>
    %164 = tpu.matmul %127, %69, %cst_102 {dimension_numbers = #tpu.dot_dimension_numbers<[1], [0], [0], [1], [0, 0, 1, 1], [], []>} : vector<2x32xf32>, vector<32x32xf32>, vector<2x32xf32> -> vector<2x32xf32>
    %165 = arith.addf %157, %162 : vector<2x32xf32>
    %166 = arith.negf %165 : vector<2x32xf32>
    %167 = math.exp %166 : vector<2x32xf32>
    %cst_103 = arith.constant 1.000000e+00 : f32
    %168 = vector.broadcast %cst_103 : f32 to vector<2x32xf32>
    %169 = arith.addf %168, %167 : vector<2x32xf32>
    %170 = arith.divf %168, %169 : vector<2x32xf32>
    %171 = arith.addf %159, %163 : vector<2x32xf32>
    %172 = arith.negf %171 : vector<2x32xf32>
    %173 = math.exp %172 : vector<2x32xf32>
    %cst_104 = arith.constant 1.000000e+00 : f32
    %174 = vector.broadcast %cst_104 : f32 to vector<2x32xf32>
    %175 = arith.addf %174, %173 : vector<2x32xf32>
    %176 = arith.divf %174, %175 : vector<2x32xf32>
    %177 = arith.addf %164, %57 : vector<2x32xf32>
    %178 = arith.mulf %170, %177 : vector<2x32xf32>
    %179 = arith.addf %161, %178 : vector<2x32xf32>
    %180 = math.tanh %179 : vector<2x32xf32>
    %181 = arith.subf %127, %180 : vector<2x32xf32>
    %182 = arith.mulf %176, %181 : vector<2x32xf32>
    %183 = arith.addf %180, %182 : vector<2x32xf32>
    %184 = vector.extract_strided_slice %9 {offsets = [2, 0, 0], sizes = [1, 2, 32], strides = [1, 1, 1]} : vector<8x2x32xf32> to vector<1x2x32xf32>
    %185 = vector.shape_cast %184 : vector<1x2x32xf32> to vector<2x32xf32>
    %186 = vector.extract_strided_slice %17 {offsets = [2, 0, 0], sizes = [1, 2, 32], strides = [1, 1, 1]} : vector<8x2x32xf32> to vector<1x2x32xf32>
    %187 = vector.shape_cast %186 : vector<1x2x32xf32> to vector<2x32xf32>
    %188 = vector.extract_strided_slice %25 {offsets = [2, 0, 0], sizes = [1, 2, 32], strides = [1, 1, 1]} : vector<8x2x32xf32> to vector<1x2x32xf32>
    %189 = vector.shape_cast %188 : vector<1x2x32xf32> to vector<2x32xf32>
    %cst_105 = arith.constant dense<0.000000e+00> : vector<2x32xf32>
    %190 = tpu.matmul %155, %59, %cst_105 {dimension_numbers = #tpu.dot_dimension_numbers<[1], [0], [0], [1], [0, 0, 1, 1], [], []>} : vector<2x32xf32>, vector<32x32xf32>, vector<2x32xf32> -> vector<2x32xf32>
    %cst_106 = arith.constant dense<0.000000e+00> : vector<2x32xf32>
    %191 = tpu.matmul %155, %61, %cst_106 {dimension_numbers = #tpu.dot_dimension_numbers<[1], [0], [0], [1], [0, 0, 1, 1], [], []>} : vector<2x32xf32>, vector<32x32xf32>, vector<2x32xf32> -> vector<2x32xf32>
    %cst_107 = arith.constant dense<0.000000e+00> : vector<2x32xf32>
    %192 = tpu.matmul %155, %63, %cst_107 {dimension_numbers = #tpu.dot_dimension_numbers<[1], [0], [0], [1], [0, 0, 1, 1], [], []>} : vector<2x32xf32>, vector<32x32xf32>, vector<2x32xf32> -> vector<2x32xf32>
    %193 = arith.addf %185, %190 : vector<2x32xf32>
    %194 = arith.negf %193 : vector<2x32xf32>
    %195 = math.exp %194 : vector<2x32xf32>
    %cst_108 = arith.constant 1.000000e+00 : f32
    %196 = vector.broadcast %cst_108 : f32 to vector<2x32xf32>
    %197 = arith.addf %196, %195 : vector<2x32xf32>
    %198 = arith.divf %196, %197 : vector<2x32xf32>
    %199 = arith.addf %187, %191 : vector<2x32xf32>
    %200 = arith.negf %199 : vector<2x32xf32>
    %201 = math.exp %200 : vector<2x32xf32>
    %cst_109 = arith.constant 1.000000e+00 : f32
    %202 = vector.broadcast %cst_109 : f32 to vector<2x32xf32>
    %203 = arith.addf %202, %201 : vector<2x32xf32>
    %204 = arith.divf %202, %203 : vector<2x32xf32>
    %205 = arith.addf %192, %53 : vector<2x32xf32>
    %206 = arith.mulf %198, %205 : vector<2x32xf32>
    %207 = arith.addf %189, %206 : vector<2x32xf32>
    %208 = math.tanh %207 : vector<2x32xf32>
    %209 = arith.subf %155, %208 : vector<2x32xf32>
    %210 = arith.mulf %204, %209 : vector<2x32xf32>
    %211 = arith.addf %208, %210 : vector<2x32xf32>
    %212 = vector.extract_strided_slice %33 {offsets = [5, 0, 0], sizes = [1, 2, 32], strides = [1, 1, 1]} : vector<8x2x32xf32> to vector<1x2x32xf32>
    %213 = vector.shape_cast %212 : vector<1x2x32xf32> to vector<2x32xf32>
    %214 = vector.extract_strided_slice %41 {offsets = [5, 0, 0], sizes = [1, 2, 32], strides = [1, 1, 1]} : vector<8x2x32xf32> to vector<1x2x32xf32>
    %215 = vector.shape_cast %214 : vector<1x2x32xf32> to vector<2x32xf32>
    %216 = vector.extract_strided_slice %49 {offsets = [5, 0, 0], sizes = [1, 2, 32], strides = [1, 1, 1]} : vector<8x2x32xf32> to vector<1x2x32xf32>
    %217 = vector.shape_cast %216 : vector<1x2x32xf32> to vector<2x32xf32>
    %cst_110 = arith.constant dense<0.000000e+00> : vector<2x32xf32>
    %218 = tpu.matmul %183, %65, %cst_110 {dimension_numbers = #tpu.dot_dimension_numbers<[1], [0], [0], [1], [0, 0, 1, 1], [], []>} : vector<2x32xf32>, vector<32x32xf32>, vector<2x32xf32> -> vector<2x32xf32>
    %cst_111 = arith.constant dense<0.000000e+00> : vector<2x32xf32>
    %219 = tpu.matmul %183, %67, %cst_111 {dimension_numbers = #tpu.dot_dimension_numbers<[1], [0], [0], [1], [0, 0, 1, 1], [], []>} : vector<2x32xf32>, vector<32x32xf32>, vector<2x32xf32> -> vector<2x32xf32>
    %cst_112 = arith.constant dense<0.000000e+00> : vector<2x32xf32>
    %220 = tpu.matmul %183, %69, %cst_112 {dimension_numbers = #tpu.dot_dimension_numbers<[1], [0], [0], [1], [0, 0, 1, 1], [], []>} : vector<2x32xf32>, vector<32x32xf32>, vector<2x32xf32> -> vector<2x32xf32>
    %221 = arith.addf %213, %218 : vector<2x32xf32>
    %222 = arith.negf %221 : vector<2x32xf32>
    %223 = math.exp %222 : vector<2x32xf32>
    %cst_113 = arith.constant 1.000000e+00 : f32
    %224 = vector.broadcast %cst_113 : f32 to vector<2x32xf32>
    %225 = arith.addf %224, %223 : vector<2x32xf32>
    %226 = arith.divf %224, %225 : vector<2x32xf32>
    %227 = arith.addf %215, %219 : vector<2x32xf32>
    %228 = arith.negf %227 : vector<2x32xf32>
    %229 = math.exp %228 : vector<2x32xf32>
    %cst_114 = arith.constant 1.000000e+00 : f32
    %230 = vector.broadcast %cst_114 : f32 to vector<2x32xf32>
    %231 = arith.addf %230, %229 : vector<2x32xf32>
    %232 = arith.divf %230, %231 : vector<2x32xf32>
    %233 = arith.addf %220, %57 : vector<2x32xf32>
    %234 = arith.mulf %226, %233 : vector<2x32xf32>
    %235 = arith.addf %217, %234 : vector<2x32xf32>
    %236 = math.tanh %235 : vector<2x32xf32>
    %237 = arith.subf %183, %236 : vector<2x32xf32>
    %238 = arith.mulf %232, %237 : vector<2x32xf32>
    %239 = arith.addf %236, %238 : vector<2x32xf32>
    %240 = vector.extract_strided_slice %9 {offsets = [3, 0, 0], sizes = [1, 2, 32], strides = [1, 1, 1]} : vector<8x2x32xf32> to vector<1x2x32xf32>
    %241 = vector.shape_cast %240 : vector<1x2x32xf32> to vector<2x32xf32>
    %242 = vector.extract_strided_slice %17 {offsets = [3, 0, 0], sizes = [1, 2, 32], strides = [1, 1, 1]} : vector<8x2x32xf32> to vector<1x2x32xf32>
    %243 = vector.shape_cast %242 : vector<1x2x32xf32> to vector<2x32xf32>
    %244 = vector.extract_strided_slice %25 {offsets = [3, 0, 0], sizes = [1, 2, 32], strides = [1, 1, 1]} : vector<8x2x32xf32> to vector<1x2x32xf32>
    %245 = vector.shape_cast %244 : vector<1x2x32xf32> to vector<2x32xf32>
    %cst_115 = arith.constant dense<0.000000e+00> : vector<2x32xf32>
    %246 = tpu.matmul %211, %59, %cst_115 {dimension_numbers = #tpu.dot_dimension_numbers<[1], [0], [0], [1], [0, 0, 1, 1], [], []>} : vector<2x32xf32>, vector<32x32xf32>, vector<2x32xf32> -> vector<2x32xf32>
    %cst_116 = arith.constant dense<0.000000e+00> : vector<2x32xf32>
    %247 = tpu.matmul %211, %61, %cst_116 {dimension_numbers = #tpu.dot_dimension_numbers<[1], [0], [0], [1], [0, 0, 1, 1], [], []>} : vector<2x32xf32>, vector<32x32xf32>, vector<2x32xf32> -> vector<2x32xf32>
    %cst_117 = arith.constant dense<0.000000e+00> : vector<2x32xf32>
    %248 = tpu.matmul %211, %63, %cst_117 {dimension_numbers = #tpu.dot_dimension_numbers<[1], [0], [0], [1], [0, 0, 1, 1], [], []>} : vector<2x32xf32>, vector<32x32xf32>, vector<2x32xf32> -> vector<2x32xf32>
    %249 = arith.addf %241, %246 : vector<2x32xf32>
    %250 = arith.negf %249 : vector<2x32xf32>
    %251 = math.exp %250 : vector<2x32xf32>
    %cst_118 = arith.constant 1.000000e+00 : f32
    %252 = vector.broadcast %cst_118 : f32 to vector<2x32xf32>
    %253 = arith.addf %252, %251 : vector<2x32xf32>
    %254 = arith.divf %252, %253 : vector<2x32xf32>
    %255 = arith.addf %243, %247 : vector<2x32xf32>
    %256 = arith.negf %255 : vector<2x32xf32>
    %257 = math.exp %256 : vector<2x32xf32>
    %cst_119 = arith.constant 1.000000e+00 : f32
    %258 = vector.broadcast %cst_119 : f32 to vector<2x32xf32>
    %259 = arith.addf %258, %257 : vector<2x32xf32>
    %260 = arith.divf %258, %259 : vector<2x32xf32>
    %261 = arith.addf %248, %53 : vector<2x32xf32>
    %262 = arith.mulf %254, %261 : vector<2x32xf32>
    %263 = arith.addf %245, %262 : vector<2x32xf32>
    %264 = math.tanh %263 : vector<2x32xf32>
    %265 = arith.subf %211, %264 : vector<2x32xf32>
    %266 = arith.mulf %260, %265 : vector<2x32xf32>
    %267 = arith.addf %264, %266 : vector<2x32xf32>
    %268 = vector.extract_strided_slice %33 {offsets = [4, 0, 0], sizes = [1, 2, 32], strides = [1, 1, 1]} : vector<8x2x32xf32> to vector<1x2x32xf32>
    %269 = vector.shape_cast %268 : vector<1x2x32xf32> to vector<2x32xf32>
    %270 = vector.extract_strided_slice %41 {offsets = [4, 0, 0], sizes = [1, 2, 32], strides = [1, 1, 1]} : vector<8x2x32xf32> to vector<1x2x32xf32>
    %271 = vector.shape_cast %270 : vector<1x2x32xf32> to vector<2x32xf32>
    %272 = vector.extract_strided_slice %49 {offsets = [4, 0, 0], sizes = [1, 2, 32], strides = [1, 1, 1]} : vector<8x2x32xf32> to vector<1x2x32xf32>
    %273 = vector.shape_cast %272 : vector<1x2x32xf32> to vector<2x32xf32>
    %cst_120 = arith.constant dense<0.000000e+00> : vector<2x32xf32>
    %274 = tpu.matmul %239, %65, %cst_120 {dimension_numbers = #tpu.dot_dimension_numbers<[1], [0], [0], [1], [0, 0, 1, 1], [], []>} : vector<2x32xf32>, vector<32x32xf32>, vector<2x32xf32> -> vector<2x32xf32>
    %cst_121 = arith.constant dense<0.000000e+00> : vector<2x32xf32>
    %275 = tpu.matmul %239, %67, %cst_121 {dimension_numbers = #tpu.dot_dimension_numbers<[1], [0], [0], [1], [0, 0, 1, 1], [], []>} : vector<2x32xf32>, vector<32x32xf32>, vector<2x32xf32> -> vector<2x32xf32>
    %cst_122 = arith.constant dense<0.000000e+00> : vector<2x32xf32>
    %276 = tpu.matmul %239, %69, %cst_122 {dimension_numbers = #tpu.dot_dimension_numbers<[1], [0], [0], [1], [0, 0, 1, 1], [], []>} : vector<2x32xf32>, vector<32x32xf32>, vector<2x32xf32> -> vector<2x32xf32>
    %277 = arith.addf %269, %274 : vector<2x32xf32>
    %278 = arith.negf %277 : vector<2x32xf32>
    %279 = math.exp %278 : vector<2x32xf32>
    %cst_123 = arith.constant 1.000000e+00 : f32
    %280 = vector.broadcast %cst_123 : f32 to vector<2x32xf32>
    %281 = arith.addf %280, %279 : vector<2x32xf32>
    %282 = arith.divf %280, %281 : vector<2x32xf32>
    %283 = arith.addf %271, %275 : vector<2x32xf32>
    %284 = arith.negf %283 : vector<2x32xf32>
    %285 = math.exp %284 : vector<2x32xf32>
    %cst_124 = arith.constant 1.000000e+00 : f32
    %286 = vector.broadcast %cst_124 : f32 to vector<2x32xf32>
    %287 = arith.addf %286, %285 : vector<2x32xf32>
    %288 = arith.divf %286, %287 : vector<2x32xf32>
    %289 = arith.addf %276, %57 : vector<2x32xf32>
    %290 = arith.mulf %282, %289 : vector<2x32xf32>
    %291 = arith.addf %273, %290 : vector<2x32xf32>
    %292 = math.tanh %291 : vector<2x32xf32>
    %293 = arith.subf %239, %292 : vector<2x32xf32>
    %294 = arith.mulf %288, %293 : vector<2x32xf32>
    %295 = arith.addf %292, %294 : vector<2x32xf32>
    %296 = vector.extract_strided_slice %9 {offsets = [4, 0, 0], sizes = [1, 2, 32], strides = [1, 1, 1]} : vector<8x2x32xf32> to vector<1x2x32xf32>
    %297 = vector.shape_cast %296 : vector<1x2x32xf32> to vector<2x32xf32>
    %298 = vector.extract_strided_slice %17 {offsets = [4, 0, 0], sizes = [1, 2, 32], strides = [1, 1, 1]} : vector<8x2x32xf32> to vector<1x2x32xf32>
    %299 = vector.shape_cast %298 : vector<1x2x32xf32> to vector<2x32xf32>
    %300 = vector.extract_strided_slice %25 {offsets = [4, 0, 0], sizes = [1, 2, 32], strides = [1, 1, 1]} : vector<8x2x32xf32> to vector<1x2x32xf32>
    %301 = vector.shape_cast %300 : vector<1x2x32xf32> to vector<2x32xf32>
    %cst_125 = arith.constant dense<0.000000e+00> : vector<2x32xf32>
    %302 = tpu.matmul %267, %59, %cst_125 {dimension_numbers = #tpu.dot_dimension_numbers<[1], [0], [0], [1], [0, 0, 1, 1], [], []>} : vector<2x32xf32>, vector<32x32xf32>, vector<2x32xf32> -> vector<2x32xf32>
    %cst_126 = arith.constant dense<0.000000e+00> : vector<2x32xf32>
    %303 = tpu.matmul %267, %61, %cst_126 {dimension_numbers = #tpu.dot_dimension_numbers<[1], [0], [0], [1], [0, 0, 1, 1], [], []>} : vector<2x32xf32>, vector<32x32xf32>, vector<2x32xf32> -> vector<2x32xf32>
    %cst_127 = arith.constant dense<0.000000e+00> : vector<2x32xf32>
    %304 = tpu.matmul %267, %63, %cst_127 {dimension_numbers = #tpu.dot_dimension_numbers<[1], [0], [0], [1], [0, 0, 1, 1], [], []>} : vector<2x32xf32>, vector<32x32xf32>, vector<2x32xf32> -> vector<2x32xf32>
    %305 = arith.addf %297, %302 : vector<2x32xf32>
    %306 = arith.negf %305 : vector<2x32xf32>
    %307 = math.exp %306 : vector<2x32xf32>
    %cst_128 = arith.constant 1.000000e+00 : f32
    %308 = vector.broadcast %cst_128 : f32 to vector<2x32xf32>
    %309 = arith.addf %308, %307 : vector<2x32xf32>
    %310 = arith.divf %308, %309 : vector<2x32xf32>
    %311 = arith.addf %299, %303 : vector<2x32xf32>
    %312 = arith.negf %311 : vector<2x32xf32>
    %313 = math.exp %312 : vector<2x32xf32>
    %cst_129 = arith.constant 1.000000e+00 : f32
    %314 = vector.broadcast %cst_129 : f32 to vector<2x32xf32>
    %315 = arith.addf %314, %313 : vector<2x32xf32>
    %316 = arith.divf %314, %315 : vector<2x32xf32>
    %317 = arith.addf %304, %53 : vector<2x32xf32>
    %318 = arith.mulf %310, %317 : vector<2x32xf32>
    %319 = arith.addf %301, %318 : vector<2x32xf32>
    %320 = math.tanh %319 : vector<2x32xf32>
    %321 = arith.subf %267, %320 : vector<2x32xf32>
    %322 = arith.mulf %316, %321 : vector<2x32xf32>
    %323 = arith.addf %320, %322 : vector<2x32xf32>
    %324 = vector.extract_strided_slice %33 {offsets = [3, 0, 0], sizes = [1, 2, 32], strides = [1, 1, 1]} : vector<8x2x32xf32> to vector<1x2x32xf32>
    %325 = vector.shape_cast %324 : vector<1x2x32xf32> to vector<2x32xf32>
    %326 = vector.extract_strided_slice %41 {offsets = [3, 0, 0], sizes = [1, 2, 32], strides = [1, 1, 1]} : vector<8x2x32xf32> to vector<1x2x32xf32>
    %327 = vector.shape_cast %326 : vector<1x2x32xf32> to vector<2x32xf32>
    %328 = vector.extract_strided_slice %49 {offsets = [3, 0, 0], sizes = [1, 2, 32], strides = [1, 1, 1]} : vector<8x2x32xf32> to vector<1x2x32xf32>
    %329 = vector.shape_cast %328 : vector<1x2x32xf32> to vector<2x32xf32>
    %cst_130 = arith.constant dense<0.000000e+00> : vector<2x32xf32>
    %330 = tpu.matmul %295, %65, %cst_130 {dimension_numbers = #tpu.dot_dimension_numbers<[1], [0], [0], [1], [0, 0, 1, 1], [], []>} : vector<2x32xf32>, vector<32x32xf32>, vector<2x32xf32> -> vector<2x32xf32>
    %cst_131 = arith.constant dense<0.000000e+00> : vector<2x32xf32>
    %331 = tpu.matmul %295, %67, %cst_131 {dimension_numbers = #tpu.dot_dimension_numbers<[1], [0], [0], [1], [0, 0, 1, 1], [], []>} : vector<2x32xf32>, vector<32x32xf32>, vector<2x32xf32> -> vector<2x32xf32>
    %cst_132 = arith.constant dense<0.000000e+00> : vector<2x32xf32>
    %332 = tpu.matmul %295, %69, %cst_132 {dimension_numbers = #tpu.dot_dimension_numbers<[1], [0], [0], [1], [0, 0, 1, 1], [], []>} : vector<2x32xf32>, vector<32x32xf32>, vector<2x32xf32> -> vector<2x32xf32>
    %333 = arith.addf %325, %330 : vector<2x32xf32>
    %334 = arith.negf %333 : vector<2x32xf32>
    %335 = math.exp %334 : vector<2x32xf32>
    %cst_133 = arith.constant 1.000000e+00 : f32
    %336 = vector.broadcast %cst_133 : f32 to vector<2x32xf32>
    %337 = arith.addf %336, %335 : vector<2x32xf32>
    %338 = arith.divf %336, %337 : vector<2x32xf32>
    %339 = arith.addf %327, %331 : vector<2x32xf32>
    %340 = arith.negf %339 : vector<2x32xf32>
    %341 = math.exp %340 : vector<2x32xf32>
    %cst_134 = arith.constant 1.000000e+00 : f32
    %342 = vector.broadcast %cst_134 : f32 to vector<2x32xf32>
    %343 = arith.addf %342, %341 : vector<2x32xf32>
    %344 = arith.divf %342, %343 : vector<2x32xf32>
    %345 = arith.addf %332, %57 : vector<2x32xf32>
    %346 = arith.mulf %338, %345 : vector<2x32xf32>
    %347 = arith.addf %329, %346 : vector<2x32xf32>
    %348 = math.tanh %347 : vector<2x32xf32>
    %349 = arith.subf %295, %348 : vector<2x32xf32>
    %350 = arith.mulf %344, %349 : vector<2x32xf32>
    %351 = arith.addf %348, %350 : vector<2x32xf32>
    %352 = vector.extract_strided_slice %9 {offsets = [5, 0, 0], sizes = [1, 2, 32], strides = [1, 1, 1]} : vector<8x2x32xf32> to vector<1x2x32xf32>
    %353 = vector.shape_cast %352 : vector<1x2x32xf32> to vector<2x32xf32>
    %354 = vector.extract_strided_slice %17 {offsets = [5, 0, 0], sizes = [1, 2, 32], strides = [1, 1, 1]} : vector<8x2x32xf32> to vector<1x2x32xf32>
    %355 = vector.shape_cast %354 : vector<1x2x32xf32> to vector<2x32xf32>
    %356 = vector.extract_strided_slice %25 {offsets = [5, 0, 0], sizes = [1, 2, 32], strides = [1, 1, 1]} : vector<8x2x32xf32> to vector<1x2x32xf32>
    %357 = vector.shape_cast %356 : vector<1x2x32xf32> to vector<2x32xf32>
    %cst_135 = arith.constant dense<0.000000e+00> : vector<2x32xf32>
    %358 = tpu.matmul %323, %59, %cst_135 {dimension_numbers = #tpu.dot_dimension_numbers<[1], [0], [0], [1], [0, 0, 1, 1], [], []>} : vector<2x32xf32>, vector<32x32xf32>, vector<2x32xf32> -> vector<2x32xf32>
    %cst_136 = arith.constant dense<0.000000e+00> : vector<2x32xf32>
    %359 = tpu.matmul %323, %61, %cst_136 {dimension_numbers = #tpu.dot_dimension_numbers<[1], [0], [0], [1], [0, 0, 1, 1], [], []>} : vector<2x32xf32>, vector<32x32xf32>, vector<2x32xf32> -> vector<2x32xf32>
    %cst_137 = arith.constant dense<0.000000e+00> : vector<2x32xf32>
    %360 = tpu.matmul %323, %63, %cst_137 {dimension_numbers = #tpu.dot_dimension_numbers<[1], [0], [0], [1], [0, 0, 1, 1], [], []>} : vector<2x32xf32>, vector<32x32xf32>, vector<2x32xf32> -> vector<2x32xf32>
    %361 = arith.addf %353, %358 : vector<2x32xf32>
    %362 = arith.negf %361 : vector<2x32xf32>
    %363 = math.exp %362 : vector<2x32xf32>
    %cst_138 = arith.constant 1.000000e+00 : f32
    %364 = vector.broadcast %cst_138 : f32 to vector<2x32xf32>
    %365 = arith.addf %364, %363 : vector<2x32xf32>
    %366 = arith.divf %364, %365 : vector<2x32xf32>
    %367 = arith.addf %355, %359 : vector<2x32xf32>
    %368 = arith.negf %367 : vector<2x32xf32>
    %369 = math.exp %368 : vector<2x32xf32>
    %cst_139 = arith.constant 1.000000e+00 : f32
    %370 = vector.broadcast %cst_139 : f32 to vector<2x32xf32>
    %371 = arith.addf %370, %369 : vector<2x32xf32>
    %372 = arith.divf %370, %371 : vector<2x32xf32>
    %373 = arith.addf %360, %53 : vector<2x32xf32>
    %374 = arith.mulf %366, %373 : vector<2x32xf32>
    %375 = arith.addf %357, %374 : vector<2x32xf32>
    %376 = math.tanh %375 : vector<2x32xf32>
    %377 = arith.subf %323, %376 : vector<2x32xf32>
    %378 = arith.mulf %372, %377 : vector<2x32xf32>
    %379 = arith.addf %376, %378 : vector<2x32xf32>
    %380 = vector.extract_strided_slice %33 {offsets = [2, 0, 0], sizes = [1, 2, 32], strides = [1, 1, 1]} : vector<8x2x32xf32> to vector<1x2x32xf32>
    %381 = vector.shape_cast %380 : vector<1x2x32xf32> to vector<2x32xf32>
    %382 = vector.extract_strided_slice %41 {offsets = [2, 0, 0], sizes = [1, 2, 32], strides = [1, 1, 1]} : vector<8x2x32xf32> to vector<1x2x32xf32>
    %383 = vector.shape_cast %382 : vector<1x2x32xf32> to vector<2x32xf32>
    %384 = vector.extract_strided_slice %49 {offsets = [2, 0, 0], sizes = [1, 2, 32], strides = [1, 1, 1]} : vector<8x2x32xf32> to vector<1x2x32xf32>
    %385 = vector.shape_cast %384 : vector<1x2x32xf32> to vector<2x32xf32>
    %cst_140 = arith.constant dense<0.000000e+00> : vector<2x32xf32>
    %386 = tpu.matmul %351, %65, %cst_140 {dimension_numbers = #tpu.dot_dimension_numbers<[1], [0], [0], [1], [0, 0, 1, 1], [], []>} : vector<2x32xf32>, vector<32x32xf32>, vector<2x32xf32> -> vector<2x32xf32>
    %cst_141 = arith.constant dense<0.000000e+00> : vector<2x32xf32>
    %387 = tpu.matmul %351, %67, %cst_141 {dimension_numbers = #tpu.dot_dimension_numbers<[1], [0], [0], [1], [0, 0, 1, 1], [], []>} : vector<2x32xf32>, vector<32x32xf32>, vector<2x32xf32> -> vector<2x32xf32>
    %cst_142 = arith.constant dense<0.000000e+00> : vector<2x32xf32>
    %388 = tpu.matmul %351, %69, %cst_142 {dimension_numbers = #tpu.dot_dimension_numbers<[1], [0], [0], [1], [0, 0, 1, 1], [], []>} : vector<2x32xf32>, vector<32x32xf32>, vector<2x32xf32> -> vector<2x32xf32>
    %389 = arith.addf %381, %386 : vector<2x32xf32>
    %390 = arith.negf %389 : vector<2x32xf32>
    %391 = math.exp %390 : vector<2x32xf32>
    %cst_143 = arith.constant 1.000000e+00 : f32
    %392 = vector.broadcast %cst_143 : f32 to vector<2x32xf32>
    %393 = arith.addf %392, %391 : vector<2x32xf32>
    %394 = arith.divf %392, %393 : vector<2x32xf32>
    %395 = arith.addf %383, %387 : vector<2x32xf32>
    %396 = arith.negf %395 : vector<2x32xf32>
    %397 = math.exp %396 : vector<2x32xf32>
    %cst_144 = arith.constant 1.000000e+00 : f32
    %398 = vector.broadcast %cst_144 : f32 to vector<2x32xf32>
    %399 = arith.addf %398, %397 : vector<2x32xf32>
    %400 = arith.divf %398, %399 : vector<2x32xf32>
    %401 = arith.addf %388, %57 : vector<2x32xf32>
    %402 = arith.mulf %394, %401 : vector<2x32xf32>
    %403 = arith.addf %385, %402 : vector<2x32xf32>
    %404 = math.tanh %403 : vector<2x32xf32>
    %405 = arith.subf %351, %404 : vector<2x32xf32>
    %406 = arith.mulf %400, %405 : vector<2x32xf32>
    %407 = arith.addf %404, %406 : vector<2x32xf32>
    %408 = vector.extract_strided_slice %9 {offsets = [6, 0, 0], sizes = [1, 2, 32], strides = [1, 1, 1]} : vector<8x2x32xf32> to vector<1x2x32xf32>
    %409 = vector.shape_cast %408 : vector<1x2x32xf32> to vector<2x32xf32>
    %410 = vector.extract_strided_slice %17 {offsets = [6, 0, 0], sizes = [1, 2, 32], strides = [1, 1, 1]} : vector<8x2x32xf32> to vector<1x2x32xf32>
    %411 = vector.shape_cast %410 : vector<1x2x32xf32> to vector<2x32xf32>
    %412 = vector.extract_strided_slice %25 {offsets = [6, 0, 0], sizes = [1, 2, 32], strides = [1, 1, 1]} : vector<8x2x32xf32> to vector<1x2x32xf32>
    %413 = vector.shape_cast %412 : vector<1x2x32xf32> to vector<2x32xf32>
    %cst_145 = arith.constant dense<0.000000e+00> : vector<2x32xf32>
    %414 = tpu.matmul %379, %59, %cst_145 {dimension_numbers = #tpu.dot_dimension_numbers<[1], [0], [0], [1], [0, 0, 1, 1], [], []>} : vector<2x32xf32>, vector<32x32xf32>, vector<2x32xf32> -> vector<2x32xf32>
    %cst_146 = arith.constant dense<0.000000e+00> : vector<2x32xf32>
    %415 = tpu.matmul %379, %61, %cst_146 {dimension_numbers = #tpu.dot_dimension_numbers<[1], [0], [0], [1], [0, 0, 1, 1], [], []>} : vector<2x32xf32>, vector<32x32xf32>, vector<2x32xf32> -> vector<2x32xf32>
    %cst_147 = arith.constant dense<0.000000e+00> : vector<2x32xf32>
    %416 = tpu.matmul %379, %63, %cst_147 {dimension_numbers = #tpu.dot_dimension_numbers<[1], [0], [0], [1], [0, 0, 1, 1], [], []>} : vector<2x32xf32>, vector<32x32xf32>, vector<2x32xf32> -> vector<2x32xf32>
    %417 = arith.addf %409, %414 : vector<2x32xf32>
    %418 = arith.negf %417 : vector<2x32xf32>
    %419 = math.exp %418 : vector<2x32xf32>
    %cst_148 = arith.constant 1.000000e+00 : f32
    %420 = vector.broadcast %cst_148 : f32 to vector<2x32xf32>
    %421 = arith.addf %420, %419 : vector<2x32xf32>
    %422 = arith.divf %420, %421 : vector<2x32xf32>
    %423 = arith.addf %411, %415 : vector<2x32xf32>
    %424 = arith.negf %423 : vector<2x32xf32>
    %425 = math.exp %424 : vector<2x32xf32>
    %cst_149 = arith.constant 1.000000e+00 : f32
    %426 = vector.broadcast %cst_149 : f32 to vector<2x32xf32>
    %427 = arith.addf %426, %425 : vector<2x32xf32>
    %428 = arith.divf %426, %427 : vector<2x32xf32>
    %429 = arith.addf %416, %53 : vector<2x32xf32>
    %430 = arith.mulf %422, %429 : vector<2x32xf32>
    %431 = arith.addf %413, %430 : vector<2x32xf32>
    %432 = math.tanh %431 : vector<2x32xf32>
    %433 = arith.subf %379, %432 : vector<2x32xf32>
    %434 = arith.mulf %428, %433 : vector<2x32xf32>
    %435 = arith.addf %432, %434 : vector<2x32xf32>
    %436 = vector.extract_strided_slice %33 {offsets = [1, 0, 0], sizes = [1, 2, 32], strides = [1, 1, 1]} : vector<8x2x32xf32> to vector<1x2x32xf32>
    %437 = vector.shape_cast %436 : vector<1x2x32xf32> to vector<2x32xf32>
    %438 = vector.extract_strided_slice %41 {offsets = [1, 0, 0], sizes = [1, 2, 32], strides = [1, 1, 1]} : vector<8x2x32xf32> to vector<1x2x32xf32>
    %439 = vector.shape_cast %438 : vector<1x2x32xf32> to vector<2x32xf32>
    %440 = vector.extract_strided_slice %49 {offsets = [1, 0, 0], sizes = [1, 2, 32], strides = [1, 1, 1]} : vector<8x2x32xf32> to vector<1x2x32xf32>
    %441 = vector.shape_cast %440 : vector<1x2x32xf32> to vector<2x32xf32>
    %cst_150 = arith.constant dense<0.000000e+00> : vector<2x32xf32>
    %442 = tpu.matmul %407, %65, %cst_150 {dimension_numbers = #tpu.dot_dimension_numbers<[1], [0], [0], [1], [0, 0, 1, 1], [], []>} : vector<2x32xf32>, vector<32x32xf32>, vector<2x32xf32> -> vector<2x32xf32>
    %cst_151 = arith.constant dense<0.000000e+00> : vector<2x32xf32>
    %443 = tpu.matmul %407, %67, %cst_151 {dimension_numbers = #tpu.dot_dimension_numbers<[1], [0], [0], [1], [0, 0, 1, 1], [], []>} : vector<2x32xf32>, vector<32x32xf32>, vector<2x32xf32> -> vector<2x32xf32>
    %cst_152 = arith.constant dense<0.000000e+00> : vector<2x32xf32>
    %444 = tpu.matmul %407, %69, %cst_152 {dimension_numbers = #tpu.dot_dimension_numbers<[1], [0], [0], [1], [0, 0, 1, 1], [], []>} : vector<2x32xf32>, vector<32x32xf32>, vector<2x32xf32> -> vector<2x32xf32>
    %445 = arith.addf %437, %442 : vector<2x32xf32>
    %446 = arith.negf %445 : vector<2x32xf32>
    %447 = math.exp %446 : vector<2x32xf32>
    %cst_153 = arith.constant 1.000000e+00 : f32
    %448 = vector.broadcast %cst_153 : f32 to vector<2x32xf32>
    %449 = arith.addf %448, %447 : vector<2x32xf32>
    %450 = arith.divf %448, %449 : vector<2x32xf32>
    %451 = arith.addf %439, %443 : vector<2x32xf32>
    %452 = arith.negf %451 : vector<2x32xf32>
    %453 = math.exp %452 : vector<2x32xf32>
    %cst_154 = arith.constant 1.000000e+00 : f32
    %454 = vector.broadcast %cst_154 : f32 to vector<2x32xf32>
    %455 = arith.addf %454, %453 : vector<2x32xf32>
    %456 = arith.divf %454, %455 : vector<2x32xf32>
    %457 = arith.addf %444, %57 : vector<2x32xf32>
    %458 = arith.mulf %450, %457 : vector<2x32xf32>
    %459 = arith.addf %441, %458 : vector<2x32xf32>
    %460 = math.tanh %459 : vector<2x32xf32>
    %461 = arith.subf %407, %460 : vector<2x32xf32>
    %462 = arith.mulf %456, %461 : vector<2x32xf32>
    %463 = arith.addf %460, %462 : vector<2x32xf32>
    %464 = vector.extract_strided_slice %9 {offsets = [7, 0, 0], sizes = [1, 2, 32], strides = [1, 1, 1]} : vector<8x2x32xf32> to vector<1x2x32xf32>
    %465 = vector.shape_cast %464 : vector<1x2x32xf32> to vector<2x32xf32>
    %466 = vector.extract_strided_slice %17 {offsets = [7, 0, 0], sizes = [1, 2, 32], strides = [1, 1, 1]} : vector<8x2x32xf32> to vector<1x2x32xf32>
    %467 = vector.shape_cast %466 : vector<1x2x32xf32> to vector<2x32xf32>
    %468 = vector.extract_strided_slice %25 {offsets = [7, 0, 0], sizes = [1, 2, 32], strides = [1, 1, 1]} : vector<8x2x32xf32> to vector<1x2x32xf32>
    %469 = vector.shape_cast %468 : vector<1x2x32xf32> to vector<2x32xf32>
    %cst_155 = arith.constant dense<0.000000e+00> : vector<2x32xf32>
    %470 = tpu.matmul %435, %59, %cst_155 {dimension_numbers = #tpu.dot_dimension_numbers<[1], [0], [0], [1], [0, 0, 1, 1], [], []>} : vector<2x32xf32>, vector<32x32xf32>, vector<2x32xf32> -> vector<2x32xf32>
    %cst_156 = arith.constant dense<0.000000e+00> : vector<2x32xf32>
    %471 = tpu.matmul %435, %61, %cst_156 {dimension_numbers = #tpu.dot_dimension_numbers<[1], [0], [0], [1], [0, 0, 1, 1], [], []>} : vector<2x32xf32>, vector<32x32xf32>, vector<2x32xf32> -> vector<2x32xf32>
    %cst_157 = arith.constant dense<0.000000e+00> : vector<2x32xf32>
    %472 = tpu.matmul %435, %63, %cst_157 {dimension_numbers = #tpu.dot_dimension_numbers<[1], [0], [0], [1], [0, 0, 1, 1], [], []>} : vector<2x32xf32>, vector<32x32xf32>, vector<2x32xf32> -> vector<2x32xf32>
    %473 = arith.addf %465, %470 : vector<2x32xf32>
    %474 = arith.negf %473 : vector<2x32xf32>
    %475 = math.exp %474 : vector<2x32xf32>
    %cst_158 = arith.constant 1.000000e+00 : f32
    %476 = vector.broadcast %cst_158 : f32 to vector<2x32xf32>
    %477 = arith.addf %476, %475 : vector<2x32xf32>
    %478 = arith.divf %476, %477 : vector<2x32xf32>
    %479 = arith.addf %467, %471 : vector<2x32xf32>
    %480 = arith.negf %479 : vector<2x32xf32>
    %481 = math.exp %480 : vector<2x32xf32>
    %cst_159 = arith.constant 1.000000e+00 : f32
    %482 = vector.broadcast %cst_159 : f32 to vector<2x32xf32>
    %483 = arith.addf %482, %481 : vector<2x32xf32>
    %484 = arith.divf %482, %483 : vector<2x32xf32>
    %485 = arith.addf %472, %53 : vector<2x32xf32>
    %486 = arith.mulf %478, %485 : vector<2x32xf32>
    %487 = arith.addf %469, %486 : vector<2x32xf32>
    %488 = math.tanh %487 : vector<2x32xf32>
    %489 = arith.subf %435, %488 : vector<2x32xf32>
    %490 = arith.mulf %484, %489 : vector<2x32xf32>
    %491 = arith.addf %488, %490 : vector<2x32xf32>
    %492 = vector.extract_strided_slice %33 {offsets = [0, 0, 0], sizes = [1, 2, 32], strides = [1, 1, 1]} : vector<8x2x32xf32> to vector<1x2x32xf32>
    %493 = vector.shape_cast %492 : vector<1x2x32xf32> to vector<2x32xf32>
    %494 = vector.extract_strided_slice %41 {offsets = [0, 0, 0], sizes = [1, 2, 32], strides = [1, 1, 1]} : vector<8x2x32xf32> to vector<1x2x32xf32>
    %495 = vector.shape_cast %494 : vector<1x2x32xf32> to vector<2x32xf32>
    %496 = vector.extract_strided_slice %49 {offsets = [0, 0, 0], sizes = [1, 2, 32], strides = [1, 1, 1]} : vector<8x2x32xf32> to vector<1x2x32xf32>
    %497 = vector.shape_cast %496 : vector<1x2x32xf32> to vector<2x32xf32>
    %cst_160 = arith.constant dense<0.000000e+00> : vector<2x32xf32>
    %498 = tpu.matmul %463, %65, %cst_160 {dimension_numbers = #tpu.dot_dimension_numbers<[1], [0], [0], [1], [0, 0, 1, 1], [], []>} : vector<2x32xf32>, vector<32x32xf32>, vector<2x32xf32> -> vector<2x32xf32>
    %cst_161 = arith.constant dense<0.000000e+00> : vector<2x32xf32>
    %499 = tpu.matmul %463, %67, %cst_161 {dimension_numbers = #tpu.dot_dimension_numbers<[1], [0], [0], [1], [0, 0, 1, 1], [], []>} : vector<2x32xf32>, vector<32x32xf32>, vector<2x32xf32> -> vector<2x32xf32>
    %cst_162 = arith.constant dense<0.000000e+00> : vector<2x32xf32>
    %500 = tpu.matmul %463, %69, %cst_162 {dimension_numbers = #tpu.dot_dimension_numbers<[1], [0], [0], [1], [0, 0, 1, 1], [], []>} : vector<2x32xf32>, vector<32x32xf32>, vector<2x32xf32> -> vector<2x32xf32>
    %501 = arith.addf %493, %498 : vector<2x32xf32>
    %502 = arith.negf %501 : vector<2x32xf32>
    %503 = math.exp %502 : vector<2x32xf32>
    %cst_163 = arith.constant 1.000000e+00 : f32
    %504 = vector.broadcast %cst_163 : f32 to vector<2x32xf32>
    %505 = arith.addf %504, %503 : vector<2x32xf32>
    %506 = arith.divf %504, %505 : vector<2x32xf32>
    %507 = arith.addf %495, %499 : vector<2x32xf32>
    %508 = arith.negf %507 : vector<2x32xf32>
    %509 = math.exp %508 : vector<2x32xf32>
    %cst_164 = arith.constant 1.000000e+00 : f32
    %510 = vector.broadcast %cst_164 : f32 to vector<2x32xf32>
    %511 = arith.addf %510, %509 : vector<2x32xf32>
    %512 = arith.divf %510, %511 : vector<2x32xf32>
    %513 = arith.addf %500, %57 : vector<2x32xf32>
    %514 = arith.mulf %506, %513 : vector<2x32xf32>
    %515 = arith.addf %497, %514 : vector<2x32xf32>
    %516 = math.tanh %515 : vector<2x32xf32>
    %517 = arith.subf %463, %516 : vector<2x32xf32>
    %518 = arith.mulf %512, %517 : vector<2x32xf32>
    %519 = arith.addf %516, %518 : vector<2x32xf32>
    %520 = tpu.concatenate %99, %155, %211, %267, %323, %379, %435, %491 in 0 : vector<2x32xf32>, vector<2x32xf32>, vector<2x32xf32>, vector<2x32xf32>, vector<2x32xf32>, vector<2x32xf32>, vector<2x32xf32>, vector<2x32xf32> -> vector<16x32xf32>
    %521 = tpu.concatenate %519, %463, %407, %351, %295, %239, %183, %127 in 0 : vector<2x32xf32>, vector<2x32xf32>, vector<2x32xf32>, vector<2x32xf32>, vector<2x32xf32>, vector<2x32xf32>, vector<2x32xf32>, vector<2x32xf32> -> vector<16x32xf32>
    %c0_165 = arith.constant 0 : index
    %c0_166 = arith.constant 0 : index
    %c0_167 = arith.constant 0 : index
    %c0_168 = arith.constant 0 : index
    %522 = vector.load %arg5[%c0_165, %c0_166, %c0_167, %c0_168] : memref<2x3x32x32xf32, #tpu.memory_space<vmem>>, vector<1x1x32x32xf32>
    %523 = vector.shape_cast %522 : vector<1x1x32x32xf32> to vector<32x32xf32>
    %cst_169 = arith.constant dense<0.000000e+00> : vector<16x32xf32>
    %524 = tpu.matmul %520, %523, %cst_169 {dimension_numbers = #tpu.dot_dimension_numbers<[1], [0], [0], [1], [0, 0, 1, 1], [], []>} : vector<16x32xf32>, vector<32x32xf32>, vector<16x32xf32> -> vector<16x32xf32>
    %c0_170 = arith.constant 0 : index
    %c0_171 = arith.constant 0 : index
    %c0_172 = arith.constant 0 : index
    %c0_173 = arith.constant 0 : index
    %525 = vector.load %arg6[%c0_170, %c0_171, %c0_172, %c0_173] : memref<2x3x32x32xf32, #tpu.memory_space<vmem>>, vector<1x1x32x32xf32>
    %526 = vector.shape_cast %525 : vector<1x1x32x32xf32> to vector<32x32xf32>
    %cst_174 = arith.constant dense<0.000000e+00> : vector<16x32xf32>
    %527 = tpu.matmul %521, %526, %cst_174 {dimension_numbers = #tpu.dot_dimension_numbers<[1], [0], [0], [1], [0, 0, 1, 1], [], []>} : vector<16x32xf32>, vector<32x32xf32>, vector<16x32xf32> -> vector<16x32xf32>
    %528 = arith.addf %524, %527 : vector<16x32xf32>
    %c0_175 = arith.constant 0 : index
    %c0_176 = arith.constant 0 : index
    %c0_177 = arith.constant 0 : index
    %c0_178 = arith.constant 0 : index
    %529 = vector.load %arg8[%c0_175, %c0_176, %c0_177, %c0_178] : memref<2x3x1x32xf32, #tpu.memory_space<vmem>>, vector<1x1x1x32xf32>
    %530 = vector.shape_cast %529 : vector<1x1x1x32xf32> to vector<1x32xf32>
    %531 = vector.broadcast %530 : vector<1x32xf32> to vector<16x32xf32>
    %532 = arith.addf %528, %531 : vector<16x32xf32>
    %533 = vector.shape_cast %532 : vector<16x32xf32> to vector<8x2x32xf32>
    %c0_179 = arith.constant 0 : index
    %c1_180 = arith.constant 1 : index
    %c0_181 = arith.constant 0 : index
    %c0_182 = arith.constant 0 : index
    %534 = vector.load %arg5[%c0_179, %c1_180, %c0_181, %c0_182] : memref<2x3x32x32xf32, #tpu.memory_space<vmem>>, vector<1x1x32x32xf32>
    %535 = vector.shape_cast %534 : vector<1x1x32x32xf32> to vector<32x32xf32>
    %cst_183 = arith.constant dense<0.000000e+00> : vector<16x32xf32>
    %536 = tpu.matmul %520, %535, %cst_183 {dimension_numbers = #tpu.dot_dimension_numbers<[1], [0], [0], [1], [0, 0, 1, 1], [], []>} : vector<16x32xf32>, vector<32x32xf32>, vector<16x32xf32> -> vector<16x32xf32>
    %c0_184 = arith.constant 0 : index
    %c1_185 = arith.constant 1 : index
    %c0_186 = arith.constant 0 : index
    %c0_187 = arith.constant 0 : index
    %537 = vector.load %arg6[%c0_184, %c1_185, %c0_186, %c0_187] : memref<2x3x32x32xf32, #tpu.memory_space<vmem>>, vector<1x1x32x32xf32>
    %538 = vector.shape_cast %537 : vector<1x1x32x32xf32> to vector<32x32xf32>
    %cst_188 = arith.constant dense<0.000000e+00> : vector<16x32xf32>
    %539 = tpu.matmul %521, %538, %cst_188 {dimension_numbers = #tpu.dot_dimension_numbers<[1], [0], [0], [1], [0, 0, 1, 1], [], []>} : vector<16x32xf32>, vector<32x32xf32>, vector<16x32xf32> -> vector<16x32xf32>
    %540 = arith.addf %536, %539 : vector<16x32xf32>
    %c0_189 = arith.constant 0 : index
    %c1_190 = arith.constant 1 : index
    %c0_191 = arith.constant 0 : index
    %c0_192 = arith.constant 0 : index
    %541 = vector.load %arg8[%c0_189, %c1_190, %c0_191, %c0_192] : memref<2x3x1x32xf32, #tpu.memory_space<vmem>>, vector<1x1x1x32xf32>
    %542 = vector.shape_cast %541 : vector<1x1x1x32xf32> to vector<1x32xf32>
    %543 = vector.broadcast %542 : vector<1x32xf32> to vector<16x32xf32>
    %544 = arith.addf %540, %543 : vector<16x32xf32>
    %545 = vector.shape_cast %544 : vector<16x32xf32> to vector<8x2x32xf32>
    %c0_193 = arith.constant 0 : index
    %c2_194 = arith.constant 2 : index
    %c0_195 = arith.constant 0 : index
    %c0_196 = arith.constant 0 : index
    %546 = vector.load %arg5[%c0_193, %c2_194, %c0_195, %c0_196] : memref<2x3x32x32xf32, #tpu.memory_space<vmem>>, vector<1x1x32x32xf32>
    %547 = vector.shape_cast %546 : vector<1x1x32x32xf32> to vector<32x32xf32>
    %cst_197 = arith.constant dense<0.000000e+00> : vector<16x32xf32>
    %548 = tpu.matmul %520, %547, %cst_197 {dimension_numbers = #tpu.dot_dimension_numbers<[1], [0], [0], [1], [0, 0, 1, 1], [], []>} : vector<16x32xf32>, vector<32x32xf32>, vector<16x32xf32> -> vector<16x32xf32>
    %c0_198 = arith.constant 0 : index
    %c2_199 = arith.constant 2 : index
    %c0_200 = arith.constant 0 : index
    %c0_201 = arith.constant 0 : index
    %549 = vector.load %arg6[%c0_198, %c2_199, %c0_200, %c0_201] : memref<2x3x32x32xf32, #tpu.memory_space<vmem>>, vector<1x1x32x32xf32>
    %550 = vector.shape_cast %549 : vector<1x1x32x32xf32> to vector<32x32xf32>
    %cst_202 = arith.constant dense<0.000000e+00> : vector<16x32xf32>
    %551 = tpu.matmul %521, %550, %cst_202 {dimension_numbers = #tpu.dot_dimension_numbers<[1], [0], [0], [1], [0, 0, 1, 1], [], []>} : vector<16x32xf32>, vector<32x32xf32>, vector<16x32xf32> -> vector<16x32xf32>
    %552 = arith.addf %548, %551 : vector<16x32xf32>
    %c0_203 = arith.constant 0 : index
    %c2_204 = arith.constant 2 : index
    %c0_205 = arith.constant 0 : index
    %c0_206 = arith.constant 0 : index
    %553 = vector.load %arg8[%c0_203, %c2_204, %c0_205, %c0_206] : memref<2x3x1x32xf32, #tpu.memory_space<vmem>>, vector<1x1x1x32xf32>
    %554 = vector.shape_cast %553 : vector<1x1x1x32xf32> to vector<1x32xf32>
    %555 = vector.broadcast %554 : vector<1x32xf32> to vector<16x32xf32>
    %556 = arith.addf %552, %555 : vector<16x32xf32>
    %557 = vector.shape_cast %556 : vector<16x32xf32> to vector<8x2x32xf32>
    %c1_207 = arith.constant 1 : index
    %c0_208 = arith.constant 0 : index
    %c0_209 = arith.constant 0 : index
    %c0_210 = arith.constant 0 : index
    %558 = vector.load %arg5[%c1_207, %c0_208, %c0_209, %c0_210] : memref<2x3x32x32xf32, #tpu.memory_space<vmem>>, vector<1x1x32x32xf32>
    %559 = vector.shape_cast %558 : vector<1x1x32x32xf32> to vector<32x32xf32>
    %cst_211 = arith.constant dense<0.000000e+00> : vector<16x32xf32>
    %560 = tpu.matmul %520, %559, %cst_211 {dimension_numbers = #tpu.dot_dimension_numbers<[1], [0], [0], [1], [0, 0, 1, 1], [], []>} : vector<16x32xf32>, vector<32x32xf32>, vector<16x32xf32> -> vector<16x32xf32>
    %c1_212 = arith.constant 1 : index
    %c0_213 = arith.constant 0 : index
    %c0_214 = arith.constant 0 : index
    %c0_215 = arith.constant 0 : index
    %561 = vector.load %arg6[%c1_212, %c0_213, %c0_214, %c0_215] : memref<2x3x32x32xf32, #tpu.memory_space<vmem>>, vector<1x1x32x32xf32>
    %562 = vector.shape_cast %561 : vector<1x1x32x32xf32> to vector<32x32xf32>
    %cst_216 = arith.constant dense<0.000000e+00> : vector<16x32xf32>
    %563 = tpu.matmul %521, %562, %cst_216 {dimension_numbers = #tpu.dot_dimension_numbers<[1], [0], [0], [1], [0, 0, 1, 1], [], []>} : vector<16x32xf32>, vector<32x32xf32>, vector<16x32xf32> -> vector<16x32xf32>
    %564 = arith.addf %560, %563 : vector<16x32xf32>
    %c1_217 = arith.constant 1 : index
    %c0_218 = arith.constant 0 : index
    %c0_219 = arith.constant 0 : index
    %c0_220 = arith.constant 0 : index
    %565 = vector.load %arg8[%c1_217, %c0_218, %c0_219, %c0_220] : memref<2x3x1x32xf32, #tpu.memory_space<vmem>>, vector<1x1x1x32xf32>
    %566 = vector.shape_cast %565 : vector<1x1x1x32xf32> to vector<1x32xf32>
    %567 = vector.broadcast %566 : vector<1x32xf32> to vector<16x32xf32>
    %568 = arith.addf %564, %567 : vector<16x32xf32>
    %569 = vector.shape_cast %568 : vector<16x32xf32> to vector<8x2x32xf32>
    %c1_221 = arith.constant 1 : index
    %c1_222 = arith.constant 1 : index
    %c0_223 = arith.constant 0 : index
    %c0_224 = arith.constant 0 : index
    %570 = vector.load %arg5[%c1_221, %c1_222, %c0_223, %c0_224] : memref<2x3x32x32xf32, #tpu.memory_space<vmem>>, vector<1x1x32x32xf32>
    %571 = vector.shape_cast %570 : vector<1x1x32x32xf32> to vector<32x32xf32>
    %cst_225 = arith.constant dense<0.000000e+00> : vector<16x32xf32>
    %572 = tpu.matmul %520, %571, %cst_225 {dimension_numbers = #tpu.dot_dimension_numbers<[1], [0], [0], [1], [0, 0, 1, 1], [], []>} : vector<16x32xf32>, vector<32x32xf32>, vector<16x32xf32> -> vector<16x32xf32>
    %c1_226 = arith.constant 1 : index
    %c1_227 = arith.constant 1 : index
    %c0_228 = arith.constant 0 : index
    %c0_229 = arith.constant 0 : index
    %573 = vector.load %arg6[%c1_226, %c1_227, %c0_228, %c0_229] : memref<2x3x32x32xf32, #tpu.memory_space<vmem>>, vector<1x1x32x32xf32>
    %574 = vector.shape_cast %573 : vector<1x1x32x32xf32> to vector<32x32xf32>
    %cst_230 = arith.constant dense<0.000000e+00> : vector<16x32xf32>
    %575 = tpu.matmul %521, %574, %cst_230 {dimension_numbers = #tpu.dot_dimension_numbers<[1], [0], [0], [1], [0, 0, 1, 1], [], []>} : vector<16x32xf32>, vector<32x32xf32>, vector<16x32xf32> -> vector<16x32xf32>
    %576 = arith.addf %572, %575 : vector<16x32xf32>
    %c1_231 = arith.constant 1 : index
    %c1_232 = arith.constant 1 : index
    %c0_233 = arith.constant 0 : index
    %c0_234 = arith.constant 0 : index
    %577 = vector.load %arg8[%c1_231, %c1_232, %c0_233, %c0_234] : memref<2x3x1x32xf32, #tpu.memory_space<vmem>>, vector<1x1x1x32xf32>
    %578 = vector.shape_cast %577 : vector<1x1x1x32xf32> to vector<1x32xf32>
    %579 = vector.broadcast %578 : vector<1x32xf32> to vector<16x32xf32>
    %580 = arith.addf %576, %579 : vector<16x32xf32>
    %581 = vector.shape_cast %580 : vector<16x32xf32> to vector<8x2x32xf32>
    %c1_235 = arith.constant 1 : index
    %c2_236 = arith.constant 2 : index
    %c0_237 = arith.constant 0 : index
    %c0_238 = arith.constant 0 : index
    %582 = vector.load %arg5[%c1_235, %c2_236, %c0_237, %c0_238] : memref<2x3x32x32xf32, #tpu.memory_space<vmem>>, vector<1x1x32x32xf32>
    %583 = vector.shape_cast %582 : vector<1x1x32x32xf32> to vector<32x32xf32>
    %cst_239 = arith.constant dense<0.000000e+00> : vector<16x32xf32>
    %584 = tpu.matmul %520, %583, %cst_239 {dimension_numbers = #tpu.dot_dimension_numbers<[1], [0], [0], [1], [0, 0, 1, 1], [], []>} : vector<16x32xf32>, vector<32x32xf32>, vector<16x32xf32> -> vector<16x32xf32>
    %c1_240 = arith.constant 1 : index
    %c2_241 = arith.constant 2 : index
    %c0_242 = arith.constant 0 : index
    %c0_243 = arith.constant 0 : index
    %585 = vector.load %arg6[%c1_240, %c2_241, %c0_242, %c0_243] : memref<2x3x32x32xf32, #tpu.memory_space<vmem>>, vector<1x1x32x32xf32>
    %586 = vector.shape_cast %585 : vector<1x1x32x32xf32> to vector<32x32xf32>
    %cst_244 = arith.constant dense<0.000000e+00> : vector<16x32xf32>
    %587 = tpu.matmul %521, %586, %cst_244 {dimension_numbers = #tpu.dot_dimension_numbers<[1], [0], [0], [1], [0, 0, 1, 1], [], []>} : vector<16x32xf32>, vector<32x32xf32>, vector<16x32xf32> -> vector<16x32xf32>
    %588 = arith.addf %584, %587 : vector<16x32xf32>
    %c1_245 = arith.constant 1 : index
    %c2_246 = arith.constant 2 : index
    %c0_247 = arith.constant 0 : index
    %c0_248 = arith.constant 0 : index
    %589 = vector.load %arg8[%c1_245, %c2_246, %c0_247, %c0_248] : memref<2x3x1x32xf32, #tpu.memory_space<vmem>>, vector<1x1x1x32xf32>
    %590 = vector.shape_cast %589 : vector<1x1x1x32xf32> to vector<1x32xf32>
    %591 = vector.broadcast %590 : vector<1x32xf32> to vector<16x32xf32>
    %592 = arith.addf %588, %591 : vector<16x32xf32>
    %593 = vector.shape_cast %592 : vector<16x32xf32> to vector<8x2x32xf32>
    %c0_249 = arith.constant 0 : index
    %c0_250 = arith.constant 0 : index
    %c0_251 = arith.constant 0 : index
    %594 = vector.load %arg9[%c0_249, %c0_250, %c0_251] : memref<2x1x32xf32, #tpu.memory_space<vmem>>, vector<1x1x32xf32>
    %595 = vector.shape_cast %594 : vector<1x1x32xf32> to vector<1x32xf32>
    %596 = vector.shape_cast %595 : vector<1x32xf32> to vector<1x32xf32>
    %597 = vector.broadcast %596 : vector<1x32xf32> to vector<2x32xf32>
    %c1_252 = arith.constant 1 : index
    %c0_253 = arith.constant 0 : index
    %c0_254 = arith.constant 0 : index
    %598 = vector.load %arg9[%c1_252, %c0_253, %c0_254] : memref<2x1x32xf32, #tpu.memory_space<vmem>>, vector<1x1x32xf32>
    %599 = vector.shape_cast %598 : vector<1x1x32xf32> to vector<1x32xf32>
    %600 = vector.shape_cast %599 : vector<1x32xf32> to vector<1x32xf32>
    %601 = vector.broadcast %600 : vector<1x32xf32> to vector<2x32xf32>
    %c0_255 = arith.constant 0 : index
    %c0_256 = arith.constant 0 : index
    %c0_257 = arith.constant 0 : index
    %c0_258 = arith.constant 0 : index
    %602 = vector.load %arg7[%c0_255, %c0_256, %c0_257, %c0_258] : memref<2x3x32x32xf32, #tpu.memory_space<vmem>>, vector<1x1x32x32xf32>
    %603 = vector.shape_cast %602 : vector<1x1x32x32xf32> to vector<32x32xf32>
    %c0_259 = arith.constant 0 : index
    %c1_260 = arith.constant 1 : index
    %c0_261 = arith.constant 0 : index
    %c0_262 = arith.constant 0 : index
    %604 = vector.load %arg7[%c0_259, %c1_260, %c0_261, %c0_262] : memref<2x3x32x32xf32, #tpu.memory_space<vmem>>, vector<1x1x32x32xf32>
    %605 = vector.shape_cast %604 : vector<1x1x32x32xf32> to vector<32x32xf32>
    %c0_263 = arith.constant 0 : index
    %c2_264 = arith.constant 2 : index
    %c0_265 = arith.constant 0 : index
    %c0_266 = arith.constant 0 : index
    %606 = vector.load %arg7[%c0_263, %c2_264, %c0_265, %c0_266] : memref<2x3x32x32xf32, #tpu.memory_space<vmem>>, vector<1x1x32x32xf32>
    %607 = vector.shape_cast %606 : vector<1x1x32x32xf32> to vector<32x32xf32>
    %c1_267 = arith.constant 1 : index
    %c0_268 = arith.constant 0 : index
    %c0_269 = arith.constant 0 : index
    %c0_270 = arith.constant 0 : index
    %608 = vector.load %arg7[%c1_267, %c0_268, %c0_269, %c0_270] : memref<2x3x32x32xf32, #tpu.memory_space<vmem>>, vector<1x1x32x32xf32>
    %609 = vector.shape_cast %608 : vector<1x1x32x32xf32> to vector<32x32xf32>
    %c1_271 = arith.constant 1 : index
    %c1_272 = arith.constant 1 : index
    %c0_273 = arith.constant 0 : index
    %c0_274 = arith.constant 0 : index
    %610 = vector.load %arg7[%c1_271, %c1_272, %c0_273, %c0_274] : memref<2x3x32x32xf32, #tpu.memory_space<vmem>>, vector<1x1x32x32xf32>
    %611 = vector.shape_cast %610 : vector<1x1x32x32xf32> to vector<32x32xf32>
    %c1_275 = arith.constant 1 : index
    %c2_276 = arith.constant 2 : index
    %c0_277 = arith.constant 0 : index
    %c0_278 = arith.constant 0 : index
    %612 = vector.load %arg7[%c1_275, %c2_276, %c0_277, %c0_278] : memref<2x3x32x32xf32, #tpu.memory_space<vmem>>, vector<1x1x32x32xf32>
    %613 = vector.shape_cast %612 : vector<1x1x32x32xf32> to vector<32x32xf32>
    %cst_279 = arith.constant 0.000000e+00 : f32
    %614 = vector.broadcast %cst_279 : f32 to vector<2x32xf32>
    %cst_280 = arith.constant 0.000000e+00 : f32
    %615 = vector.broadcast %cst_280 : f32 to vector<2x32xf32>
    %616 = vector.extract_strided_slice %533 {offsets = [0, 0, 0], sizes = [1, 2, 32], strides = [1, 1, 1]} : vector<8x2x32xf32> to vector<1x2x32xf32>
    %617 = vector.shape_cast %616 : vector<1x2x32xf32> to vector<2x32xf32>
    %618 = vector.extract_strided_slice %545 {offsets = [0, 0, 0], sizes = [1, 2, 32], strides = [1, 1, 1]} : vector<8x2x32xf32> to vector<1x2x32xf32>
    %619 = vector.shape_cast %618 : vector<1x2x32xf32> to vector<2x32xf32>
    %620 = vector.extract_strided_slice %557 {offsets = [0, 0, 0], sizes = [1, 2, 32], strides = [1, 1, 1]} : vector<8x2x32xf32> to vector<1x2x32xf32>
    %621 = vector.shape_cast %620 : vector<1x2x32xf32> to vector<2x32xf32>
    %cst_281 = arith.constant dense<0.000000e+00> : vector<2x32xf32>
    %622 = tpu.matmul %614, %603, %cst_281 {dimension_numbers = #tpu.dot_dimension_numbers<[1], [0], [0], [1], [0, 0, 1, 1], [], []>} : vector<2x32xf32>, vector<32x32xf32>, vector<2x32xf32> -> vector<2x32xf32>
    %cst_282 = arith.constant dense<0.000000e+00> : vector<2x32xf32>
    %623 = tpu.matmul %614, %605, %cst_282 {dimension_numbers = #tpu.dot_dimension_numbers<[1], [0], [0], [1], [0, 0, 1, 1], [], []>} : vector<2x32xf32>, vector<32x32xf32>, vector<2x32xf32> -> vector<2x32xf32>
    %cst_283 = arith.constant dense<0.000000e+00> : vector<2x32xf32>
    %624 = tpu.matmul %614, %607, %cst_283 {dimension_numbers = #tpu.dot_dimension_numbers<[1], [0], [0], [1], [0, 0, 1, 1], [], []>} : vector<2x32xf32>, vector<32x32xf32>, vector<2x32xf32> -> vector<2x32xf32>
    %625 = arith.addf %617, %622 : vector<2x32xf32>
    %626 = arith.negf %625 : vector<2x32xf32>
    %627 = math.exp %626 : vector<2x32xf32>
    %cst_284 = arith.constant 1.000000e+00 : f32
    %628 = vector.broadcast %cst_284 : f32 to vector<2x32xf32>
    %629 = arith.addf %628, %627 : vector<2x32xf32>
    %630 = arith.divf %628, %629 : vector<2x32xf32>
    %631 = arith.addf %619, %623 : vector<2x32xf32>
    %632 = arith.negf %631 : vector<2x32xf32>
    %633 = math.exp %632 : vector<2x32xf32>
    %cst_285 = arith.constant 1.000000e+00 : f32
    %634 = vector.broadcast %cst_285 : f32 to vector<2x32xf32>
    %635 = arith.addf %634, %633 : vector<2x32xf32>
    %636 = arith.divf %634, %635 : vector<2x32xf32>
    %637 = arith.addf %624, %597 : vector<2x32xf32>
    %638 = arith.mulf %630, %637 : vector<2x32xf32>
    %639 = arith.addf %621, %638 : vector<2x32xf32>
    %640 = math.tanh %639 : vector<2x32xf32>
    %641 = arith.subf %614, %640 : vector<2x32xf32>
    %642 = arith.mulf %636, %641 : vector<2x32xf32>
    %643 = arith.addf %640, %642 : vector<2x32xf32>
    %644 = vector.extract_strided_slice %569 {offsets = [7, 0, 0], sizes = [1, 2, 32], strides = [1, 1, 1]} : vector<8x2x32xf32> to vector<1x2x32xf32>
    %645 = vector.shape_cast %644 : vector<1x2x32xf32> to vector<2x32xf32>
    %646 = vector.extract_strided_slice %581 {offsets = [7, 0, 0], sizes = [1, 2, 32], strides = [1, 1, 1]} : vector<8x2x32xf32> to vector<1x2x32xf32>
    %647 = vector.shape_cast %646 : vector<1x2x32xf32> to vector<2x32xf32>
    %648 = vector.extract_strided_slice %593 {offsets = [7, 0, 0], sizes = [1, 2, 32], strides = [1, 1, 1]} : vector<8x2x32xf32> to vector<1x2x32xf32>
    %649 = vector.shape_cast %648 : vector<1x2x32xf32> to vector<2x32xf32>
    %cst_286 = arith.constant dense<0.000000e+00> : vector<2x32xf32>
    %650 = tpu.matmul %615, %609, %cst_286 {dimension_numbers = #tpu.dot_dimension_numbers<[1], [0], [0], [1], [0, 0, 1, 1], [], []>} : vector<2x32xf32>, vector<32x32xf32>, vector<2x32xf32> -> vector<2x32xf32>
    %cst_287 = arith.constant dense<0.000000e+00> : vector<2x32xf32>
    %651 = tpu.matmul %615, %611, %cst_287 {dimension_numbers = #tpu.dot_dimension_numbers<[1], [0], [0], [1], [0, 0, 1, 1], [], []>} : vector<2x32xf32>, vector<32x32xf32>, vector<2x32xf32> -> vector<2x32xf32>
    %cst_288 = arith.constant dense<0.000000e+00> : vector<2x32xf32>
    %652 = tpu.matmul %615, %613, %cst_288 {dimension_numbers = #tpu.dot_dimension_numbers<[1], [0], [0], [1], [0, 0, 1, 1], [], []>} : vector<2x32xf32>, vector<32x32xf32>, vector<2x32xf32> -> vector<2x32xf32>
    %653 = arith.addf %645, %650 : vector<2x32xf32>
    %654 = arith.negf %653 : vector<2x32xf32>
    %655 = math.exp %654 : vector<2x32xf32>
    %cst_289 = arith.constant 1.000000e+00 : f32
    %656 = vector.broadcast %cst_289 : f32 to vector<2x32xf32>
    %657 = arith.addf %656, %655 : vector<2x32xf32>
    %658 = arith.divf %656, %657 : vector<2x32xf32>
    %659 = arith.addf %647, %651 : vector<2x32xf32>
    %660 = arith.negf %659 : vector<2x32xf32>
    %661 = math.exp %660 : vector<2x32xf32>
    %cst_290 = arith.constant 1.000000e+00 : f32
    %662 = vector.broadcast %cst_290 : f32 to vector<2x32xf32>
    %663 = arith.addf %662, %661 : vector<2x32xf32>
    %664 = arith.divf %662, %663 : vector<2x32xf32>
    %665 = arith.addf %652, %601 : vector<2x32xf32>
    %666 = arith.mulf %658, %665 : vector<2x32xf32>
    %667 = arith.addf %649, %666 : vector<2x32xf32>
    %668 = math.tanh %667 : vector<2x32xf32>
    %669 = arith.subf %615, %668 : vector<2x32xf32>
    %670 = arith.mulf %664, %669 : vector<2x32xf32>
    %671 = arith.addf %668, %670 : vector<2x32xf32>
    %672 = vector.extract_strided_slice %533 {offsets = [1, 0, 0], sizes = [1, 2, 32], strides = [1, 1, 1]} : vector<8x2x32xf32> to vector<1x2x32xf32>
    %673 = vector.shape_cast %672 : vector<1x2x32xf32> to vector<2x32xf32>
    %674 = vector.extract_strided_slice %545 {offsets = [1, 0, 0], sizes = [1, 2, 32], strides = [1, 1, 1]} : vector<8x2x32xf32> to vector<1x2x32xf32>
    %675 = vector.shape_cast %674 : vector<1x2x32xf32> to vector<2x32xf32>
    %676 = vector.extract_strided_slice %557 {offsets = [1, 0, 0], sizes = [1, 2, 32], strides = [1, 1, 1]} : vector<8x2x32xf32> to vector<1x2x32xf32>
    %677 = vector.shape_cast %676 : vector<1x2x32xf32> to vector<2x32xf32>
    %cst_291 = arith.constant dense<0.000000e+00> : vector<2x32xf32>
    %678 = tpu.matmul %643, %603, %cst_291 {dimension_numbers = #tpu.dot_dimension_numbers<[1], [0], [0], [1], [0, 0, 1, 1], [], []>} : vector<2x32xf32>, vector<32x32xf32>, vector<2x32xf32> -> vector<2x32xf32>
    %cst_292 = arith.constant dense<0.000000e+00> : vector<2x32xf32>
    %679 = tpu.matmul %643, %605, %cst_292 {dimension_numbers = #tpu.dot_dimension_numbers<[1], [0], [0], [1], [0, 0, 1, 1], [], []>} : vector<2x32xf32>, vector<32x32xf32>, vector<2x32xf32> -> vector<2x32xf32>
    %cst_293 = arith.constant dense<0.000000e+00> : vector<2x32xf32>
    %680 = tpu.matmul %643, %607, %cst_293 {dimension_numbers = #tpu.dot_dimension_numbers<[1], [0], [0], [1], [0, 0, 1, 1], [], []>} : vector<2x32xf32>, vector<32x32xf32>, vector<2x32xf32> -> vector<2x32xf32>
    %681 = arith.addf %673, %678 : vector<2x32xf32>
    %682 = arith.negf %681 : vector<2x32xf32>
    %683 = math.exp %682 : vector<2x32xf32>
    %cst_294 = arith.constant 1.000000e+00 : f32
    %684 = vector.broadcast %cst_294 : f32 to vector<2x32xf32>
    %685 = arith.addf %684, %683 : vector<2x32xf32>
    %686 = arith.divf %684, %685 : vector<2x32xf32>
    %687 = arith.addf %675, %679 : vector<2x32xf32>
    %688 = arith.negf %687 : vector<2x32xf32>
    %689 = math.exp %688 : vector<2x32xf32>
    %cst_295 = arith.constant 1.000000e+00 : f32
    %690 = vector.broadcast %cst_295 : f32 to vector<2x32xf32>
    %691 = arith.addf %690, %689 : vector<2x32xf32>
    %692 = arith.divf %690, %691 : vector<2x32xf32>
    %693 = arith.addf %680, %597 : vector<2x32xf32>
    %694 = arith.mulf %686, %693 : vector<2x32xf32>
    %695 = arith.addf %677, %694 : vector<2x32xf32>
    %696 = math.tanh %695 : vector<2x32xf32>
    %697 = arith.subf %643, %696 : vector<2x32xf32>
    %698 = arith.mulf %692, %697 : vector<2x32xf32>
    %699 = arith.addf %696, %698 : vector<2x32xf32>
    %700 = vector.extract_strided_slice %569 {offsets = [6, 0, 0], sizes = [1, 2, 32], strides = [1, 1, 1]} : vector<8x2x32xf32> to vector<1x2x32xf32>
    %701 = vector.shape_cast %700 : vector<1x2x32xf32> to vector<2x32xf32>
    %702 = vector.extract_strided_slice %581 {offsets = [6, 0, 0], sizes = [1, 2, 32], strides = [1, 1, 1]} : vector<8x2x32xf32> to vector<1x2x32xf32>
    %703 = vector.shape_cast %702 : vector<1x2x32xf32> to vector<2x32xf32>
    %704 = vector.extract_strided_slice %593 {offsets = [6, 0, 0], sizes = [1, 2, 32], strides = [1, 1, 1]} : vector<8x2x32xf32> to vector<1x2x32xf32>
    %705 = vector.shape_cast %704 : vector<1x2x32xf32> to vector<2x32xf32>
    %cst_296 = arith.constant dense<0.000000e+00> : vector<2x32xf32>
    %706 = tpu.matmul %671, %609, %cst_296 {dimension_numbers = #tpu.dot_dimension_numbers<[1], [0], [0], [1], [0, 0, 1, 1], [], []>} : vector<2x32xf32>, vector<32x32xf32>, vector<2x32xf32> -> vector<2x32xf32>
    %cst_297 = arith.constant dense<0.000000e+00> : vector<2x32xf32>
    %707 = tpu.matmul %671, %611, %cst_297 {dimension_numbers = #tpu.dot_dimension_numbers<[1], [0], [0], [1], [0, 0, 1, 1], [], []>} : vector<2x32xf32>, vector<32x32xf32>, vector<2x32xf32> -> vector<2x32xf32>
    %cst_298 = arith.constant dense<0.000000e+00> : vector<2x32xf32>
    %708 = tpu.matmul %671, %613, %cst_298 {dimension_numbers = #tpu.dot_dimension_numbers<[1], [0], [0], [1], [0, 0, 1, 1], [], []>} : vector<2x32xf32>, vector<32x32xf32>, vector<2x32xf32> -> vector<2x32xf32>
    %709 = arith.addf %701, %706 : vector<2x32xf32>
    %710 = arith.negf %709 : vector<2x32xf32>
    %711 = math.exp %710 : vector<2x32xf32>
    %cst_299 = arith.constant 1.000000e+00 : f32
    %712 = vector.broadcast %cst_299 : f32 to vector<2x32xf32>
    %713 = arith.addf %712, %711 : vector<2x32xf32>
    %714 = arith.divf %712, %713 : vector<2x32xf32>
    %715 = arith.addf %703, %707 : vector<2x32xf32>
    %716 = arith.negf %715 : vector<2x32xf32>
    %717 = math.exp %716 : vector<2x32xf32>
    %cst_300 = arith.constant 1.000000e+00 : f32
    %718 = vector.broadcast %cst_300 : f32 to vector<2x32xf32>
    %719 = arith.addf %718, %717 : vector<2x32xf32>
    %720 = arith.divf %718, %719 : vector<2x32xf32>
    %721 = arith.addf %708, %601 : vector<2x32xf32>
    %722 = arith.mulf %714, %721 : vector<2x32xf32>
    %723 = arith.addf %705, %722 : vector<2x32xf32>
    %724 = math.tanh %723 : vector<2x32xf32>
    %725 = arith.subf %671, %724 : vector<2x32xf32>
    %726 = arith.mulf %720, %725 : vector<2x32xf32>
    %727 = arith.addf %724, %726 : vector<2x32xf32>
    %728 = vector.extract_strided_slice %533 {offsets = [2, 0, 0], sizes = [1, 2, 32], strides = [1, 1, 1]} : vector<8x2x32xf32> to vector<1x2x32xf32>
    %729 = vector.shape_cast %728 : vector<1x2x32xf32> to vector<2x32xf32>
    %730 = vector.extract_strided_slice %545 {offsets = [2, 0, 0], sizes = [1, 2, 32], strides = [1, 1, 1]} : vector<8x2x32xf32> to vector<1x2x32xf32>
    %731 = vector.shape_cast %730 : vector<1x2x32xf32> to vector<2x32xf32>
    %732 = vector.extract_strided_slice %557 {offsets = [2, 0, 0], sizes = [1, 2, 32], strides = [1, 1, 1]} : vector<8x2x32xf32> to vector<1x2x32xf32>
    %733 = vector.shape_cast %732 : vector<1x2x32xf32> to vector<2x32xf32>
    %cst_301 = arith.constant dense<0.000000e+00> : vector<2x32xf32>
    %734 = tpu.matmul %699, %603, %cst_301 {dimension_numbers = #tpu.dot_dimension_numbers<[1], [0], [0], [1], [0, 0, 1, 1], [], []>} : vector<2x32xf32>, vector<32x32xf32>, vector<2x32xf32> -> vector<2x32xf32>
    %cst_302 = arith.constant dense<0.000000e+00> : vector<2x32xf32>
    %735 = tpu.matmul %699, %605, %cst_302 {dimension_numbers = #tpu.dot_dimension_numbers<[1], [0], [0], [1], [0, 0, 1, 1], [], []>} : vector<2x32xf32>, vector<32x32xf32>, vector<2x32xf32> -> vector<2x32xf32>
    %cst_303 = arith.constant dense<0.000000e+00> : vector<2x32xf32>
    %736 = tpu.matmul %699, %607, %cst_303 {dimension_numbers = #tpu.dot_dimension_numbers<[1], [0], [0], [1], [0, 0, 1, 1], [], []>} : vector<2x32xf32>, vector<32x32xf32>, vector<2x32xf32> -> vector<2x32xf32>
    %737 = arith.addf %729, %734 : vector<2x32xf32>
    %738 = arith.negf %737 : vector<2x32xf32>
    %739 = math.exp %738 : vector<2x32xf32>
    %cst_304 = arith.constant 1.000000e+00 : f32
    %740 = vector.broadcast %cst_304 : f32 to vector<2x32xf32>
    %741 = arith.addf %740, %739 : vector<2x32xf32>
    %742 = arith.divf %740, %741 : vector<2x32xf32>
    %743 = arith.addf %731, %735 : vector<2x32xf32>
    %744 = arith.negf %743 : vector<2x32xf32>
    %745 = math.exp %744 : vector<2x32xf32>
    %cst_305 = arith.constant 1.000000e+00 : f32
    %746 = vector.broadcast %cst_305 : f32 to vector<2x32xf32>
    %747 = arith.addf %746, %745 : vector<2x32xf32>
    %748 = arith.divf %746, %747 : vector<2x32xf32>
    %749 = arith.addf %736, %597 : vector<2x32xf32>
    %750 = arith.mulf %742, %749 : vector<2x32xf32>
    %751 = arith.addf %733, %750 : vector<2x32xf32>
    %752 = math.tanh %751 : vector<2x32xf32>
    %753 = arith.subf %699, %752 : vector<2x32xf32>
    %754 = arith.mulf %748, %753 : vector<2x32xf32>
    %755 = arith.addf %752, %754 : vector<2x32xf32>
    %756 = vector.extract_strided_slice %569 {offsets = [5, 0, 0], sizes = [1, 2, 32], strides = [1, 1, 1]} : vector<8x2x32xf32> to vector<1x2x32xf32>
    %757 = vector.shape_cast %756 : vector<1x2x32xf32> to vector<2x32xf32>
    %758 = vector.extract_strided_slice %581 {offsets = [5, 0, 0], sizes = [1, 2, 32], strides = [1, 1, 1]} : vector<8x2x32xf32> to vector<1x2x32xf32>
    %759 = vector.shape_cast %758 : vector<1x2x32xf32> to vector<2x32xf32>
    %760 = vector.extract_strided_slice %593 {offsets = [5, 0, 0], sizes = [1, 2, 32], strides = [1, 1, 1]} : vector<8x2x32xf32> to vector<1x2x32xf32>
    %761 = vector.shape_cast %760 : vector<1x2x32xf32> to vector<2x32xf32>
    %cst_306 = arith.constant dense<0.000000e+00> : vector<2x32xf32>
    %762 = tpu.matmul %727, %609, %cst_306 {dimension_numbers = #tpu.dot_dimension_numbers<[1], [0], [0], [1], [0, 0, 1, 1], [], []>} : vector<2x32xf32>, vector<32x32xf32>, vector<2x32xf32> -> vector<2x32xf32>
    %cst_307 = arith.constant dense<0.000000e+00> : vector<2x32xf32>
    %763 = tpu.matmul %727, %611, %cst_307 {dimension_numbers = #tpu.dot_dimension_numbers<[1], [0], [0], [1], [0, 0, 1, 1], [], []>} : vector<2x32xf32>, vector<32x32xf32>, vector<2x32xf32> -> vector<2x32xf32>
    %cst_308 = arith.constant dense<0.000000e+00> : vector<2x32xf32>
    %764 = tpu.matmul %727, %613, %cst_308 {dimension_numbers = #tpu.dot_dimension_numbers<[1], [0], [0], [1], [0, 0, 1, 1], [], []>} : vector<2x32xf32>, vector<32x32xf32>, vector<2x32xf32> -> vector<2x32xf32>
    %765 = arith.addf %757, %762 : vector<2x32xf32>
    %766 = arith.negf %765 : vector<2x32xf32>
    %767 = math.exp %766 : vector<2x32xf32>
    %cst_309 = arith.constant 1.000000e+00 : f32
    %768 = vector.broadcast %cst_309 : f32 to vector<2x32xf32>
    %769 = arith.addf %768, %767 : vector<2x32xf32>
    %770 = arith.divf %768, %769 : vector<2x32xf32>
    %771 = arith.addf %759, %763 : vector<2x32xf32>
    %772 = arith.negf %771 : vector<2x32xf32>
    %773 = math.exp %772 : vector<2x32xf32>
    %cst_310 = arith.constant 1.000000e+00 : f32
    %774 = vector.broadcast %cst_310 : f32 to vector<2x32xf32>
    %775 = arith.addf %774, %773 : vector<2x32xf32>
    %776 = arith.divf %774, %775 : vector<2x32xf32>
    %777 = arith.addf %764, %601 : vector<2x32xf32>
    %778 = arith.mulf %770, %777 : vector<2x32xf32>
    %779 = arith.addf %761, %778 : vector<2x32xf32>
    %780 = math.tanh %779 : vector<2x32xf32>
    %781 = arith.subf %727, %780 : vector<2x32xf32>
    %782 = arith.mulf %776, %781 : vector<2x32xf32>
    %783 = arith.addf %780, %782 : vector<2x32xf32>
    %784 = vector.extract_strided_slice %533 {offsets = [3, 0, 0], sizes = [1, 2, 32], strides = [1, 1, 1]} : vector<8x2x32xf32> to vector<1x2x32xf32>
    %785 = vector.shape_cast %784 : vector<1x2x32xf32> to vector<2x32xf32>
    %786 = vector.extract_strided_slice %545 {offsets = [3, 0, 0], sizes = [1, 2, 32], strides = [1, 1, 1]} : vector<8x2x32xf32> to vector<1x2x32xf32>
    %787 = vector.shape_cast %786 : vector<1x2x32xf32> to vector<2x32xf32>
    %788 = vector.extract_strided_slice %557 {offsets = [3, 0, 0], sizes = [1, 2, 32], strides = [1, 1, 1]} : vector<8x2x32xf32> to vector<1x2x32xf32>
    %789 = vector.shape_cast %788 : vector<1x2x32xf32> to vector<2x32xf32>
    %cst_311 = arith.constant dense<0.000000e+00> : vector<2x32xf32>
    %790 = tpu.matmul %755, %603, %cst_311 {dimension_numbers = #tpu.dot_dimension_numbers<[1], [0], [0], [1], [0, 0, 1, 1], [], []>} : vector<2x32xf32>, vector<32x32xf32>, vector<2x32xf32> -> vector<2x32xf32>
    %cst_312 = arith.constant dense<0.000000e+00> : vector<2x32xf32>
    %791 = tpu.matmul %755, %605, %cst_312 {dimension_numbers = #tpu.dot_dimension_numbers<[1], [0], [0], [1], [0, 0, 1, 1], [], []>} : vector<2x32xf32>, vector<32x32xf32>, vector<2x32xf32> -> vector<2x32xf32>
    %cst_313 = arith.constant dense<0.000000e+00> : vector<2x32xf32>
    %792 = tpu.matmul %755, %607, %cst_313 {dimension_numbers = #tpu.dot_dimension_numbers<[1], [0], [0], [1], [0, 0, 1, 1], [], []>} : vector<2x32xf32>, vector<32x32xf32>, vector<2x32xf32> -> vector<2x32xf32>
    %793 = arith.addf %785, %790 : vector<2x32xf32>
    %794 = arith.negf %793 : vector<2x32xf32>
    %795 = math.exp %794 : vector<2x32xf32>
    %cst_314 = arith.constant 1.000000e+00 : f32
    %796 = vector.broadcast %cst_314 : f32 to vector<2x32xf32>
    %797 = arith.addf %796, %795 : vector<2x32xf32>
    %798 = arith.divf %796, %797 : vector<2x32xf32>
    %799 = arith.addf %787, %791 : vector<2x32xf32>
    %800 = arith.negf %799 : vector<2x32xf32>
    %801 = math.exp %800 : vector<2x32xf32>
    %cst_315 = arith.constant 1.000000e+00 : f32
    %802 = vector.broadcast %cst_315 : f32 to vector<2x32xf32>
    %803 = arith.addf %802, %801 : vector<2x32xf32>
    %804 = arith.divf %802, %803 : vector<2x32xf32>
    %805 = arith.addf %792, %597 : vector<2x32xf32>
    %806 = arith.mulf %798, %805 : vector<2x32xf32>
    %807 = arith.addf %789, %806 : vector<2x32xf32>
    %808 = math.tanh %807 : vector<2x32xf32>
    %809 = arith.subf %755, %808 : vector<2x32xf32>
    %810 = arith.mulf %804, %809 : vector<2x32xf32>
    %811 = arith.addf %808, %810 : vector<2x32xf32>
    %812 = vector.extract_strided_slice %569 {offsets = [4, 0, 0], sizes = [1, 2, 32], strides = [1, 1, 1]} : vector<8x2x32xf32> to vector<1x2x32xf32>
    %813 = vector.shape_cast %812 : vector<1x2x32xf32> to vector<2x32xf32>
    %814 = vector.extract_strided_slice %581 {offsets = [4, 0, 0], sizes = [1, 2, 32], strides = [1, 1, 1]} : vector<8x2x32xf32> to vector<1x2x32xf32>
    %815 = vector.shape_cast %814 : vector<1x2x32xf32> to vector<2x32xf32>
    %816 = vector.extract_strided_slice %593 {offsets = [4, 0, 0], sizes = [1, 2, 32], strides = [1, 1, 1]} : vector<8x2x32xf32> to vector<1x2x32xf32>
    %817 = vector.shape_cast %816 : vector<1x2x32xf32> to vector<2x32xf32>
    %cst_316 = arith.constant dense<0.000000e+00> : vector<2x32xf32>
    %818 = tpu.matmul %783, %609, %cst_316 {dimension_numbers = #tpu.dot_dimension_numbers<[1], [0], [0], [1], [0, 0, 1, 1], [], []>} : vector<2x32xf32>, vector<32x32xf32>, vector<2x32xf32> -> vector<2x32xf32>
    %cst_317 = arith.constant dense<0.000000e+00> : vector<2x32xf32>
    %819 = tpu.matmul %783, %611, %cst_317 {dimension_numbers = #tpu.dot_dimension_numbers<[1], [0], [0], [1], [0, 0, 1, 1], [], []>} : vector<2x32xf32>, vector<32x32xf32>, vector<2x32xf32> -> vector<2x32xf32>
    %cst_318 = arith.constant dense<0.000000e+00> : vector<2x32xf32>
    %820 = tpu.matmul %783, %613, %cst_318 {dimension_numbers = #tpu.dot_dimension_numbers<[1], [0], [0], [1], [0, 0, 1, 1], [], []>} : vector<2x32xf32>, vector<32x32xf32>, vector<2x32xf32> -> vector<2x32xf32>
    %821 = arith.addf %813, %818 : vector<2x32xf32>
    %822 = arith.negf %821 : vector<2x32xf32>
    %823 = math.exp %822 : vector<2x32xf32>
    %cst_319 = arith.constant 1.000000e+00 : f32
    %824 = vector.broadcast %cst_319 : f32 to vector<2x32xf32>
    %825 = arith.addf %824, %823 : vector<2x32xf32>
    %826 = arith.divf %824, %825 : vector<2x32xf32>
    %827 = arith.addf %815, %819 : vector<2x32xf32>
    %828 = arith.negf %827 : vector<2x32xf32>
    %829 = math.exp %828 : vector<2x32xf32>
    %cst_320 = arith.constant 1.000000e+00 : f32
    %830 = vector.broadcast %cst_320 : f32 to vector<2x32xf32>
    %831 = arith.addf %830, %829 : vector<2x32xf32>
    %832 = arith.divf %830, %831 : vector<2x32xf32>
    %833 = arith.addf %820, %601 : vector<2x32xf32>
    %834 = arith.mulf %826, %833 : vector<2x32xf32>
    %835 = arith.addf %817, %834 : vector<2x32xf32>
    %836 = math.tanh %835 : vector<2x32xf32>
    %837 = arith.subf %783, %836 : vector<2x32xf32>
    %838 = arith.mulf %832, %837 : vector<2x32xf32>
    %839 = arith.addf %836, %838 : vector<2x32xf32>
    %840 = vector.extract_strided_slice %533 {offsets = [4, 0, 0], sizes = [1, 2, 32], strides = [1, 1, 1]} : vector<8x2x32xf32> to vector<1x2x32xf32>
    %841 = vector.shape_cast %840 : vector<1x2x32xf32> to vector<2x32xf32>
    %842 = vector.extract_strided_slice %545 {offsets = [4, 0, 0], sizes = [1, 2, 32], strides = [1, 1, 1]} : vector<8x2x32xf32> to vector<1x2x32xf32>
    %843 = vector.shape_cast %842 : vector<1x2x32xf32> to vector<2x32xf32>
    %844 = vector.extract_strided_slice %557 {offsets = [4, 0, 0], sizes = [1, 2, 32], strides = [1, 1, 1]} : vector<8x2x32xf32> to vector<1x2x32xf32>
    %845 = vector.shape_cast %844 : vector<1x2x32xf32> to vector<2x32xf32>
    %cst_321 = arith.constant dense<0.000000e+00> : vector<2x32xf32>
    %846 = tpu.matmul %811, %603, %cst_321 {dimension_numbers = #tpu.dot_dimension_numbers<[1], [0], [0], [1], [0, 0, 1, 1], [], []>} : vector<2x32xf32>, vector<32x32xf32>, vector<2x32xf32> -> vector<2x32xf32>
    %cst_322 = arith.constant dense<0.000000e+00> : vector<2x32xf32>
    %847 = tpu.matmul %811, %605, %cst_322 {dimension_numbers = #tpu.dot_dimension_numbers<[1], [0], [0], [1], [0, 0, 1, 1], [], []>} : vector<2x32xf32>, vector<32x32xf32>, vector<2x32xf32> -> vector<2x32xf32>
    %cst_323 = arith.constant dense<0.000000e+00> : vector<2x32xf32>
    %848 = tpu.matmul %811, %607, %cst_323 {dimension_numbers = #tpu.dot_dimension_numbers<[1], [0], [0], [1], [0, 0, 1, 1], [], []>} : vector<2x32xf32>, vector<32x32xf32>, vector<2x32xf32> -> vector<2x32xf32>
    %849 = arith.addf %841, %846 : vector<2x32xf32>
    %850 = arith.negf %849 : vector<2x32xf32>
    %851 = math.exp %850 : vector<2x32xf32>
    %cst_324 = arith.constant 1.000000e+00 : f32
    %852 = vector.broadcast %cst_324 : f32 to vector<2x32xf32>
    %853 = arith.addf %852, %851 : vector<2x32xf32>
    %854 = arith.divf %852, %853 : vector<2x32xf32>
    %855 = arith.addf %843, %847 : vector<2x32xf32>
    %856 = arith.negf %855 : vector<2x32xf32>
    %857 = math.exp %856 : vector<2x32xf32>
    %cst_325 = arith.constant 1.000000e+00 : f32
    %858 = vector.broadcast %cst_325 : f32 to vector<2x32xf32>
    %859 = arith.addf %858, %857 : vector<2x32xf32>
    %860 = arith.divf %858, %859 : vector<2x32xf32>
    %861 = arith.addf %848, %597 : vector<2x32xf32>
    %862 = arith.mulf %854, %861 : vector<2x32xf32>
    %863 = arith.addf %845, %862 : vector<2x32xf32>
    %864 = math.tanh %863 : vector<2x32xf32>
    %865 = arith.subf %811, %864 : vector<2x32xf32>
    %866 = arith.mulf %860, %865 : vector<2x32xf32>
    %867 = arith.addf %864, %866 : vector<2x32xf32>
    %868 = vector.extract_strided_slice %569 {offsets = [3, 0, 0], sizes = [1, 2, 32], strides = [1, 1, 1]} : vector<8x2x32xf32> to vector<1x2x32xf32>
    %869 = vector.shape_cast %868 : vector<1x2x32xf32> to vector<2x32xf32>
    %870 = vector.extract_strided_slice %581 {offsets = [3, 0, 0], sizes = [1, 2, 32], strides = [1, 1, 1]} : vector<8x2x32xf32> to vector<1x2x32xf32>
    %871 = vector.shape_cast %870 : vector<1x2x32xf32> to vector<2x32xf32>
    %872 = vector.extract_strided_slice %593 {offsets = [3, 0, 0], sizes = [1, 2, 32], strides = [1, 1, 1]} : vector<8x2x32xf32> to vector<1x2x32xf32>
    %873 = vector.shape_cast %872 : vector<1x2x32xf32> to vector<2x32xf32>
    %cst_326 = arith.constant dense<0.000000e+00> : vector<2x32xf32>
    %874 = tpu.matmul %839, %609, %cst_326 {dimension_numbers = #tpu.dot_dimension_numbers<[1], [0], [0], [1], [0, 0, 1, 1], [], []>} : vector<2x32xf32>, vector<32x32xf32>, vector<2x32xf32> -> vector<2x32xf32>
    %cst_327 = arith.constant dense<0.000000e+00> : vector<2x32xf32>
    %875 = tpu.matmul %839, %611, %cst_327 {dimension_numbers = #tpu.dot_dimension_numbers<[1], [0], [0], [1], [0, 0, 1, 1], [], []>} : vector<2x32xf32>, vector<32x32xf32>, vector<2x32xf32> -> vector<2x32xf32>
    %cst_328 = arith.constant dense<0.000000e+00> : vector<2x32xf32>
    %876 = tpu.matmul %839, %613, %cst_328 {dimension_numbers = #tpu.dot_dimension_numbers<[1], [0], [0], [1], [0, 0, 1, 1], [], []>} : vector<2x32xf32>, vector<32x32xf32>, vector<2x32xf32> -> vector<2x32xf32>
    %877 = arith.addf %869, %874 : vector<2x32xf32>
    %878 = arith.negf %877 : vector<2x32xf32>
    %879 = math.exp %878 : vector<2x32xf32>
    %cst_329 = arith.constant 1.000000e+00 : f32
    %880 = vector.broadcast %cst_329 : f32 to vector<2x32xf32>
    %881 = arith.addf %880, %879 : vector<2x32xf32>
    %882 = arith.divf %880, %881 : vector<2x32xf32>
    %883 = arith.addf %871, %875 : vector<2x32xf32>
    %884 = arith.negf %883 : vector<2x32xf32>
    %885 = math.exp %884 : vector<2x32xf32>
    %cst_330 = arith.constant 1.000000e+00 : f32
    %886 = vector.broadcast %cst_330 : f32 to vector<2x32xf32>
    %887 = arith.addf %886, %885 : vector<2x32xf32>
    %888 = arith.divf %886, %887 : vector<2x32xf32>
    %889 = arith.addf %876, %601 : vector<2x32xf32>
    %890 = arith.mulf %882, %889 : vector<2x32xf32>
    %891 = arith.addf %873, %890 : vector<2x32xf32>
    %892 = math.tanh %891 : vector<2x32xf32>
    %893 = arith.subf %839, %892 : vector<2x32xf32>
    %894 = arith.mulf %888, %893 : vector<2x32xf32>
    %895 = arith.addf %892, %894 : vector<2x32xf32>
    %896 = vector.extract_strided_slice %533 {offsets = [5, 0, 0], sizes = [1, 2, 32], strides = [1, 1, 1]} : vector<8x2x32xf32> to vector<1x2x32xf32>
    %897 = vector.shape_cast %896 : vector<1x2x32xf32> to vector<2x32xf32>
    %898 = vector.extract_strided_slice %545 {offsets = [5, 0, 0], sizes = [1, 2, 32], strides = [1, 1, 1]} : vector<8x2x32xf32> to vector<1x2x32xf32>
    %899 = vector.shape_cast %898 : vector<1x2x32xf32> to vector<2x32xf32>
    %900 = vector.extract_strided_slice %557 {offsets = [5, 0, 0], sizes = [1, 2, 32], strides = [1, 1, 1]} : vector<8x2x32xf32> to vector<1x2x32xf32>
    %901 = vector.shape_cast %900 : vector<1x2x32xf32> to vector<2x32xf32>
    %cst_331 = arith.constant dense<0.000000e+00> : vector<2x32xf32>
    %902 = tpu.matmul %867, %603, %cst_331 {dimension_numbers = #tpu.dot_dimension_numbers<[1], [0], [0], [1], [0, 0, 1, 1], [], []>} : vector<2x32xf32>, vector<32x32xf32>, vector<2x32xf32> -> vector<2x32xf32>
    %cst_332 = arith.constant dense<0.000000e+00> : vector<2x32xf32>
    %903 = tpu.matmul %867, %605, %cst_332 {dimension_numbers = #tpu.dot_dimension_numbers<[1], [0], [0], [1], [0, 0, 1, 1], [], []>} : vector<2x32xf32>, vector<32x32xf32>, vector<2x32xf32> -> vector<2x32xf32>
    %cst_333 = arith.constant dense<0.000000e+00> : vector<2x32xf32>
    %904 = tpu.matmul %867, %607, %cst_333 {dimension_numbers = #tpu.dot_dimension_numbers<[1], [0], [0], [1], [0, 0, 1, 1], [], []>} : vector<2x32xf32>, vector<32x32xf32>, vector<2x32xf32> -> vector<2x32xf32>
    %905 = arith.addf %897, %902 : vector<2x32xf32>
    %906 = arith.negf %905 : vector<2x32xf32>
    %907 = math.exp %906 : vector<2x32xf32>
    %cst_334 = arith.constant 1.000000e+00 : f32
    %908 = vector.broadcast %cst_334 : f32 to vector<2x32xf32>
    %909 = arith.addf %908, %907 : vector<2x32xf32>
    %910 = arith.divf %908, %909 : vector<2x32xf32>
    %911 = arith.addf %899, %903 : vector<2x32xf32>
    %912 = arith.negf %911 : vector<2x32xf32>
    %913 = math.exp %912 : vector<2x32xf32>
    %cst_335 = arith.constant 1.000000e+00 : f32
    %914 = vector.broadcast %cst_335 : f32 to vector<2x32xf32>
    %915 = arith.addf %914, %913 : vector<2x32xf32>
    %916 = arith.divf %914, %915 : vector<2x32xf32>
    %917 = arith.addf %904, %597 : vector<2x32xf32>
    %918 = arith.mulf %910, %917 : vector<2x32xf32>
    %919 = arith.addf %901, %918 : vector<2x32xf32>
    %920 = math.tanh %919 : vector<2x32xf32>
    %921 = arith.subf %867, %920 : vector<2x32xf32>
    %922 = arith.mulf %916, %921 : vector<2x32xf32>
    %923 = arith.addf %920, %922 : vector<2x32xf32>
    %924 = vector.extract_strided_slice %569 {offsets = [2, 0, 0], sizes = [1, 2, 32], strides = [1, 1, 1]} : vector<8x2x32xf32> to vector<1x2x32xf32>
    %925 = vector.shape_cast %924 : vector<1x2x32xf32> to vector<2x32xf32>
    %926 = vector.extract_strided_slice %581 {offsets = [2, 0, 0], sizes = [1, 2, 32], strides = [1, 1, 1]} : vector<8x2x32xf32> to vector<1x2x32xf32>
    %927 = vector.shape_cast %926 : vector<1x2x32xf32> to vector<2x32xf32>
    %928 = vector.extract_strided_slice %593 {offsets = [2, 0, 0], sizes = [1, 2, 32], strides = [1, 1, 1]} : vector<8x2x32xf32> to vector<1x2x32xf32>
    %929 = vector.shape_cast %928 : vector<1x2x32xf32> to vector<2x32xf32>
    %cst_336 = arith.constant dense<0.000000e+00> : vector<2x32xf32>
    %930 = tpu.matmul %895, %609, %cst_336 {dimension_numbers = #tpu.dot_dimension_numbers<[1], [0], [0], [1], [0, 0, 1, 1], [], []>} : vector<2x32xf32>, vector<32x32xf32>, vector<2x32xf32> -> vector<2x32xf32>
    %cst_337 = arith.constant dense<0.000000e+00> : vector<2x32xf32>
    %931 = tpu.matmul %895, %611, %cst_337 {dimension_numbers = #tpu.dot_dimension_numbers<[1], [0], [0], [1], [0, 0, 1, 1], [], []>} : vector<2x32xf32>, vector<32x32xf32>, vector<2x32xf32> -> vector<2x32xf32>
    %cst_338 = arith.constant dense<0.000000e+00> : vector<2x32xf32>
    %932 = tpu.matmul %895, %613, %cst_338 {dimension_numbers = #tpu.dot_dimension_numbers<[1], [0], [0], [1], [0, 0, 1, 1], [], []>} : vector<2x32xf32>, vector<32x32xf32>, vector<2x32xf32> -> vector<2x32xf32>
    %933 = arith.addf %925, %930 : vector<2x32xf32>
    %934 = arith.negf %933 : vector<2x32xf32>
    %935 = math.exp %934 : vector<2x32xf32>
    %cst_339 = arith.constant 1.000000e+00 : f32
    %936 = vector.broadcast %cst_339 : f32 to vector<2x32xf32>
    %937 = arith.addf %936, %935 : vector<2x32xf32>
    %938 = arith.divf %936, %937 : vector<2x32xf32>
    %939 = arith.addf %927, %931 : vector<2x32xf32>
    %940 = arith.negf %939 : vector<2x32xf32>
    %941 = math.exp %940 : vector<2x32xf32>
    %cst_340 = arith.constant 1.000000e+00 : f32
    %942 = vector.broadcast %cst_340 : f32 to vector<2x32xf32>
    %943 = arith.addf %942, %941 : vector<2x32xf32>
    %944 = arith.divf %942, %943 : vector<2x32xf32>
    %945 = arith.addf %932, %601 : vector<2x32xf32>
    %946 = arith.mulf %938, %945 : vector<2x32xf32>
    %947 = arith.addf %929, %946 : vector<2x32xf32>
    %948 = math.tanh %947 : vector<2x32xf32>
    %949 = arith.subf %895, %948 : vector<2x32xf32>
    %950 = arith.mulf %944, %949 : vector<2x32xf32>
    %951 = arith.addf %948, %950 : vector<2x32xf32>
    %952 = vector.extract_strided_slice %533 {offsets = [6, 0, 0], sizes = [1, 2, 32], strides = [1, 1, 1]} : vector<8x2x32xf32> to vector<1x2x32xf32>
    %953 = vector.shape_cast %952 : vector<1x2x32xf32> to vector<2x32xf32>
    %954 = vector.extract_strided_slice %545 {offsets = [6, 0, 0], sizes = [1, 2, 32], strides = [1, 1, 1]} : vector<8x2x32xf32> to vector<1x2x32xf32>
    %955 = vector.shape_cast %954 : vector<1x2x32xf32> to vector<2x32xf32>
    %956 = vector.extract_strided_slice %557 {offsets = [6, 0, 0], sizes = [1, 2, 32], strides = [1, 1, 1]} : vector<8x2x32xf32> to vector<1x2x32xf32>
    %957 = vector.shape_cast %956 : vector<1x2x32xf32> to vector<2x32xf32>
    %cst_341 = arith.constant dense<0.000000e+00> : vector<2x32xf32>
    %958 = tpu.matmul %923, %603, %cst_341 {dimension_numbers = #tpu.dot_dimension_numbers<[1], [0], [0], [1], [0, 0, 1, 1], [], []>} : vector<2x32xf32>, vector<32x32xf32>, vector<2x32xf32> -> vector<2x32xf32>
    %cst_342 = arith.constant dense<0.000000e+00> : vector<2x32xf32>
    %959 = tpu.matmul %923, %605, %cst_342 {dimension_numbers = #tpu.dot_dimension_numbers<[1], [0], [0], [1], [0, 0, 1, 1], [], []>} : vector<2x32xf32>, vector<32x32xf32>, vector<2x32xf32> -> vector<2x32xf32>
    %cst_343 = arith.constant dense<0.000000e+00> : vector<2x32xf32>
    %960 = tpu.matmul %923, %607, %cst_343 {dimension_numbers = #tpu.dot_dimension_numbers<[1], [0], [0], [1], [0, 0, 1, 1], [], []>} : vector<2x32xf32>, vector<32x32xf32>, vector<2x32xf32> -> vector<2x32xf32>
    %961 = arith.addf %953, %958 : vector<2x32xf32>
    %962 = arith.negf %961 : vector<2x32xf32>
    %963 = math.exp %962 : vector<2x32xf32>
    %cst_344 = arith.constant 1.000000e+00 : f32
    %964 = vector.broadcast %cst_344 : f32 to vector<2x32xf32>
    %965 = arith.addf %964, %963 : vector<2x32xf32>
    %966 = arith.divf %964, %965 : vector<2x32xf32>
    %967 = arith.addf %955, %959 : vector<2x32xf32>
    %968 = arith.negf %967 : vector<2x32xf32>
    %969 = math.exp %968 : vector<2x32xf32>
    %cst_345 = arith.constant 1.000000e+00 : f32
    %970 = vector.broadcast %cst_345 : f32 to vector<2x32xf32>
    %971 = arith.addf %970, %969 : vector<2x32xf32>
    %972 = arith.divf %970, %971 : vector<2x32xf32>
    %973 = arith.addf %960, %597 : vector<2x32xf32>
    %974 = arith.mulf %966, %973 : vector<2x32xf32>
    %975 = arith.addf %957, %974 : vector<2x32xf32>
    %976 = math.tanh %975 : vector<2x32xf32>
    %977 = arith.subf %923, %976 : vector<2x32xf32>
    %978 = arith.mulf %972, %977 : vector<2x32xf32>
    %979 = arith.addf %976, %978 : vector<2x32xf32>
    %980 = vector.extract_strided_slice %569 {offsets = [1, 0, 0], sizes = [1, 2, 32], strides = [1, 1, 1]} : vector<8x2x32xf32> to vector<1x2x32xf32>
    %981 = vector.shape_cast %980 : vector<1x2x32xf32> to vector<2x32xf32>
    %982 = vector.extract_strided_slice %581 {offsets = [1, 0, 0], sizes = [1, 2, 32], strides = [1, 1, 1]} : vector<8x2x32xf32> to vector<1x2x32xf32>
    %983 = vector.shape_cast %982 : vector<1x2x32xf32> to vector<2x32xf32>
    %984 = vector.extract_strided_slice %593 {offsets = [1, 0, 0], sizes = [1, 2, 32], strides = [1, 1, 1]} : vector<8x2x32xf32> to vector<1x2x32xf32>
    %985 = vector.shape_cast %984 : vector<1x2x32xf32> to vector<2x32xf32>
    %cst_346 = arith.constant dense<0.000000e+00> : vector<2x32xf32>
    %986 = tpu.matmul %951, %609, %cst_346 {dimension_numbers = #tpu.dot_dimension_numbers<[1], [0], [0], [1], [0, 0, 1, 1], [], []>} : vector<2x32xf32>, vector<32x32xf32>, vector<2x32xf32> -> vector<2x32xf32>
    %cst_347 = arith.constant dense<0.000000e+00> : vector<2x32xf32>
    %987 = tpu.matmul %951, %611, %cst_347 {dimension_numbers = #tpu.dot_dimension_numbers<[1], [0], [0], [1], [0, 0, 1, 1], [], []>} : vector<2x32xf32>, vector<32x32xf32>, vector<2x32xf32> -> vector<2x32xf32>
    %cst_348 = arith.constant dense<0.000000e+00> : vector<2x32xf32>
    %988 = tpu.matmul %951, %613, %cst_348 {dimension_numbers = #tpu.dot_dimension_numbers<[1], [0], [0], [1], [0, 0, 1, 1], [], []>} : vector<2x32xf32>, vector<32x32xf32>, vector<2x32xf32> -> vector<2x32xf32>
    %989 = arith.addf %981, %986 : vector<2x32xf32>
    %990 = arith.negf %989 : vector<2x32xf32>
    %991 = math.exp %990 : vector<2x32xf32>
    %cst_349 = arith.constant 1.000000e+00 : f32
    %992 = vector.broadcast %cst_349 : f32 to vector<2x32xf32>
    %993 = arith.addf %992, %991 : vector<2x32xf32>
    %994 = arith.divf %992, %993 : vector<2x32xf32>
    %995 = arith.addf %983, %987 : vector<2x32xf32>
    %996 = arith.negf %995 : vector<2x32xf32>
    %997 = math.exp %996 : vector<2x32xf32>
    %cst_350 = arith.constant 1.000000e+00 : f32
    %998 = vector.broadcast %cst_350 : f32 to vector<2x32xf32>
    %999 = arith.addf %998, %997 : vector<2x32xf32>
    %1000 = arith.divf %998, %999 : vector<2x32xf32>
    %1001 = arith.addf %988, %601 : vector<2x32xf32>
    %1002 = arith.mulf %994, %1001 : vector<2x32xf32>
    %1003 = arith.addf %985, %1002 : vector<2x32xf32>
    %1004 = math.tanh %1003 : vector<2x32xf32>
    %1005 = arith.subf %951, %1004 : vector<2x32xf32>
    %1006 = arith.mulf %1000, %1005 : vector<2x32xf32>
    %1007 = arith.addf %1004, %1006 : vector<2x32xf32>
    %1008 = vector.extract_strided_slice %533 {offsets = [7, 0, 0], sizes = [1, 2, 32], strides = [1, 1, 1]} : vector<8x2x32xf32> to vector<1x2x32xf32>
    %1009 = vector.shape_cast %1008 : vector<1x2x32xf32> to vector<2x32xf32>
    %1010 = vector.extract_strided_slice %545 {offsets = [7, 0, 0], sizes = [1, 2, 32], strides = [1, 1, 1]} : vector<8x2x32xf32> to vector<1x2x32xf32>
    %1011 = vector.shape_cast %1010 : vector<1x2x32xf32> to vector<2x32xf32>
    %1012 = vector.extract_strided_slice %557 {offsets = [7, 0, 0], sizes = [1, 2, 32], strides = [1, 1, 1]} : vector<8x2x32xf32> to vector<1x2x32xf32>
    %1013 = vector.shape_cast %1012 : vector<1x2x32xf32> to vector<2x32xf32>
    %cst_351 = arith.constant dense<0.000000e+00> : vector<2x32xf32>
    %1014 = tpu.matmul %979, %603, %cst_351 {dimension_numbers = #tpu.dot_dimension_numbers<[1], [0], [0], [1], [0, 0, 1, 1], [], []>} : vector<2x32xf32>, vector<32x32xf32>, vector<2x32xf32> -> vector<2x32xf32>
    %cst_352 = arith.constant dense<0.000000e+00> : vector<2x32xf32>
    %1015 = tpu.matmul %979, %605, %cst_352 {dimension_numbers = #tpu.dot_dimension_numbers<[1], [0], [0], [1], [0, 0, 1, 1], [], []>} : vector<2x32xf32>, vector<32x32xf32>, vector<2x32xf32> -> vector<2x32xf32>
    %cst_353 = arith.constant dense<0.000000e+00> : vector<2x32xf32>
    %1016 = tpu.matmul %979, %607, %cst_353 {dimension_numbers = #tpu.dot_dimension_numbers<[1], [0], [0], [1], [0, 0, 1, 1], [], []>} : vector<2x32xf32>, vector<32x32xf32>, vector<2x32xf32> -> vector<2x32xf32>
    %1017 = arith.addf %1009, %1014 : vector<2x32xf32>
    %1018 = arith.negf %1017 : vector<2x32xf32>
    %1019 = math.exp %1018 : vector<2x32xf32>
    %cst_354 = arith.constant 1.000000e+00 : f32
    %1020 = vector.broadcast %cst_354 : f32 to vector<2x32xf32>
    %1021 = arith.addf %1020, %1019 : vector<2x32xf32>
    %1022 = arith.divf %1020, %1021 : vector<2x32xf32>
    %1023 = arith.addf %1011, %1015 : vector<2x32xf32>
    %1024 = arith.negf %1023 : vector<2x32xf32>
    %1025 = math.exp %1024 : vector<2x32xf32>
    %cst_355 = arith.constant 1.000000e+00 : f32
    %1026 = vector.broadcast %cst_355 : f32 to vector<2x32xf32>
    %1027 = arith.addf %1026, %1025 : vector<2x32xf32>
    %1028 = arith.divf %1026, %1027 : vector<2x32xf32>
    %1029 = arith.addf %1016, %597 : vector<2x32xf32>
    %1030 = arith.mulf %1022, %1029 : vector<2x32xf32>
    %1031 = arith.addf %1013, %1030 : vector<2x32xf32>
    %1032 = math.tanh %1031 : vector<2x32xf32>
    %1033 = arith.subf %979, %1032 : vector<2x32xf32>
    %1034 = arith.mulf %1028, %1033 : vector<2x32xf32>
    %1035 = arith.addf %1032, %1034 : vector<2x32xf32>
    %1036 = vector.extract_strided_slice %569 {offsets = [0, 0, 0], sizes = [1, 2, 32], strides = [1, 1, 1]} : vector<8x2x32xf32> to vector<1x2x32xf32>
    %1037 = vector.shape_cast %1036 : vector<1x2x32xf32> to vector<2x32xf32>
    %1038 = vector.extract_strided_slice %581 {offsets = [0, 0, 0], sizes = [1, 2, 32], strides = [1, 1, 1]} : vector<8x2x32xf32> to vector<1x2x32xf32>
    %1039 = vector.shape_cast %1038 : vector<1x2x32xf32> to vector<2x32xf32>
    %1040 = vector.extract_strided_slice %593 {offsets = [0, 0, 0], sizes = [1, 2, 32], strides = [1, 1, 1]} : vector<8x2x32xf32> to vector<1x2x32xf32>
    %1041 = vector.shape_cast %1040 : vector<1x2x32xf32> to vector<2x32xf32>
    %cst_356 = arith.constant dense<0.000000e+00> : vector<2x32xf32>
    %1042 = tpu.matmul %1007, %609, %cst_356 {dimension_numbers = #tpu.dot_dimension_numbers<[1], [0], [0], [1], [0, 0, 1, 1], [], []>} : vector<2x32xf32>, vector<32x32xf32>, vector<2x32xf32> -> vector<2x32xf32>
    %cst_357 = arith.constant dense<0.000000e+00> : vector<2x32xf32>
    %1043 = tpu.matmul %1007, %611, %cst_357 {dimension_numbers = #tpu.dot_dimension_numbers<[1], [0], [0], [1], [0, 0, 1, 1], [], []>} : vector<2x32xf32>, vector<32x32xf32>, vector<2x32xf32> -> vector<2x32xf32>
    %cst_358 = arith.constant dense<0.000000e+00> : vector<2x32xf32>
    %1044 = tpu.matmul %1007, %613, %cst_358 {dimension_numbers = #tpu.dot_dimension_numbers<[1], [0], [0], [1], [0, 0, 1, 1], [], []>} : vector<2x32xf32>, vector<32x32xf32>, vector<2x32xf32> -> vector<2x32xf32>
    %1045 = arith.addf %1037, %1042 : vector<2x32xf32>
    %1046 = arith.negf %1045 : vector<2x32xf32>
    %1047 = math.exp %1046 : vector<2x32xf32>
    %cst_359 = arith.constant 1.000000e+00 : f32
    %1048 = vector.broadcast %cst_359 : f32 to vector<2x32xf32>
    %1049 = arith.addf %1048, %1047 : vector<2x32xf32>
    %1050 = arith.divf %1048, %1049 : vector<2x32xf32>
    %1051 = arith.addf %1039, %1043 : vector<2x32xf32>
    %1052 = arith.negf %1051 : vector<2x32xf32>
    %1053 = math.exp %1052 : vector<2x32xf32>
    %cst_360 = arith.constant 1.000000e+00 : f32
    %1054 = vector.broadcast %cst_360 : f32 to vector<2x32xf32>
    %1055 = arith.addf %1054, %1053 : vector<2x32xf32>
    %1056 = arith.divf %1054, %1055 : vector<2x32xf32>
    %1057 = arith.addf %1044, %601 : vector<2x32xf32>
    %1058 = arith.mulf %1050, %1057 : vector<2x32xf32>
    %1059 = arith.addf %1041, %1058 : vector<2x32xf32>
    %1060 = math.tanh %1059 : vector<2x32xf32>
    %1061 = arith.subf %1007, %1060 : vector<2x32xf32>
    %1062 = arith.mulf %1056, %1061 : vector<2x32xf32>
    %1063 = arith.addf %1060, %1062 : vector<2x32xf32>
    %1064 = tpu.concatenate %491, %519, %1035, %1063 in 1 : vector<2x32xf32>, vector<2x32xf32>, vector<2x32xf32>, vector<2x32xf32> -> vector<2x128xf32>
    %c0_361 = arith.constant 0 : index
    %c0_362 = arith.constant 0 : index
    %1065 = vector.load %arg10[%c0_361, %c0_362] : memref<128x32xf32, #tpu.memory_space<vmem>>, vector<128x32xf32>
    %cst_363 = arith.constant dense<0.000000e+00> : vector<2x32xf32>
    %1066 = tpu.matmul %1064, %1065, %cst_363 {dimension_numbers = #tpu.dot_dimension_numbers<[1], [0], [0], [1], [0, 0, 1, 1], [], []>} : vector<2x128xf32>, vector<128x32xf32>, vector<2x32xf32> -> vector<2x32xf32>
    %c0_364 = arith.constant 0 : index
    %c0_365 = arith.constant 0 : index
    %1067 = vector.load %arg11[%c0_364, %c0_365] : memref<1x32xf32, #tpu.memory_space<vmem>>, vector<1x32xf32>
    %1068 = vector.broadcast %1067 : vector<1x32xf32> to vector<2x32xf32>
    %1069 = arith.addf %1066, %1068 : vector<2x32xf32>
    %1070 = math.tanh %1069 : vector<2x32xf32>
    %c0_366 = arith.constant 0 : index
    %c0_367 = arith.constant 0 : index
    %1071 = vector.load %arg12[%c0_366, %c0_367] : memref<1x32xf32, #tpu.memory_space<vmem>>, vector<1x32xf32>
    %1072 = vector.broadcast %1071 : vector<1x32xf32> to vector<2x32xf32>
    %1073 = arith.mulf %1070, %1072 : vector<2x32xf32>
    %cst_368 = arith.constant dense<0.000000e+00> : vector<2xf32>
    %1074 = vector.multi_reduction <add>, %1073, %cst_368 [1] : vector<2x32xf32> to vector<2xf32>
    %1075 = vector.shape_cast %1074 : vector<2xf32> to vector<2x1xf32>
    %c0_369 = arith.constant 0 : index
    %c0_370 = arith.constant 0 : index
    %1076 = vector.load %arg13[%c0_369, %c0_370] : memref<1x1xf32, #tpu.memory_space<vmem>>, vector<1x1xf32>
    %1077 = vector.broadcast %1076 : vector<1x1xf32> to vector<2x1xf32>
    %1078 = arith.addf %1075, %1077 : vector<2x1xf32>
    %1079 = arith.negf %1078 : vector<2x1xf32>
    %1080 = math.exp %1079 : vector<2x1xf32>
    %cst_371 = arith.constant 1.000000e+00 : f32
    %1081 = vector.broadcast %cst_371 : f32 to vector<2x1xf32>
    %1082 = arith.addf %1081, %1080 : vector<2x1xf32>
    %1083 = arith.divf %1081, %1082 : vector<2x1xf32>
    %1084 = vector.shape_cast %1083 : vector<2x1xf32> to vector<2x1xf32>
    %1085 = vector.broadcast %1084 : vector<2x1xf32> to vector<2x128xf32>
    %c0_372 = arith.constant 0 : index
    %c0_373 = arith.constant 0 : index
    %1086 = vector.load %arg14[%c0_372, %c0_373] : memref<2x128xf32, #tpu.memory_space<vmem>>, vector<2x128xf32>
    tpu.vector_store %arg14[%c0_372, %c0_373], %1085 {strides = array<i32>} : memref<2x128xf32, #tpu.memory_space<vmem>>, vector<2x128xf32>,
    return
  }
}

</mosaic_0001>

<bundles_post_ra>
// kernel: tpu_custom_call.1
= control target key start
LH: loop header
LB: loop body
LE: loop exit
PB: predicated region body
PF: predicated region fallthrough
CT: control target
= control target key end

     0   :  { %s15292_s0 = inlined_call_operand.vmem [shape: f32[8,2,32], index: 0, kind: input, shape index: {}]   ;;  %s15293_s1 = inlined_call_operand.hbm [shape: f32[2,3,32,32], index: 1, kind: input, shape index: {}]   ;;  %s15294_s2 = inlined_call_operand.hbm [shape: f32[2,3,32,32], index: 2, kind: input, shape index: {}]   ;;  %s15295_s3 = inlined_call_operand.vmem [shape: f32[2,3,1,32], index: 3, kind: input, shape index: {}]   ;;  %s15296_s4 = inlined_call_operand.vmem [shape: f32[2,1,32], index: 4, kind: input, shape index: {}]   ;;  %s15297_s5 = inlined_call_operand.hbm [shape: f32[2,3,32,32], index: 5, kind: input, shape index: {}]   ;;  %s15298_s6 = inlined_call_operand.hbm [shape: f32[2,3,32,32], index: 6, kind: input, shape index: {}]   ;;  %s15299_s7 = inlined_call_operand.hbm [shape: f32[2,3,32,32], index: 7, kind: input, shape index: {}]   ;;  %s15300_s8 = inlined_call_operand.vmem [shape: f32[2,3,1,32], index: 8, kind: input, shape index: {}]   ;;  %s15301_s9 = inlined_call_operand.vmem [shape: f32[2,1,32], index: 9, kind: input, shape index: {}]   ;;  %s15302_s10 = inlined_call_operand.vmem [shape: f32[128,32], index: 10, kind: input, shape index: {}]   ;;  %s15303_s11 = inlined_call_operand.vmem [shape: f32[1,32], index: 11, kind: input, shape index: {}]   ;;  %s15304_s12 = inlined_call_operand.vmem [shape: f32[1,32], index: 12, kind: input, shape index: {}]   ;;  %s15305_s13 = inlined_call_operand.<no memory space> [shape: f32[1,1], index: 13, kind: input, shape index: {}]   ;;  %s15306_s14 = inlined_call_operand.hbm [shape: f32[2,128], index: 14, kind: output, shape index: {}]  }
   0x1   :  { %v19_v0 = vstv %s15305_s13 }
   0x2   :  { %20 = vst [vmem:[#allocation2] sm:$0x1] %v19_v0 }
   0x3   :  { %21 = vsyncpa [#allocation4], 0 }
   0x4   :  { %22 = vsyncpa [#allocation7], 0 }
   0x5   :  { %23 = vsyncpa [#allocation10], 0 }
   0x6   :  { %24 = vsyncpa [#allocation5], 0  ;;  %s13453_s15 = smov [#allocation6]   ;;  %s13454_s17 = smov [#allocation9]  }
   0x7   :  { %s44_s16 = sshll.u32 %s13453_s15, 4  ;;  %s72_s18 = sshll.u32 %s13454_s17, 4  ;;  %s45_s16 = int_to_ptr.vmem [resolvable:$true] %s44_s16  ;;  %s13547_s18 = int_to_ptr.vmem [resolvable:$true] %s72_s18 }
   0x8   :  { %s13313_s21 = scalar_lea.hbm %s15294_s2, 3072 }
   0x9   :  { %p13314_p0 = scmp.ne.s32.totalorder %s15294_s2, %s13313_s21  ;;  %p13317_p1 = scmp.lt.u32.totalorder %s13313_s21, %s15294_s2 }
   0xb   :  { %p13319_p2 = pnand %p13317_p1, %p13314_p0 }
   0xd   :  { %13322 = shalt.err (!%p13319_p2)
}
   0xe   :  { %s13323_s25 = scalar_lea.vmem %s45_s16, 3072  ;;  %p13328_p4 = scmp.lt.s32.totalorder %s45_s16, %s45_s16 }
   0xf   :  { %p13324_p3 = scmp.ne.s32.totalorder %s45_s16, %s13323_s25  ;;  %p13329_p5 = scmp.lt.s32.totalorder %s13323_s25, %s13323_s25 }
  0x11   :  { %p13330_p6 = por %p13329_p5, %p13328_p4 }
  0x13   :  { %p13331_p7 = pnand %p13330_p6, %p13324_p3 }
  0x15   :  { %13334 = shalt.err (!%p13331_p7)
}
  0x16   :  { %s13455_s26 = smov 128   ;;  %s13456_s27 = smov 8  }
  0x17   :  { %50 = dma.hbm_to_vmem [thread:$0]  %s15294_s2, 3072, %s45_s16, [#allocation7], %s13455_s26, %s13455_s26, %s13456_s27  }
  0x18   :  { %s13335_s17 = scalar_lea.hbm %s15298_s6, 3072 }
  0x19   :  { %p13336_p8 = scmp.ne.s32.totalorder %s15298_s6, %s13335_s17  ;;  %p13339_p9 = scmp.lt.u32.totalorder %s13335_s17, %s15298_s6 }
  0x1b   :  { %p13341_p10 = pnand %p13339_p9, %p13336_p8 }
  0x1d   :  { %13344 = shalt.err (!%p13341_p10)
}
  0x1e   :  { %s13345_s23 = scalar_lea.vmem %s13547_s18, 3072  ;;  %p13350_p12 = scmp.lt.s32.totalorder %s13547_s18, %s13547_s18 }
  0x1f   :  { %p13346_p11 = scmp.ne.s32.totalorder %s13547_s18, %s13345_s23  ;;  %p13351_p13 = scmp.lt.s32.totalorder %s13345_s23, %s13345_s23 }
  0x21   :  { %p13352_p0 = por %p13351_p13, %p13350_p12 }
  0x23   :  { %p13353_p1 = pnand %p13352_p0, %p13346_p11 }
  0x25   :  { %13356 = shalt.err (!%p13353_p1)
}
  0x26   :  { %78 = dma.hbm_to_vmem [thread:$0]  %s15298_s6, 3072, %s13547_s18, [#allocation10], %s13455_s26, %s13455_s26, %s13456_s27  }
  0x27   :  { %s13457_s13 = smov [#allocation3]   ;;  %s13458_s25 = smov [#allocation8]  }
  0x28   :  { %s32_s24 = sshll.u32 %s13457_s13, 4  ;;  %s60_s28 = sshll.u32 %s13458_s25, 4  ;;  %s33_s24 = int_to_ptr.vmem [resolvable:$true] %s32_s24  ;;  %s13584_s28 = int_to_ptr.vmem [resolvable:$true] %s60_s28 }
  0x29   :  { %s13357_s15 = scalar_lea.hbm %s15293_s1, 3072 }
  0x2a   :  { %p13358_p2 = scmp.ne.s32.totalorder %s15293_s1, %s13357_s15  ;;  %p13361_p3 = scmp.lt.u32.totalorder %s13357_s15, %s15293_s1 }
  0x2c   :  { %p13363_p4 = pnand %p13361_p3, %p13358_p2 }
  0x2e   :  { %13366 = shalt.err (!%p13363_p4)
}
  0x2f   :  { %s13367_s6 = scalar_lea.vmem %s33_s24, 3072  ;;  %p13372_p6 = scmp.lt.s32.totalorder %s33_s24, %s33_s24 }
  0x30   :  { %p13368_p5 = scmp.ne.s32.totalorder %s33_s24, %s13367_s6  ;;  %p13373_p7 = scmp.lt.s32.totalorder %s13367_s6, %s13367_s6 }
  0x32   :  { %p13374_p8 = por %p13373_p7, %p13372_p6 }
  0x34   :  { %p13375_p9 = pnand %p13374_p8, %p13368_p5 }
  0x36   :  { %13378 = shalt.err (!%p13375_p9)
}
  0x37   :  { %38 = dma.hbm_to_vmem [thread:$0]  %s15293_s1, 3072, %s33_s24, [#allocation4], %s13455_s26, %s13455_s26, %s13456_s27  }
  0x38   :  { %s13379_s16 = scalar_lea.hbm %s15297_s5, 3072 }
  0x39   :  { %p13380_p10 = scmp.ne.s32.totalorder %s15297_s5, %s13379_s16  ;;  %p13383_p11 = scmp.lt.u32.totalorder %s13379_s16, %s15297_s5 }
  0x3b   :  { %p13385_p12 = pnand %p13383_p11, %p13380_p10 }
  0x3d   :  { %13388 = shalt.err (!%p13385_p12)
}
  0x3e   :  { %s13389_s15 = scalar_lea.vmem %s13584_s28, 3072  ;;  %p13394_p0 = scmp.lt.s32.totalorder %s13584_s28, %s13584_s28 }
  0x3f   :  { %p13390_p13 = scmp.ne.s32.totalorder %s13584_s28, %s13389_s15  ;;  %p13395_p1 = scmp.lt.s32.totalorder %s13389_s15, %s13389_s15 }
  0x41   :  { %p13396_p2 = por %p13395_p1, %p13394_p0 }
  0x43   :  { %p13397_p3 = pnand %p13396_p2, %p13390_p13 }
  0x45   :  { %13400 = shalt.err (!%p13397_p3)
}
  0x46   :  { %66 = dma.hbm_to_vmem [thread:$0]  %s15297_s5, 3072, %s13584_s28, [#allocation7], %s13455_s26, %s13455_s26, %s13456_s27  }
  0x47   :  { %s13459_s17 = smov [#allocation11]   ;;  %s13401_s6 = scalar_lea.hbm %s15299_s7, 3072 }
  0x48   :  { %s84_s19 = sshll.u32 %s13459_s17, 4  ;;  %p13402_p4 = scmp.ne.s32.totalorder %s15299_s7, %s13401_s6  ;;  %s85_s19 = int_to_ptr.vmem [resolvable:$true] %s84_s19 }
  0x49   :  { %p13405_p5 = scmp.lt.u32.totalorder %s13401_s6, %s15299_s7 }
  0x4b   :  { %p13407_p6 = pnand %p13405_p5, %p13402_p4 }
  0x4d   :  { %13410 = shalt.err (!%p13407_p6)
}
  0x4e   :  { %s13411_s16 = scalar_lea.vmem %s85_s19, 3072  ;;  %p13416_p8 = scmp.lt.s32.totalorder %s85_s19, %s85_s19 }
  0x4f   :  { %p13412_p7 = scmp.ne.s32.totalorder %s85_s19, %s13411_s16  ;;  %p13417_p9 = scmp.lt.s32.totalorder %s13411_s16, %s13411_s16 }
  0x51   :  { %p13418_p10 = por %p13417_p9, %p13416_p8 }
  0x53   :  { %p13419_p11 = pnand %p13418_p10, %p13412_p7 }
  0x55   :  { %13422 = shalt.err (!%p13419_p11)
}
  0x56   :  { %90 = dma.hbm_to_vmem [thread:$0]  %s15299_s7, 3072, %s85_s19, [#allocation10], %s13455_s26, %s13455_s26, %s13456_s27  }
  0x57   :  { %13445 = dma.done.wait [#allocation4], 3072  }
  0x58   :  { %13446 = vsyncadd [#allocation4], 4294964224 }
  0x59   :  { %13447 = dma.done.wait [#allocation7], 6144  }
  0x5a   :  { %13448 = vsyncadd [#allocation7], 4294961152 }
  0x5b   :  { %13449 = dma.done.wait [#allocation10], 6144  }
  0x5c   :  { %13450 = vsyncadd [#allocation10], 4294961152  ;;  %v13460_v1 = vmov 1983009808   ;;  %v150_v3 = vlaneseq  ;;  %v126_v6 = vld [vmem:[#allocation3] sm:$0xff]  ;;  %v127_v7 = vld [vmem:[#allocation3 + $0x8] sm:$0xff] }
  0x5d   :  { %v148_v2 = vunpack.c.l.s4 %v13460_v1  ;;  %v700_v8 = vld [vmem:[#allocation3 + $0x80] sm:$0xff]  ;;  %v12210_v9 = vpack.c.bf16 %v127_v7, %v126_v6  ;;  %v701_v10 = vld [vmem:[#allocation3 + $0x88] sm:$0xff]  ;;  %v128_v11 = vld [vmem:[#allocation3 + $0x10] sm:$0xff]  ;;  %vm179_vm0 = vcmask 261120   ;;  %v13461_v48 = vmov 0.0|0.0   ;;  %s13465_s19 = smov 64  }
  0x5e   :  { %v151_v5 = vshrl.u32 %v150_v3, 7  ;;  %v129_v12 = vld [vmem:[#allocation3 + $0x18] sm:$0xff]  ;;  %v12242_v13 = vpack.c.bf16 %v701_v10, %v700_v8  ;;  %v702_v15 = vld [vmem:[#allocation3 + $0x90] sm:$0xff]  ;;  %v119_v20 = vld [vmem:[%s15292_s0 + $0x2] sm:$0x3]  ;;  %vm13462_vm1 = vmmov 0  }
  0x5f   :  { %v149_v4 = vunpack.c.0.s8 %v148_v2  ;;  %v12214_v14 = vpack.c.bf16 %v129_v12, %v128_v11  ;;  %v703_v16 = vld [vmem:[#allocation3 + $0x98] sm:$0xff]  ;;  %12211 = vmatprep.subr.bf16.mxu1 %v12210_v9  ;;  %v120_v21 = vld [vmem:[%s15292_s0 + $0x4] sm:$0x3]  ;;  %v121_v22 = vld [vmem:[%s15292_s0 + $0x6] sm:$0x3]  ;;  %v13463_v54 = vmov 0.0  }
  0x60   :  { %v118_v17 = vld [vmem:[%s15292_s0] sm:$0x3]  ;;  %v12246_v19 = vpack.c.bf16 %v703_v16, %v702_v15  ;;  %12243 = vmatprep.subr.bf16.mxu0 %v12242_v13  ;;  %12213 = vmatpush3.bf16.msra.mxu1 %v12210_v9  ;;  %v146_v24 = vcombine.low %v120_v21, %v121_v22  ;;  %v122_v25 = vld [vmem:[%s15292_s0 + $0x8] sm:$0x3]  ;;  %v123_v26 = vld [vmem:[%s15292_s0 + $0xa] sm:$0x3] }
  0x61   :  { %v13639_v18 = vsub.s32 %v149_v4, %v151_v5  ;;  %v145_v23 = vcombine.low %v118_v17, %v119_v20  ;;  %v124_v27 = vld [vmem:[%s15292_s0 + $0xc] sm:$0x3]  ;;  %12245 = vmatpush3.bf16.msra.mxu0 %v12242_v13  ;;  %12215 = vmatprep.subr.bf16.mxu1 %v12214_v14  ;;  %v125_v28 = vld [vmem:[%s15292_s0 + $0xe] sm:$0x3]  ;;  %v162_v29 = vcombine.low %v122_v25, %v123_v26  ;;  %v304_v30 = vld [vmem:[#allocation3 + $0x20] sm:$0xff]  ;;  %vm4789_vm2 = vcmask 1041408  }
  0x62   :  { %v305_v31 = vld [vmem:[#allocation3 + $0x28] sm:$0xff]  ;;  %12247 = vmatprep.subr.bf16.mxu0 %v12246_v19  ;;  %v163_v34 = vcombine.low %v124_v27, %v125_v28  ;;  %v978_v36 = vld [vmem:[#allocation6] sm:$0xff]  ;;  %v306_v39 = vld [vmem:[#allocation3 + $0x30] sm:$0xff]  ;;  %vm4791_vm3 = vcmask 1043456   ;;  %vm4793_vm4 = vcmask 1045504   ;;  %vm9953_vm5 = vcmask 523264  }
  0x63   :  { %v153_v32 = vrot.slane %v145_v23, %v13639_v18  ;;  %v160_v33 = vrot.slane %v146_v24, %v13639_v18  ;;  %v12218_v35 = vpack.c.bf16 %v305_v31, %v304_v30  ;;  %v979_v37 = vld [vmem:[#allocation6 + $0x8] sm:$0xff]  ;;  %v170_v38 = vrot.slane %v162_v29, %v13639_v18  ;;  %v307_v40 = vld [vmem:[#allocation3 + $0x38] sm:$0xff]  ;;  %v980_v46 = vld [vmem:[#allocation6 + $0x10] sm:$0xff] }
  0x64   :  { %12217 = vmatpush3.bf16.msra.mxu1 %v12214_v14  ;;  %v177_v42 = vrot.slane %v163_v34, %v13639_v18  ;;  %v13668_v43 = vpack.c.bf16 %v979_v37, %v978_v36  ;;  %v12222_v45 = vpack.c.bf16 %v307_v40, %v306_v39  ;;  %v981_v47 = vld [vmem:[#allocation6 + $0x18] sm:$0xff]  ;;  %v436_v49 = vld [vmem:[#allocation3 + $0x40] sm:$0xff]  ;;  %v437_v50 = vld [vmem:[#allocation3 + $0x48] sm:$0xff]  ;;  %vm9955_vm6 = vcmask 785408  }
  0x65   :  { %v13665_v41 = vcombine.low %v153_v32, %v160_v33  ;;  %12249 = vmatpush3.bf16.msra.mxu0 %v12246_v19  ;;  %12219 = vmatprep.subr.bf16.mxu1 %v12218_v35  ;;  %v13682_v51 = vpack.c.bf16 %v981_v47, %v980_v46  ;;  %v12226_v52 = vpack.c.bf16 %v437_v50, %v436_v49  ;;  %v438_v53 = vld [vmem:[#allocation3 + $0x50] sm:$0xff]  ;;  %v439_v55 = vld [vmem:[#allocation3 + $0x58] sm:$0xff]  ;;  %v988_v56 = vld [vmem:[#allocation6 + $0x40] sm:$0xff]  ;;  %vm10059_vm7 = vcmask 254976  }
  0x66   :  { %v13672_v44 = vcombine.low %v170_v38, %v177_v42  ;;  %12258 = vmatprep.subr.bf16.mxu0 %v13461_v48  ;;  %v989_v57 = vld [vmem:[#allocation6 + $0x48] sm:$0xff]  ;;  %v12230_v58 = vpack.c.bf16 %v439_v55, %v438_v53  ;;  %v568_v59 = vld [vmem:[#allocation3 + $0x60] sm:$0xff]  ;;  %v990_v62 = vld [vmem:[#allocation6 + $0x50] sm:$0xff] }
  0x67   :  { %10929 = vmatprep.mubr.msk.f32.mxu1 %vm179_vm0, %v13665_v41  ;;  %10973 = vmatprep.mubr.msk.f32.mxu0 %vm179_vm0, %v13665_v41  ;;  %v13691_v60 = vpack.c.bf16 %v989_v57, %v988_v56  ;;  %v569_v61 = vld [vmem:[#allocation3 + $0x68] sm:$0xff]  ;;  %v991_v63 = vld [vmem:[#allocation6 + $0x58] sm:$0xff]  ;;  %v570_v2 = vld [vmem:[#allocation3 + $0x70] sm:$0xff] }
  0x68   :  { %10930 = vmatmul.mubr.msk.f32.vlgmr.msra.gmra.mrb[0].mxu1 %vm179_vm0, %v13672_v44  ;;  %10974 = vmatmul.mubr.msk.f32.vlgmr.msra.gmra.mrb[0].mxu0 %vm179_vm0, %v13672_v44  ;;  %v12234_v0 = vpack.c.bf16 %v569_v61, %v568_v59  ;;  %v13699_v1 = vpack.c.bf16 %v991_v63, %v990_v62  ;;  %v571_v3 = vld [vmem:[#allocation3 + $0x78] sm:$0xff]  ;;  %v998_v4 = vld [vmem:[#allocation6 + $0x80] sm:$0xff]  ;;  %v999_v5 = vld [vmem:[#allocation6 + $0x88] sm:$0xff] }
  0x69   :  { %12221 = vmatpush3.bf16.msra.mxu1 %v12218_v35  ;;  %12260 = vmatpush3.bf16.msra.mxu0 %v13668_v43  ;;  %v12238_v6 = vpack.c.bf16 %v571_v3, %v570_v2  ;;  %v832_v7 = vld [vmem:[#allocation3 + $0xa0] sm:$0xff]  ;;  %v833_v8 = vld [vmem:[#allocation3 + $0xa8] sm:$0xff]  ;;  %v13706_v9 = vpack.c.bf16 %v999_v5, %v998_v4  ;;  %v1000_v10 = vld [vmem:[#allocation6 + $0x90] sm:$0xff] }
  0x6a   :  { %12223 = vmatprep.subr.bf16.mxu1 %v12222_v45  ;;  %12261 = vmatprep.subr.bf16.mxu0 %v13461_v48  ;;  %v1001_v11 = vld [vmem:[#allocation6 + $0x98] sm:$0xff]  ;;  %v12250_v12 = vpack.c.bf16 %v833_v8, %v832_v7  ;;  %v834_v13 = vld [vmem:[#allocation3 + $0xb0] sm:$0xff]  ;;  %v983_v17 = vld [vmem:[#allocation6 + $0x20] sm:$0xff] }
  0x6b   :  { %10940 = vmatprep.mubr.msk.f32.mxu1 %vm179_vm0, %v13665_v41  ;;  %10995 = vmatprep.mubr.msk.f32.mxu0 %vm13462_vm1, %v13463_v54  ;;  %v835_v14 = vld [vmem:[#allocation3 + $0xb8] sm:$0xff]  ;;  %v13714_v15 = vpack.c.bf16 %v1001_v11, %v1000_v10  ;;  %v984_v19 = vld [vmem:[#allocation6 + $0x28] sm:$0xff]  ;;  %v985_v21 = vld [vmem:[#allocation6 + $0x30] sm:$0xff] }
  0x6c   :  { %v12254_v16 = vpack.c.bf16 %v835_v14, %v834_v13  ;;  %v13730_v20 = vpack.c.bf16 %v984_v19, %v983_v17  ;;  %v986_v22 = vld [vmem:[#allocation6 + $0x38] sm:$0xff]  ;;  %v993_v24 = vld [vmem:[#allocation6 + $0x60] sm:$0xff]  ;;  %v994_v25 = vld [vmem:[#allocation6 + $0x68] sm:$0xff] }
  0x6d   :  { %12225 = vmatpush3.bf16.msra.mxu1 %v12222_v45  ;;  %12263 = vmatpush3.bf16.msra.mxu0 %v13682_v51  ;;  %v13738_v23 = vpack.c.bf16 %v986_v22, %v985_v21  ;;  %v13744_v26 = vpack.c.bf16 %v994_v25, %v993_v24  ;;  %v995_v27 = vld [vmem:[#allocation6 + $0x70] sm:$0xff]  ;;  %v996_v28 = vld [vmem:[#allocation6 + $0x78] sm:$0xff]  ;;  %v1003_v30 = vld [vmem:[#allocation6 + $0xa0] sm:$0xff] }
  0x6e   :  { %12227 = vmatprep.subr.bf16.mxu1 %v12226_v52  ;;  %12270 = vmatprep.subr.bf16.mxu0 %v13461_v48  ;;  %v13749_v29 = vpack.c.bf16 %v996_v28, %v995_v27  ;;  %v1004_v31 = vld [vmem:[#allocation6 + $0xa8] sm:$0xff]  ;;  %v1005_v33 = vld [vmem:[#allocation6 + $0xb0] sm:$0xff]  ;;  %v1006_v34 = vld [vmem:[#allocation6 + $0xb8] sm:$0xff] }
  0x6f   :  { %v13755_v32 = vpack.c.bf16 %v1004_v31, %v1003_v30  ;;  %v13760_v35 = vpack.c.bf16 %v1006_v34, %v1005_v33  ;;  %v10100_v36 = vld [vmem:[%s15295_s3] ss:$0 sm:$0xff]  ;;  %v10116_v37 = vld [vmem:[%s15295_s3 + $0x4] ss:$0 sm:$0xff]  ;;  %v10104_v46 = vld [vmem:[%s15295_s3 + $0x1] ss:$0 sm:$0xff] }
  0x70   :  { %10941 = vmatmul.mubr.msk.f32.vlgmr.msra.gmra.mrb[2].mxu1 %vm179_vm0, %v13672_v44  ;;  %10996 = vmatmul.mubr.f32.vlgmr.msra.gmra.mrb[2].mxu0 %v13463_v54  ;;  %v10112_v3 = vld [vmem:[%s15295_s3 + $0x3] ss:$0 sm:$0xff]  ;;  %v13809_v11 = vld [vmem:[%s15296_s4] ss:$0 sm:$0xff] }
  0x71   :  { %12229 = vmatpush3.bf16.msra.mxu1 %v12226_v52  ;;  %10951 = vmatprep.mubr.msk.f32.mxu1 %vm179_vm0, %v13665_v41 }
  0x72   :  { %12231 = vmatprep.subr.bf16.mxu1 %v12230_v58  ;;  %12272 = vmatpush3.bf16.msra.mxu0 %v13691_v60 }
  0x73   :  { %12273 = vmatprep.subr.bf16.mxu0 %v13461_v48  ;;  %11017 = vmatprep.mubr.msk.f32.mxu0 %vm13462_vm1, %v13463_v54 }
  0x75   :  { %12233 = vmatpush3.bf16.msra.mxu1 %v12230_v58  ;;  %v10108_v58 = vld [vmem:[%s15295_s3 + $0x2] ss:$0 sm:$0xff] }
  0x76   :  { %12235 = vmatprep.subr.bf16.mxu1 %v12234_v0  ;;  %12275 = vmatpush3.bf16.msra.mxu0 %v13699_v1 }
  0x77   :  { %12282 = vmatprep.subr.bf16.mxu0 %v13461_v48 }
  0x78   :  { %10952 = vmatmul.mubr.msk.f32.vlgmr.msra.gmra.mrb[4].mxu1 %vm179_vm0, %v13672_v44 }
  0x79   :  { %12237 = vmatpush3.bf16.msra.mxu1 %v12234_v0  ;;  %10962 = vmatprep.mubr.msk.f32.mxu1 %vm179_vm0, %v13665_v41 }
  0x7a   :  { %12239 = vmatprep.subr.bf16.mxu1 %v12238_v6  ;;  %11018 = vmatmul.mubr.f32.vlgmr.msra.gmra.mrb[4].mxu0 %v13463_v54 }
  0x7b   :  { %12284 = vmatpush3.bf16.msra.mxu0 %v13706_v9  ;;  %11039 = vmatprep.mubr.msk.f32.mxu0 %vm13462_vm1, %v13463_v54 }
  0x7c   :  { %12285 = vmatprep.subr.bf16.mxu0 %v13461_v48 }
  0x7d   :  { %12241 = vmatpush3.bf16.msra.mxu1 %v12238_v6 }
  0x7e   :  { %12251 = vmatprep.subr.bf16.mxu1 %v12250_v12 }
  0x7f   :  { %12287 = vmatpush3.bf16.msra.mxu0 %v13714_v15 }
  0x80   :  { %10963 = vmatmul.mubr.msk.f32.vlgmr.msra.gmra.mrb[6].mxu1 %vm179_vm0, %v13672_v44  ;;  %12294 = vmatprep.subr.bf16.mxu0 %v13461_v48 }
  0x81   :  { %12253 = vmatpush3.bf16.msra.mxu1 %v12250_v12  ;;  %10984 = vmatprep.mubr.msk.f32.mxu1 %vm179_vm0, %v13665_v41  ;;  %v10120_v12 = vld [vmem:[%s15295_s3 + $0x5] ss:$0 sm:$0xff] }
  0x82   :  { %12255 = vmatprep.subr.bf16.mxu1 %v12254_v16  ;;  %11040 = vmatmul.mubr.f32.vlgmr.msra.gmra.mrb[6].mxu0 %v13463_v54 }
  0x83   :  { %12296 = vmatpush3.bf16.msra.mxu0 %v13668_v43  ;;  %11061 = vmatprep.mubr.msk.f32.mxu0 %vm13462_vm1, %v13463_v54 }
  0x84   :  { %12297 = vmatprep.subr.bf16.mxu0 %v13461_v48 }
  0x85   :  { %12257 = vmatpush3.bf16.msra.mxu1 %v12254_v16 }
  0x86   :  { %12264 = vmatprep.subr.bf16.mxu1 %v13461_v48 }
  0x87   :  { %12299 = vmatpush3.bf16.msra.mxu0 %v13682_v51 }
  0x88   :  { %10985 = vmatmul.mubr.msk.f32.vlgmr.msra.gmra.mrb[8].mxu1 %vm179_vm0, %v13672_v44  ;;  %12306 = vmatprep.subr.bf16.mxu0 %v13461_v48 }
  0x89   :  { %12266 = vmatpush3.bf16.msra.mxu1 %v13730_v20  ;;  %11006 = vmatprep.mubr.msk.f32.mxu1 %vm13462_vm1, %v13463_v54 }
  0x8a   :  { %12267 = vmatprep.subr.bf16.mxu1 %v13461_v48 }
  0x8d   :  { %12269 = vmatpush3.bf16.msra.mxu1 %v13738_v23 }
  0x8e   :  { %12276 = vmatprep.subr.bf16.mxu1 %v13461_v48 }
  0x90   :  { %11007 = vmatmul.mubr.f32.vlgmr.msra.gmra.mrb[10].mxu1 %v13463_v54 }
  0x91   :  { %12278 = vmatpush3.bf16.msra.mxu1 %v13744_v26  ;;  %11028 = vmatprep.mubr.msk.f32.mxu1 %vm13462_vm1, %v13463_v54 }
  0x92   :  { %12279 = vmatprep.subr.bf16.mxu1 %v13461_v48 }
  0x95   :  { %12281 = vmatpush3.bf16.msra.mxu1 %v13749_v29 }
  0x96   :  { %12288 = vmatprep.subr.bf16.mxu1 %v13461_v48 }
  0x98   :  { %11029 = vmatmul.mubr.f32.vlgmr.msra.gmra.mrb[12].mxu1 %v13463_v54 }
  0x99   :  { %12290 = vmatpush3.bf16.msra.mxu1 %v13755_v32  ;;  %11050 = vmatprep.mubr.msk.f32.mxu1 %vm13462_vm1, %v13463_v54 }
  0x9a   :  { %12291 = vmatprep.subr.bf16.mxu1 %v13461_v48 }
  0x9d   :  { %12293 = vmatpush3.bf16.msra.mxu1 %v13760_v35 }
  0x9e   :  { %12300 = vmatprep.subr.bf16.mxu1 %v13461_v48 }
  0xa0   :  { %11051 = vmatmul.mubr.f32.vlgmr.msra.gmra.mrb[14].mxu1 %v13463_v54 }
  0xa1   :  { %12302 = vmatpush3.bf16.msra.mxu1 %v13730_v20  ;;  %11072 = vmatprep.mubr.msk.f32.mxu1 %vm13462_vm1, %v13463_v54 }
  0xa2   :  { %12303 = vmatprep.subr.bf16.mxu1 %v13461_v48 }
  0xa5   :  { %12305 = vmatpush3.bf16.msra.mxu1 %v13738_v23 }
  0xa6   :  { %12312 = vmatprep.subr.bf16.mxu1 %v13461_v48 }
 0x13b   :  { %v10931_v38 = vpop.f32.mrb[0].mxu1  ;;  %v10975_v39 = vpop.f32.mrb[0].mxu0 }
 0x13c   :  { %v13780_v40 = vadd.f32 %v10931_v38, %v10100_v36  ;;  %v250_v41 = vpop.f32.mrb[1].mxu1  ;;  %v778_v42 = vpop.f32.mrb[1].mxu0  ;;  %v13834_v34 = vadd.f32 %v10975_v39, %v10116_v37 }
 0x13d   :  { %v13782_v44 = vadd.f32 %v10116_v37, %v778_v42  ;;  %v13784_v45 = vadd.f32 %v10100_v36, %v250_v41 }
 0x13f   :  { %v13791_v47 = vrot.slane %v13784_v45, %v13639_v18 }
 0x143   :  { %v10942_v49 = vpop.f32.mrb[2].mxu1  ;;  %v1076_v50 = vpop.f32.mrb[2].mxu0 }
 0x144   :  { %v13793_v52 = vadd.f32 %v10942_v49, %v10104_v46  ;;  %v1150_v53 = vadd.f32 %v1076_v50, %v13791_v47  ;;  %v382_v55 = vpop.f32.mrb[3].mxu1  ;;  %v10997_v56 = vpop.f32.mrb[3].mxu0 }
 0x145   :  { %v13819_v21 = vadd.f32 %v10104_v46, %v382_v55  ;;  %v806_v46 = vcombine.high %v13834_v34, %v13834_v34 }
 0x146   :  { %v10126_v57 = vmul.f32 -1.442695, %v1150_v53 }
 0x147   :  { %v13832_v31 = vrot.slane %v13819_v21, %v13639_v18  ;;  %v13845_v53 = vrot.slane %v806_v46, %v13639_v18 }
 0x148   :  { %12983 = vpow2.f32 %v10126_v57 }
 0x149   :  { %v822_v56 = vcombine.high %v13845_v53, %v13845_v53 }
 0x14b   :  { %v10953_v59 = vpop.f32.mrb[4].mxu1 }
 0x14c   :  { %v13799_v61 = vadd.f32 %v10953_v59, %v10108_v58  ;;  %v514_v62 = vpop.f32.mrb[5].mxu1 }
 0x14d   :  { %v1230_v63 = vpop.f32.mrb[4].mxu0  ;;  %v13814_v14 = vadd.f32 %v10108_v58, %v514_v62 }
 0x14e   :  { %v11019_v0 = vpop.f32.mrb[5].mxu0  ;;  %v1231_v17 = vadd.f32 %v13809_v11, %v1230_v63 }
 0x14f   :  { %v13825_v25 = vrot.slane %v13814_v14, %v13639_v18 }
 0x152   :  { %v12984_v2 = vpop.eup %12983 }
 0x153   :  { %v1154_v4 = vadd.f32 1.0, %v12984_v2  ;;  %v10964_v5 = vpop.f32.mrb[6].mxu1 }
 0x154   :  { %v646_v6 = vpop.f32.mrb[7].mxu1  ;;  %v13821_v22 = vadd.f32 %v10964_v5, %v10112_v3 }
 0x155   :  { %12985 = vrcp.f32 %v1154_v4  ;;  %v13804_v7 = vadd.f32 %v10112_v3, %v646_v6  ;;  %v1376_v8 = vpop.f32.mrb[6].mxu0 }
 0x156   :  { %v11041_v10 = vpop.f32.mrb[7].mxu0  ;;  %v674_v28 = vcombine.high %v13821_v22, %v13821_v22  ;;  %v1387_v62 = vadd.f32 %v1376_v8, %v822_v56  ;;  %v13856_v8 = vld [vmem:[%s15296_s4 + $0x1] ss:$0 sm:$0xff] }
 0x158   :  { %v13838_v42 = vrot.slane %v674_v28, %v13639_v18  ;;  %v10129_v0 = vmul.f32 -1.442695, %v1387_v62 }
 0x15a   :  { %v690_v49 = vcombine.high %v13838_v42, %v13838_v42 }
 0x15b   :  { %v10986_v13 = vpop.f32.mrb[8].mxu1 }
 0x15c   :  { %v910_v16 = vpop.f32.mrb[9].mxu1  ;;  %v13849_v5 = vadd.f32 %v10986_v13, %v10120_v12 }
 0x15d   :  { %v13817_v19 = vadd.f32 %v10120_v12, %v910_v16 }
 0x15e   :  { %v938_v16 = vcombine.high %v13849_v5, %v13849_v5 }
 0x15f   :  { %v12986_v24 = vpop.eup %12985 }
 0x160   :  { %v1234_v27 = vmul.f32 %v12986_v24, %v1231_v17 }
 0x162   :  { %v1235_v30 = vadd.f32 %v1234_v27, %v13825_v25  ;;  %v13861_v27 = vrot.slane %v938_v16, %v13639_v18 }
 0x163   :  { %v1146_v33 = vpop.f32.mrb[10].mxu1 }
 0x164   :  { %v1157_v36 = vadd.f32 %v1146_v33, %v13832_v31  ;;  %v11008_v38 = vpop.f32.mrb[11].mxu1 }
 0x166   :  { %v10127_v41 = vmul.f32 -1.442695, %v1157_v36 }
 0x168   :  { %12987 = vpow2.f32 %v10127_v41 }
 0x16b   :  { %v1306_v50 = vpop.f32.mrb[12].mxu1 }
 0x16c   :  { %v1380_v37 = vadd.f32 %v1306_v50, %v690_v49  ;;  %v11030_v39 = vpop.f32.mrb[13].mxu1 }
 0x16d   :  { %v276_v39 = vcombine.high %v13791_v47, %v13791_v47 }
 0x16e   :  { %v10128_v55 = vmul.f32 -1.442695, %v1380_v37 }
 0x170   :  { %12989 = vpow2.f32 %v10128_v55  ;;  %v408_v55 = vcombine.high %v13832_v31, %v13832_v31 }
 0x171   :  { %12991 = vtanh.f32 %v1235_v30  ;;  %v954_v30 = vcombine.high %v13861_v27, %v13861_v27 }
 0x172   :  { %v12988_v57 = vpop.eup %12987 }
 0x173   :  { %v1161_v58 = vadd.f32 1.0, %v12988_v57  ;;  %v1460_v59 = vpop.f32.mrb[14].mxu1 }
 0x174   :  { %v11052_v63 = vpop.f32.mrb[15].mxu1  ;;  %v1461_v12 = vadd.f32 %v13856_v8, %v1460_v59 }
 0x175   :  { %12993 = vrcp.f32 %v1161_v58 }
 0x176   :  { %12995 = vpow2.f32 %v10129_v0 }
 0x17a   :  { %v12990_v2 = vpop.eup %12989 }
 0x17b   :  { %v12992_v3 = vpop.eup %12991  ;;  %v1384_v4 = vadd.f32 1.0, %v12990_v2 }
 0x17c   :  { %v1237_v6 = vsub.f32 0.0, %v12992_v3 }
 0x17d   :  { %12997 = vrcp.f32 %v1384_v4 }
 0x17f   :  { %v12994_v10 = vpop.eup %12993 }
 0x180   :  { %v1238_v17 = vmul.f32 %v12994_v10, %v1237_v6  ;;  %v12996_v13 = vpop.eup %12995 }
 0x181   :  { %v1391_v36 = vadd.f32 1.0, %v12996_v13 }
 0x182   :  { %v13858_v24 = vadd.f32 %v12992_v3, %v1238_v17 }
 0x184   :  { %11062 = vmatmul.mubr.msk.f32.vlgmr.msra.gmra.mrb[8].mxu0 %vm179_vm0, %v13858_v24  ;;  %11073 = vmatmul.mubr.msk.f32.vlgmr.msra.gmra.mrb[16].mxu1 %vm179_vm0, %v13858_v24 }
 0x185   :  { %12308 = vmatpush3.bf16.msra.mxu0 %v13691_v60  ;;  %11083 = vmatprep.mubr.msk.f32.mxu0 %vm13462_vm1, %v13463_v54 }
 0x186   :  { %12309 = vmatprep.subr.bf16.mxu0 %v13461_v48  ;;  %12314 = vmatpush3.bf16.msra.mxu1 %v13744_v26 }
 0x187   :  { %v12998_v28 = vpop.eup %12997  ;;  %12315 = vmatprep.subr.bf16.mxu1 %v13461_v48  ;;  %11094 = vmatprep.mubr.msk.f32.mxu1 %vm13462_vm1, %v13463_v54 }
 0x188   :  { %v1464_v33 = vmul.f32 %v12998_v28, %v1461_v12 }
 0x189   :  { %12311 = vmatpush3.bf16.msra.mxu0 %v13699_v1 }
 0x18a   :  { %v1465_v38 = vadd.f32 %v1464_v33, %v954_v30  ;;  %12318 = vmatprep.subr.bf16.mxu0 %v13461_v48  ;;  %12317 = vmatpush3.bf16.msra.mxu1 %v13749_v29 }
 0x18b   :  { %12324 = vmatprep.subr.bf16.mxu1 %v13461_v48 }
 0x18c   :  { %12999 = vtanh.f32 %v1465_v38  ;;  %11084 = vmatmul.mubr.msk.f32.vlgmr.msra.gmra.mrb[10].mxu0 %vm179_vm0, %v13858_v24 }
 0x18d   :  { %12320 = vmatpush3.bf16.msra.mxu0 %v13706_v9  ;;  %11105 = vmatprep.mubr.msk.f32.mxu0 %vm13462_vm1, %v13463_v54  ;;  %13001 = vrcp.f32 %v1391_v36  ;;  %v540_v36 = vcombine.high %v13825_v25, %v13825_v25 }
 0x18e   :  { %12321 = vmatprep.subr.bf16.mxu0 %v13461_v48 }
 0x191   :  { %12323 = vmatpush3.bf16.msra.mxu0 %v13714_v15 }
 0x192   :  { %12330 = vmatprep.subr.bf16.mxu0 %v13461_v48 }
 0x196   :  { %v13000_v41 = vpop.eup %12999 }
 0x197   :  { %v1467_v46 = vsub.f32 0.0, %v13000_v41  ;;  %v13002_v49 = vpop.eup %13001 }
 0x199   :  { %v1468_v50 = vmul.f32 %v13002_v49, %v1467_v46 }
 0x19b   :  { %v13890_v37 = vadd.f32 %v13000_v41, %v1468_v50 }
 0x19d   :  { %11095 = vmatmul.mubr.msk.f32.vlgmr.msra.gmra.mrb[18].mxu1 %vm179_vm0, %v13890_v37  ;;  %11106 = vmatmul.mubr.msk.f32.vlgmr.msra.gmra.mrb[12].mxu0 %vm179_vm0, %v13890_v37 }
 0x19e   :  { %12326 = vmatpush3.bf16.msra.mxu1 %v13755_v32  ;;  %11116 = vmatprep.mubr.msk.f32.mxu1 %vm13462_vm1, %v13463_v54 }
 0x19f   :  { %12327 = vmatprep.subr.bf16.mxu1 %v13461_v48  ;;  %12332 = vmatpush3.bf16.msra.mxu0 %v13668_v43 }
 0x1a0   :  { %12333 = vmatprep.subr.bf16.mxu0 %v13461_v48  ;;  %11127 = vmatprep.mubr.msk.f32.mxu0 %vm13462_vm1, %v13463_v54 }
 0x1a2   :  { %12329 = vmatpush3.bf16.msra.mxu1 %v13760_v35 }
 0x1a3   :  { %12336 = vmatprep.subr.bf16.mxu1 %v13461_v48  ;;  %12335 = vmatpush3.bf16.msra.mxu0 %v13682_v51 }
 0x1a4   :  { %12342 = vmatprep.subr.bf16.mxu0 %v13461_v48 }
 0x1a5   :  { %11117 = vmatmul.mubr.msk.f32.vlgmr.msra.gmra.mrb[20].mxu1 %vm179_vm0, %v13890_v37 }
 0x1a6   :  { %12338 = vmatpush3.bf16.msra.mxu1 %v13730_v20  ;;  %11138 = vmatprep.mubr.msk.f32.mxu1 %vm13462_vm1, %v13463_v54 }
 0x1a7   :  { %12339 = vmatprep.subr.bf16.mxu1 %v13461_v48 }
 0x1aa   :  { %12341 = vmatpush3.bf16.msra.mxu1 %v13738_v23 }
 0x1ab   :  { %12348 = vmatprep.subr.bf16.mxu1 %v13461_v48 }
 0x257   :  { %v1539_v56 = vpop.f32.mrb[8].mxu0  ;;  %v1609_v57 = vpop.f32.mrb[16].mxu1 }
 0x258   :  { %v1613_v58 = vadd.f32 %v1539_v56, %v276_v39  ;;  %v1620_v59 = vadd.f32 %v1609_v57, %v408_v55  ;;  %v11063_v62 = vpop.f32.mrb[9].mxu0  ;;  %v11074_v63 = vpop.f32.mrb[17].mxu1 }
 0x25a   :  { %v10132_v0 = vmul.f32 -1.442695, %v1613_v58  ;;  %v10133_v4 = vmul.f32 -1.442695, %v1620_v59 }
 0x25c   :  { %13003 = vpow2.f32 %v10132_v0 }
 0x25d   :  { %13005 = vpow2.f32 %v10133_v4 }
 0x25f   :  { %v1693_v2 = vpop.f32.mrb[10].mxu0 }
 0x260   :  { %v11085_v3 = vpop.f32.mrb[11].mxu0  ;;  %v1694_v28 = vadd.f32 %v13809_v11, %v1693_v2 }
 0x266   :  { %v13004_v6 = vpop.eup %13003 }
 0x267   :  { %v1617_v10 = vadd.f32 1.0, %v13004_v6  ;;  %v13006_v13 = vpop.eup %13005 }
 0x268   :  { %v1624_v41 = vadd.f32 1.0, %v13006_v13 }
 0x269   :  { %13007 = vrcp.f32 %v1617_v10 }
 0x270   :  { %v1772_v16 = vpop.f32.mrb[18].mxu1  ;;  %v1842_v47 = vpop.f32.mrb[12].mxu0 }
 0x271   :  { %v1846_v17 = vadd.f32 %v1772_v16, %v13838_v42  ;;  %v11096_v31 = vpop.f32.mrb[19].mxu1  ;;  %v11107_v12 = vpop.f32.mrb[13].mxu0  ;;  %v1853_v50 = vadd.f32 %v1842_v47, %v13845_v53 }
 0x273   :  { %v13008_v30 = vpop.eup %13007  ;;  %v10137_v33 = vmul.f32 -1.442695, %v1846_v17  ;;  %v10138_v42 = vmul.f32 -1.442695, %v1853_v50  ;;  %v261_v17 = vcombine.high %v13784_v45, %v13784_v45 }
 0x274   :  { %v1697_v38 = vmul.f32 %v13008_v30, %v1694_v28 }
 0x275   :  { %13009 = vpow2.f32 %v10137_v33  ;;  %v13984_v31 = vrot.slane %v261_v17, %v13639_v18 }
 0x276   :  { %v1698_v46 = vadd.f32 %v1697_v38, %v540_v36  ;;  %v393_v36 = vcombine.high %v13819_v21, %v13819_v21 }
 0x278   :  { %13011 = vtanh.f32 %v1698_v46  ;;  %v1926_v49 = vpop.f32.mrb[20].mxu1 }
 0x279   :  { %v11118_v39 = vpop.f32.mrb[21].mxu1  ;;  %13013 = vrcp.f32 %v1624_v41  ;;  %v1927_v63 = vadd.f32 %v13856_v8, %v1926_v49  ;;  %v13990_v41 = vrot.slane %v393_v36, %v13639_v18 }
 0x27a   :  { %13015 = vpow2.f32 %v10138_v42 }
 0x27f   :  { %v13010_v55 = vpop.eup %13009 }
 0x280   :  { %v1850_v56 = vadd.f32 1.0, %v13010_v55  ;;  %v13995_v55 = vrot.slane %v13821_v22, %v13639_v18 }
 0x282   :  { %v13012_v57 = vpop.eup %13011  ;;  %13017 = vrcp.f32 %v1850_v56  ;;  %v689_v21 = vcombine.high %v13995_v55, %v13995_v55  ;;  %v525_v56 = vcombine.high %v13814_v14, %v13814_v14 }
 0x283   :  { %v1700_v58 = vsub.f32 %v13858_v24, %v13012_v57  ;;  %v13014_v59 = vpop.eup %13013 }
 0x284   :  { %v13016_v53 = vpop.eup %13015 }
 0x285   :  { %v1701_v25 = vmul.f32 %v13014_v59, %v1700_v58  ;;  %v1857_v3 = vadd.f32 1.0, %v13016_v53 }
 0x287   :  { %v13926_v62 = vadd.f32 %v13012_v57, %v1701_v25 }
 0x289   :  { %11128 = vmatmul.mubr.msk.f32.vlgmr.msra.gmra.mrb[14].mxu0 %vm179_vm0, %v13926_v62  ;;  %11139 = vmatmul.mubr.msk.f32.vlgmr.msra.gmra.mrb[22].mxu1 %vm179_vm0, %v13926_v62 }
 0x28a   :  { %12344 = vmatpush3.bf16.msra.mxu0 %v13691_v60  ;;  %11149 = vmatprep.mubr.msk.f32.mxu0 %vm13462_vm1, %v13463_v54 }
 0x28b   :  { %12345 = vmatprep.subr.bf16.mxu0 %v13461_v48  ;;  %12350 = vmatpush3.bf16.msra.mxu1 %v13744_v26 }
 0x28c   :  { %v13018_v0 = vpop.eup %13017  ;;  %12351 = vmatprep.subr.bf16.mxu1 %v13461_v48  ;;  %11160 = vmatprep.mubr.msk.f32.mxu1 %vm13462_vm1, %v13463_v54 }
 0x28d   :  { %v1930_v2 = vmul.f32 %v13018_v0, %v1927_v63 }
 0x28e   :  { %12347 = vmatpush3.bf16.msra.mxu0 %v13699_v1 }
 0x28f   :  { %v1931_v4 = vadd.f32 %v1930_v2, %v13861_v27  ;;  %12354 = vmatprep.subr.bf16.mxu0 %v13461_v48  ;;  %12353 = vmatpush3.bf16.msra.mxu1 %v13749_v29 }
 0x290   :  { %12360 = vmatprep.subr.bf16.mxu1 %v13461_v48 }
 0x291   :  { %13019 = vtanh.f32 %v1931_v4  ;;  %11150 = vmatmul.mubr.msk.f32.vlgmr.msra.gmra.mrb[16].mxu0 %vm179_vm0, %v13926_v62  ;;  %v14007_v4 = vrot.slane %v525_v56, %v13639_v18 }
 0x292   :  { %12356 = vmatpush3.bf16.msra.mxu0 %v13706_v9  ;;  %11171 = vmatprep.mubr.msk.f32.mxu0 %vm13462_vm1, %v13463_v54  ;;  %13021 = vrcp.f32 %v1857_v3  ;;  %v14004_v3 = vrot.slane %v13834_v34, %v13639_v18 }
 0x293   :  { %12357 = vmatprep.subr.bf16.mxu0 %v13461_v48 }
 0x296   :  { %12359 = vmatpush3.bf16.msra.mxu0 %v13714_v15 }
 0x297   :  { %12366 = vmatprep.subr.bf16.mxu0 %v13461_v48 }
 0x29b   :  { %v13020_v27 = vpop.eup %13019 }
 0x29c   :  { %v1933_v6 = vsub.f32 %v13890_v37, %v13020_v27  ;;  %v13022_v10 = vpop.eup %13021 }
 0x29e   :  { %v1934_v16 = vmul.f32 %v13022_v10, %v1933_v6  ;;  %v821_v10 = vcombine.high %v14004_v3, %v14004_v3 }
 0x2a0   :  { %v13955_v47 = vadd.f32 %v13020_v27, %v1934_v16 }
 0x2a2   :  { %11161 = vmatmul.mubr.msk.f32.vlgmr.msra.gmra.mrb[24].mxu1 %vm179_vm0, %v13955_v47  ;;  %11172 = vmatmul.mubr.msk.f32.vlgmr.msra.gmra.mrb[18].mxu0 %vm179_vm0, %v13955_v47 }
 0x2a3   :  { %12362 = vmatpush3.bf16.msra.mxu1 %v13755_v32  ;;  %11182 = vmatprep.mubr.msk.f32.mxu1 %vm13462_vm1, %v13463_v54 }
 0x2a4   :  { %12363 = vmatprep.subr.bf16.mxu1 %v13461_v48  ;;  %12368 = vmatpush3.bf16.msra.mxu0 %v13668_v43 }
 0x2a5   :  { %12369 = vmatprep.subr.bf16.mxu0 %v13461_v48  ;;  %11193 = vmatprep.mubr.msk.f32.mxu0 %vm13462_vm1, %v13463_v54 }
 0x2a7   :  { %12365 = vmatpush3.bf16.msra.mxu1 %v13760_v35 }
 0x2a8   :  { %12372 = vmatprep.subr.bf16.mxu1 %v13461_v48  ;;  %12371 = vmatpush3.bf16.msra.mxu0 %v13682_v51 }
 0x2a9   :  { %12378 = vmatprep.subr.bf16.mxu0 %v13461_v48 }
 0x2aa   :  { %11183 = vmatmul.mubr.msk.f32.vlgmr.msra.gmra.mrb[26].mxu1 %vm179_vm0, %v13955_v47 }
 0x2ab   :  { %12374 = vmatpush3.bf16.msra.mxu1 %v13730_v20  ;;  %11204 = vmatprep.mubr.msk.f32.mxu1 %vm13462_vm1, %v13463_v54 }
 0x2ac   :  { %12375 = vmatprep.subr.bf16.mxu1 %v13461_v48 }
 0x2af   :  { %12377 = vmatpush3.bf16.msra.mxu1 %v13738_v23 }
 0x2b0   :  { %12384 = vmatprep.subr.bf16.mxu1 %v13461_v48 }
 0x35c   :  { %v2005_v12 = vpop.f32.mrb[14].mxu0  ;;  %v2075_v13 = vpop.f32.mrb[22].mxu1 }
 0x35d   :  { %v2079_v28 = vadd.f32 %v2005_v12, %v13984_v31  ;;  %v11129_v30 = vpop.f32.mrb[15].mxu0  ;;  %v11140_v33 = vpop.f32.mrb[23].mxu1  ;;  %v2086_v45 = vadd.f32 %v2075_v13, %v13990_v41 }
 0x35f   :  { %v10142_v38 = vmul.f32 -1.442695, %v2079_v28  ;;  %v10143_v50 = vmul.f32 -1.442695, %v2086_v45  ;;  %v14017_v45 = vrot.slane %v13849_v5, %v13639_v18 }
 0x361   :  { %13023 = vpow2.f32 %v10142_v38 }
 0x362   :  { %13025 = vpow2.f32 %v10143_v50 }
 0x364   :  { %v2159_v46 = vpop.f32.mrb[16].mxu0 }
 0x365   :  { %v11151_v49 = vpop.f32.mrb[17].mxu0  ;;  %v2160_v0 = vadd.f32 %v13809_v11, %v2159_v46 }
 0x36b   :  { %v13024_v39 = vpop.eup %13023 }
 0x36c   :  { %v2083_v42 = vadd.f32 1.0, %v13024_v39  ;;  %v13026_v63 = vpop.eup %13025  ;;  %v953_v39 = vcombine.high %v14017_v45, %v14017_v45 }
 0x36d   :  { %v2090_v14 = vadd.f32 1.0, %v13026_v63  ;;  %v277_v63 = vcombine.high %v13984_v31, %v13984_v31 }
 0x36e   :  { %13027 = vrcp.f32 %v2083_v42 }
 0x375   :  { %v2238_v57 = vpop.f32.mrb[24].mxu1  ;;  %v2308_v58 = vpop.f32.mrb[18].mxu0 }
 0x376   :  { %v2312_v59 = vadd.f32 %v2238_v57, %v689_v21  ;;  %v11162_v25 = vpop.f32.mrb[25].mxu1  ;;  %v11173_v53 = vpop.f32.mrb[19].mxu0  ;;  %v2319_v17 = vadd.f32 %v2308_v58, %v821_v10  ;;  %v409_v10 = vcombine.high %v13990_v41, %v13990_v41  ;;  %v541_v41 = vcombine.high %v14007_v4, %v14007_v4 }
 0x378   :  { %v13028_v2 = vpop.eup %13027  ;;  %v10147_v22 = vmul.f32 -1.442695, %v2312_v59  ;;  %v10148_v13 = vmul.f32 -1.442695, %v2319_v17 }
 0x379   :  { %v2163_v27 = vmul.f32 %v13028_v2, %v2160_v0 }
 0x37a   :  { %13029 = vpow2.f32 %v10147_v22 }
 0x37b   :  { %v2164_v6 = vadd.f32 %v2163_v27, %v14007_v4 }
 0x37d   :  { %13031 = vtanh.f32 %v2164_v6  ;;  %v2392_v16 = vpop.f32.mrb[26].mxu1 }
 0x37e   :  { %v11184_v12 = vpop.f32.mrb[27].mxu1  ;;  %13033 = vrcp.f32 %v2090_v14  ;;  %v2393_v50 = vadd.f32 %v13856_v8, %v2392_v16 }
 0x37f   :  { %13035 = vpow2.f32 %v10148_v13 }
 0x384   :  { %v13030_v34 = vpop.eup %13029 }
 0x385   :  { %v2316_v28 = vadd.f32 1.0, %v13030_v34 }
 0x387   :  { %v13032_v30 = vpop.eup %13031  ;;  %13037 = vrcp.f32 %v2316_v28 }
 0x388   :  { %v2166_v33 = vsub.f32 %v13926_v62, %v13032_v30  ;;  %v13034_v36 = vpop.eup %13033 }
 0x389   :  { %v13036_v49 = vpop.eup %13035 }
 0x38a   :  { %v2167_v38 = vmul.f32 %v13034_v36, %v2166_v33  ;;  %v2323_v21 = vadd.f32 1.0, %v13036_v49 }
 0x38c   :  { %v14013_v46 = vadd.f32 %v13032_v30, %v2167_v38 }
 0x38e   :  { %11194 = vmatmul.mubr.msk.f32.vlgmr.msra.gmra.mrb[20].mxu0 %vm179_vm0, %v14013_v46  ;;  %11205 = vmatmul.mubr.msk.f32.vlgmr.msra.gmra.mrb[28].mxu1 %vm179_vm0, %v14013_v46 }
 0x38f   :  { %12380 = vmatpush3.bf16.msra.mxu0 %v13691_v60  ;;  %11215 = vmatprep.mubr.msk.f32.mxu0 %vm13462_vm1, %v13463_v54 }
 0x390   :  { %12381 = vmatprep.subr.bf16.mxu0 %v13461_v48  ;;  %12386 = vmatpush3.bf16.msra.mxu1 %v13744_v26 }
 0x391   :  { %v13038_v5 = vpop.eup %13037  ;;  %12387 = vmatprep.subr.bf16.mxu1 %v13461_v48  ;;  %11226 = vmatprep.mubr.msk.f32.mxu1 %vm13462_vm1, %v13463_v54 }
 0x392   :  { %v2396_v42 = vmul.f32 %v13038_v5, %v2393_v50 }
 0x393   :  { %12383 = vmatpush3.bf16.msra.mxu0 %v13699_v1 }
 0x394   :  { %v2397_v56 = vadd.f32 %v2396_v42, %v953_v39  ;;  %12390 = vmatprep.subr.bf16.mxu0 %v13461_v48  ;;  %12389 = vmatpush3.bf16.msra.mxu1 %v13749_v29 }
 0x395   :  { %12396 = vmatprep.subr.bf16.mxu1 %v13461_v48 }
 0x396   :  { %13039 = vtanh.f32 %v2397_v56  ;;  %11216 = vmatmul.mubr.msk.f32.vlgmr.msra.gmra.mrb[22].mxu0 %vm179_vm0, %v14013_v46 }
 0x397   :  { %12392 = vmatpush3.bf16.msra.mxu0 %v13706_v9  ;;  %11237 = vmatprep.mubr.msk.f32.mxu0 %vm13462_vm1, %v13463_v54  ;;  %13041 = vrcp.f32 %v2323_v21 }
 0x398   :  { %12393 = vmatprep.subr.bf16.mxu0 %v13461_v48 }
 0x39b   :  { %12395 = vmatpush3.bf16.msra.mxu0 %v13714_v15 }
 0x39c   :  { %12402 = vmatprep.subr.bf16.mxu0 %v13461_v48 }
 0x3a0   :  { %v13040_v57 = vpop.eup %13039 }
 0x3a1   :  { %v2399_v58 = vsub.f32 %v13955_v47, %v13040_v57  ;;  %v13042_v59 = vpop.eup %13041 }
 0x3a3   :  { %v2400_v25 = vmul.f32 %v13042_v59, %v2399_v58 }
 0x3a5   :  { %v14047_v53 = vadd.f32 %v13040_v57, %v2400_v25 }
 0x3a7   :  { %11227 = vmatmul.mubr.msk.f32.vlgmr.msra.gmra.mrb[30].mxu1 %vm179_vm0, %v14047_v53  ;;  %11238 = vmatmul.mubr.msk.f32.vlgmr.msra.gmra.mrb[24].mxu0 %vm179_vm0, %v14047_v53 }
 0x3a8   :  { %12398 = vmatpush3.bf16.msra.mxu1 %v13755_v32  ;;  %11248 = vmatprep.mubr.msk.f32.mxu1 %vm13462_vm1, %v13463_v54 }
 0x3a9   :  { %12399 = vmatprep.subr.bf16.mxu1 %v13461_v48  ;;  %12404 = vmatpush3.bf16.msra.mxu0 %v13668_v43 }
 0x3aa   :  { %12405 = vmatprep.subr.bf16.mxu0 %v13461_v48  ;;  %11259 = vmatprep.mubr.msk.f32.mxu0 %vm13462_vm1, %v13463_v54 }
 0x3ac   :  { %12401 = vmatpush3.bf16.msra.mxu1 %v13760_v35 }
 0x3ad   :  { %12408 = vmatprep.subr.bf16.mxu1 %v13461_v48  ;;  %12407 = vmatpush3.bf16.msra.mxu0 %v13682_v51 }
 0x3ae   :  { %12414 = vmatprep.subr.bf16.mxu0 %v13461_v48 }
 0x3af   :  { %11249 = vmatmul.mubr.msk.f32.vlgmr.msra.gmra.mrb[32].mxu1 %vm179_vm0, %v14047_v53 }
 0x3b0   :  { %12410 = vmatpush3.bf16.msra.mxu1 %v13730_v20  ;;  %11270 = vmatprep.mubr.msk.f32.mxu1 %vm13462_vm1, %v13463_v54 }
 0x3b1   :  { %12411 = vmatprep.subr.bf16.mxu1 %v13461_v48 }
 0x3b4   :  { %12413 = vmatpush3.bf16.msra.mxu1 %v13738_v23 }
 0x3b5   :  { %12420 = vmatprep.subr.bf16.mxu1 %v13461_v48 }
 0x461   :  { %v2471_v0 = vpop.f32.mrb[20].mxu0  ;;  %v2541_v2 = vpop.f32.mrb[28].mxu1 }
 0x462   :  { %v2545_v22 = vadd.f32 %v2471_v0, %v277_v63  ;;  %v11195_v27 = vpop.f32.mrb[21].mxu0  ;;  %v11206_v14 = vpop.f32.mrb[29].mxu1  ;;  %v2552_v17 = vadd.f32 %v2541_v2, %v409_v10 }
 0x464   :  { %v10152_v6 = vmul.f32 -1.442695, %v2545_v22  ;;  %v10153_v13 = vmul.f32 -1.442695, %v2552_v17 }
 0x466   :  { %13043 = vpow2.f32 %v10152_v6 }
 0x467   :  { %13045 = vpow2.f32 %v10153_v13 }
 0x469   :  { %v2625_v16 = vpop.f32.mrb[22].mxu0 }
 0x46a   :  { %v11217_v12 = vpop.f32.mrb[23].mxu0  ;;  %v2626_v50 = vadd.f32 %v13809_v11, %v2625_v16 }
 0x470   :  { %v13044_v34 = vpop.eup %13043 }
 0x471   :  { %v2549_v28 = vadd.f32 1.0, %v13044_v34  ;;  %v13046_v49 = vpop.eup %13045 }
 0x472   :  { %v2556_v21 = vadd.f32 1.0, %v13046_v49 }
 0x473   :  { %13047 = vrcp.f32 %v2549_v28 }
 0x47a   :  { %v2704_v30 = vpop.f32.mrb[30].mxu1  ;;  %v2774_v31 = vpop.f32.mrb[24].mxu0 }
 0x47b   :  { %v2778_v33 = vadd.f32 %v2704_v30, %v13995_v55  ;;  %v11228_v36 = vpop.f32.mrb[31].mxu1  ;;  %v11239_v38 = vpop.f32.mrb[25].mxu0  ;;  %v2785_v58 = vadd.f32 %v2774_v31, %v14004_v3  ;;  %v14140_v30 = vrot.slane %v13780_v40, %v13639_v18 }
 0x47d   :  { %v13048_v5 = vpop.eup %13047  ;;  %v10157_v39 = vmul.f32 -1.442695, %v2778_v33  ;;  %v10158_v55 = vmul.f32 -1.442695, %v2785_v58 }
 0x47e   :  { %v2629_v42 = vmul.f32 %v13048_v5, %v2626_v50  ;;  %v14145_v5 = vrot.slane %v13793_v52, %v13639_v18 }
 0x47f   :  { %13049 = vpow2.f32 %v10157_v39 }
 0x480   :  { %v2630_v56 = vadd.f32 %v2629_v42, %v541_v41 }
 0x482   :  { %13051 = vtanh.f32 %v2630_v56  ;;  %v2858_v57 = vpop.f32.mrb[32].mxu1 }
 0x483   :  { %v11250_v59 = vpop.f32.mrb[33].mxu1  ;;  %13053 = vrcp.f32 %v2556_v21  ;;  %v2859_v14 = vadd.f32 %v13856_v8, %v2858_v57  ;;  %v657_v57 = vcombine.high %v13804_v7, %v13804_v7 }
 0x484   :  { %13055 = vpow2.f32 %v10158_v55  ;;  %v789_v55 = vcombine.high %v13782_v44, %v13782_v44 }
 0x485   :  { %v14151_v59 = vrot.slane %v657_v57, %v13639_v18 }
 0x489   :  { %v13050_v25 = vpop.eup %13049 }
 0x48a   :  { %v2782_v63 = vadd.f32 1.0, %v13050_v25  ;;  %v673_v25 = vcombine.high %v14151_v59, %v14151_v59 }
 0x48c   :  { %v13052_v0 = vpop.eup %13051  ;;  %13057 = vrcp.f32 %v2782_v63 }
 0x48d   :  { %v2632_v2 = vsub.f32 %v14013_v46, %v13052_v0  ;;  %v13054_v22 = vpop.eup %13053 }
 0x48e   :  { %v13056_v3 = vpop.eup %13055 }
 0x48f   :  { %v2633_v4 = vmul.f32 %v13054_v22, %v2632_v2  ;;  %v2789_v16 = vadd.f32 1.0, %v13056_v3 }
 0x491   :  { %v14083_v27 = vadd.f32 %v13052_v0, %v2633_v4 }
 0x493   :  { %11260 = vmatmul.mubr.msk.f32.vlgmr.msra.gmra.mrb[26].mxu0 %vm179_vm0, %v14083_v27  ;;  %11271 = vmatmul.mubr.msk.f32.vlgmr.msra.gmra.mrb[34].mxu1 %vm179_vm0, %v14083_v27 }
 0x494   :  { %12416 = vmatpush3.bf16.msra.mxu0 %v13691_v60  ;;  %11281 = vmatprep.mubr.msk.f32.mxu0 %vm13462_vm1, %v13463_v54 }
 0x495   :  { %12417 = vmatprep.subr.bf16.mxu0 %v13461_v48  ;;  %12422 = vmatpush3.bf16.msra.mxu1 %v13744_v26 }
 0x496   :  { %v13058_v6 = vpop.eup %13057  ;;  %12423 = vmatprep.subr.bf16.mxu1 %v13461_v48  ;;  %11292 = vmatprep.mubr.msk.f32.mxu1 %vm13462_vm1, %v13463_v54 }
 0x497   :  { %v2862_v10 = vmul.f32 %v13058_v6, %v2859_v14 }
 0x498   :  { %12419 = vmatpush3.bf16.msra.mxu0 %v13699_v1 }
 0x499   :  { %v2863_v17 = vadd.f32 %v2862_v10, %v14017_v45  ;;  %12426 = vmatprep.subr.bf16.mxu0 %v13461_v48  ;;  %12425 = vmatpush3.bf16.msra.mxu1 %v13749_v29 }
 0x49a   :  { %12432 = vmatprep.subr.bf16.mxu1 %v13461_v48 }
 0x49b   :  { %13059 = vtanh.f32 %v2863_v17  ;;  %11282 = vmatmul.mubr.msk.f32.vlgmr.msra.gmra.mrb[28].mxu0 %vm179_vm0, %v14083_v27  ;;  %v14163_v17 = vrot.slane %v13799_v61, %v13639_v18 }
 0x49c   :  { %12428 = vmatpush3.bf16.msra.mxu0 %v13706_v9  ;;  %11303 = vmatprep.mubr.msk.f32.mxu0 %vm13462_vm1, %v13463_v54  ;;  %13061 = vrcp.f32 %v2789_v16  ;;  %v14159_v16 = vrot.slane %v789_v55, %v13639_v18 }
 0x49d   :  { %12429 = vmatprep.subr.bf16.mxu0 %v13461_v48 }
 0x4a0   :  { %12431 = vmatpush3.bf16.msra.mxu0 %v13714_v15 }
 0x4a1   :  { %12438 = vmatprep.subr.bf16.mxu0 %v13461_v48 }
 0x4a5   :  { %v13060_v45 = vpop.eup %13059 }
 0x4a6   :  { %v2865_v12 = vsub.f32 %v14047_v53, %v13060_v45  ;;  %v13062_v13 = vpop.eup %13061 }
 0x4a8   :  { %v2866_v34 = vmul.f32 %v13062_v13, %v2865_v12 }
 0x4aa   :  { %v14112_v28 = vadd.f32 %v13060_v45, %v2866_v34  ;;  %v805_v34 = vcombine.high %v14159_v16, %v14159_v16 }
 0x4ac   :  { %11293 = vmatmul.mubr.msk.f32.vlgmr.msra.gmra.mrb[36].mxu1 %vm179_vm0, %v14112_v28  ;;  %11304 = vmatmul.mubr.msk.f32.vlgmr.msra.gmra.mrb[30].mxu0 %vm179_vm0, %v14112_v28 }
 0x4ad   :  { %12434 = vmatpush3.bf16.msra.mxu1 %v13755_v32  ;;  %11314 = vmatprep.mubr.msk.f32.mxu1 %vm13462_vm1, %v13463_v54 }
 0x4ae   :  { %12435 = vmatprep.subr.bf16.mxu1 %v13461_v48  ;;  %12440 = vmatpush3.bf16.msra.mxu0 %v13668_v43 }
 0x4af   :  { %12441 = vmatprep.subr.bf16.mxu0 %v13461_v48  ;;  %11325 = vmatprep.mubr.msk.f32.mxu0 %vm13462_vm1, %v13463_v54 }
 0x4b1   :  { %12437 = vmatpush3.bf16.msra.mxu1 %v13760_v35 }
 0x4b2   :  { %12444 = vmatprep.subr.bf16.mxu1 %v13461_v48  ;;  %12443 = vmatpush3.bf16.msra.mxu0 %v13682_v51 }
 0x4b3   :  { %12450 = vmatprep.subr.bf16.mxu0 %v13461_v48 }
 0x4b4   :  { %11315 = vmatmul.mubr.msk.f32.vlgmr.msra.gmra.mrb[38].mxu1 %vm179_vm0, %v14112_v28 }
 0x4b5   :  { %12446 = vmatpush3.bf16.msra.mxu1 %v13730_v20  ;;  %11336 = vmatprep.mubr.msk.f32.mxu1 %vm13462_vm1, %v13463_v54 }
 0x4b6   :  { %12447 = vmatprep.subr.bf16.mxu1 %v13461_v48 }
 0x4b9   :  { %12449 = vmatpush3.bf16.msra.mxu1 %v13738_v23 }
 0x4ba   :  { %12456 = vmatprep.subr.bf16.mxu1 %v13461_v48 }
 0x566   :  { %v2937_v31 = vpop.f32.mrb[26].mxu0  ;;  %v3007_v33 = vpop.f32.mrb[34].mxu1 }
 0x567   :  { %v3011_v36 = vadd.f32 %v2937_v31, %v14140_v30  ;;  %v11261_v38 = vpop.f32.mrb[27].mxu0  ;;  %v11272_v49 = vpop.f32.mrb[35].mxu1  ;;  %v3018_v41 = vadd.f32 %v3007_v33, %v14145_v5 }
 0x569   :  { %v10162_v50 = vmul.f32 -1.442695, %v3011_v36  ;;  %v10163_v21 = vmul.f32 -1.442695, %v3018_v41 }
 0x56b   :  { %13063 = vpow2.f32 %v10162_v50 }
 0x56c   :  { %13065 = vpow2.f32 %v10163_v21 }
 0x56e   :  { %v3091_v39 = vpop.f32.mrb[28].mxu0 }
 0x56f   :  { %v11283_v42 = vpop.f32.mrb[29].mxu0  ;;  %v3092_v14 = vadd.f32 %v13809_v11, %v3091_v39 }
 0x570   :  { %v921_v42 = vcombine.high %v13817_v19, %v13817_v19 }
 0x572   :  { %v14174_v57 = vrot.slane %v921_v42, %v13639_v18 }
 0x575   :  { %v13064_v56 = vpop.eup %13063 }
 0x576   :  { %v3015_v58 = vadd.f32 1.0, %v13064_v56  ;;  %v13066_v3 = vpop.eup %13065 }
 0x577   :  { %v3022_v12 = vadd.f32 1.0, %v13066_v3 }
 0x578   :  { %13067 = vrcp.f32 %v3015_v58 }
 0x57f   :  { %v3170_v63 = vpop.f32.mrb[36].mxu1  ;;  %v3240_v0 = vpop.f32.mrb[30].mxu0 }
 0x580   :  { %v3244_v2 = vadd.f32 %v3170_v63, %v673_v25  ;;  %v11294_v22 = vpop.f32.mrb[37].mxu1  ;;  %v11305_v4 = vpop.f32.mrb[31].mxu0  ;;  %v3251_v11 = vadd.f32 %v3240_v0, %v805_v34  ;;  %v937_v63 = vcombine.high %v14174_v57, %v14174_v57 }
 0x582   :  { %v13068_v6 = vpop.eup %13067  ;;  %v10167_v10 = vmul.f32 -1.442695, %v3244_v2  ;;  %v10168_v36 = vmul.f32 -1.442695, %v3251_v11 }
 0x583   :  { %v3095_v45 = vmul.f32 %v13068_v6, %v3092_v14 }
 0x584   :  { %13069 = vpow2.f32 %v10167_v10 }
 0x585   :  { %v3096_v13 = vadd.f32 %v3095_v45, %v14163_v17  ;;  %v293_v45 = vcombine.high %v14140_v30, %v14140_v30 }
 0x587   :  { %13071 = vtanh.f32 %v3096_v13  ;;  %v3324_v31 = vpop.f32.mrb[38].mxu1 }
 0x588   :  { %v11316_v33 = vpop.f32.mrb[39].mxu1  ;;  %13073 = vrcp.f32 %v3022_v12  ;;  %v3325_v55 = vadd.f32 %v13856_v8, %v3324_v31 }
 0x589   :  { %13075 = vpow2.f32 %v10168_v36  ;;  %v425_v36 = vcombine.high %v14145_v5, %v14145_v5 }
 0x58e   :  { %v13070_v38 = vpop.eup %13069 }
 0x58f   :  { %v3248_v49 = vadd.f32 1.0, %v13070_v38 }
 0x591   :  { %v13072_v50 = vpop.eup %13071  ;;  %13077 = vrcp.f32 %v3248_v49 }
 0x592   :  { %v3098_v39 = vsub.f32 %v14083_v27, %v13072_v50  ;;  %v13074_v41 = vpop.eup %13073 }
 0x593   :  { %v13076_v58 = vpop.eup %13075 }
 0x594   :  { %v3099_v21 = vmul.f32 %v13074_v41, %v3098_v39  ;;  %v3255_v2 = vadd.f32 1.0, %v13076_v58 }
 0x596   :  { %v14171_v56 = vadd.f32 %v13072_v50, %v3099_v21 }
 0x598   :  { %11326 = vmatmul.mubr.msk.f32.vlgmr.msra.gmra.mrb[32].mxu0 %vm179_vm0, %v14171_v56  ;;  %11337 = vmatmul.mubr.msk.f32.vlgmr.msra.gmra.mrb[40].mxu1 %vm179_vm0, %v14171_v56 }
 0x599   :  { %12452 = vmatpush3.bf16.msra.mxu0 %v13691_v60  ;;  %11347 = vmatprep.mubr.msk.f32.mxu0 %vm13462_vm1, %v13463_v54 }
 0x59a   :  { %12453 = vmatprep.subr.bf16.mxu0 %v13461_v48  ;;  %12458 = vmatpush3.bf16.msra.mxu1 %v13744_v26 }
 0x59b   :  { %v13078_v25 = vpop.eup %13077  ;;  %12459 = vmatprep.subr.bf16.mxu1 %v13461_v48  ;;  %11358 = vmatprep.mubr.msk.f32.mxu1 %vm13462_vm1, %v13463_v54 }
 0x59c   :  { %v3328_v0 = vmul.f32 %v13078_v25, %v3325_v55 }
 0x59d   :  { %12455 = vmatpush3.bf16.msra.mxu0 %v13699_v1 }
 0x59e   :  { %v3329_v22 = vadd.f32 %v3328_v0, %v937_v63  ;;  %12462 = vmatprep.subr.bf16.mxu0 %v13461_v48  ;;  %12461 = vmatpush3.bf16.msra.mxu1 %v13749_v29  ;;  %v14238_v0 = vld [vmem:[%s15296_s4] ss:$0 sm:$0xff] }
 0x59f   :  { %12468 = vmatprep.subr.bf16.mxu1 %v13461_v48 }
 0x5a0   :  { %13079 = vtanh.f32 %v3329_v22  ;;  %11348 = vmatmul.mubr.msk.f32.vlgmr.msra.gmra.mrb[34].mxu0 %vm179_vm0, %v14171_v56 }
 0x5a1   :  { %12464 = vmatpush3.bf16.msra.mxu0 %v13706_v9  ;;  %11369 = vmatprep.mubr.msk.f32.mxu0 %vm13462_vm1, %v13463_v54  ;;  %13081 = vrcp.f32 %v3255_v2 }
 0x5a2   :  { %12465 = vmatprep.subr.bf16.mxu0 %v13461_v48 }
 0x5a5   :  { %12467 = vmatpush3.bf16.msra.mxu0 %v13714_v15 }
 0x5a6   :  { %12474 = vmatprep.subr.bf16.mxu0 %v13461_v48 }
 0x5aa   :  { %v13080_v4 = vpop.eup %13079 }
 0x5ab   :  { %v3331_v3 = vsub.f32 %v14112_v28, %v13080_v4  ;;  %v13082_v14 = vpop.eup %13081 }
 0x5ad   :  { %v3332_v6 = vmul.f32 %v13082_v14, %v3331_v3 }
 0x5af   :  { %v14204_v10 = vadd.f32 %v13080_v4, %v3332_v6  ;;  %v557_v4 = vcombine.high %v14163_v17, %v14163_v17 }
 0x5b1   :  { %11359 = vmatmul.mubr.msk.f32.vlgmr.msra.gmra.mrb[42].mxu1 %vm179_vm0, %v14204_v10  ;;  %11370 = vmatmul.mubr.msk.f32.vlgmr.msra.gmra.mrb[36].mxu0 %vm179_vm0, %v14204_v10 }
 0x5b2   :  { %12470 = vmatpush3.bf16.msra.mxu1 %v13755_v32  ;;  %11380 = vmatprep.mubr.msk.f32.mxu1 %vm13462_vm1, %v13463_v54 }
 0x5b3   :  { %12471 = vmatprep.subr.bf16.mxu1 %v13461_v48  ;;  %12476 = vmatpush3.bf16.msra.mxu0 %v13668_v43 }
 0x5b4   :  { %12477 = vmatprep.subr.bf16.mxu0 %v13461_v48  ;;  %11391 = vmatprep.mubr.msk.f32.mxu0 %vm13462_vm1, %v13463_v54 }
 0x5b6   :  { %12473 = vmatpush3.bf16.msra.mxu1 %v13760_v35 }
 0x5b7   :  { %12480 = vmatprep.subr.bf16.mxu1 %v13461_v48  ;;  %12479 = vmatpush3.bf16.msra.mxu0 %v13682_v51 }
 0x5b8   :  { %12486 = vmatprep.subr.bf16.mxu0 %v13461_v48 }
 0x5b9   :  { %11381 = vmatmul.mubr.msk.f32.vlgmr.msra.gmra.mrb[44].mxu1 %vm179_vm0, %v14204_v10 }
 0x5ba   :  { %12482 = vmatpush3.bf16.msra.mxu1 %v13730_v20  ;;  %11402 = vmatprep.mubr.msk.f32.mxu1 %vm13462_vm1, %v13463_v54 }
 0x5bb   :  { %12483 = vmatprep.subr.bf16.mxu1 %v13461_v48 }
 0x5be   :  { %12485 = vmatpush3.bf16.msra.mxu1 %v13738_v23 }
 0x5bf   :  { %12492 = vmatprep.subr.bf16.mxu1 %v13461_v48 }
 0x66b   :  { %v3403_v12 = vpop.f32.mrb[32].mxu0  ;;  %v3473_v13 = vpop.f32.mrb[40].mxu1 }
 0x66c   :  { %v3477_v34 = vadd.f32 %v3403_v12, %v293_v45  ;;  %v11327_v31 = vpop.f32.mrb[33].mxu0  ;;  %v11338_v11 = vpop.f32.mrb[41].mxu1  ;;  %v3484_v49 = vadd.f32 %v3473_v13, %v425_v36 }
 0x66e   :  { %v10172_v33 = vmul.f32 -1.442695, %v3477_v34  ;;  %v10173_v39 = vmul.f32 -1.442695, %v3484_v49 }
 0x670   :  { %13083 = vpow2.f32 %v10172_v33 }
 0x671   :  { %13085 = vpow2.f32 %v10173_v39 }
 0x673   :  { %v3557_v38 = vpop.f32.mrb[34].mxu0 }
 0x674   :  { %v11349_v50 = vpop.f32.mrb[35].mxu0  ;;  %v3558_v5 = vadd.f32 %v14238_v0, %v3557_v38 }
 0x67a   :  { %v13084_v41 = vpop.eup %13083 }
 0x67b   :  { %v3481_v42 = vadd.f32 1.0, %v13084_v41  ;;  %v13086_v63 = vpop.eup %13085 }
 0x67c   :  { %v3488_v14 = vadd.f32 1.0, %v13086_v63 }
 0x67d   :  { %13087 = vrcp.f32 %v3481_v42 }
 0x684   :  { %v3636_v21 = vpop.f32.mrb[42].mxu1  ;;  %v3706_v30 = vpop.f32.mrb[36].mxu0 }
 0x685   :  { %v3710_v58 = vadd.f32 %v3636_v21, %v14151_v59  ;;  %v11360_v55 = vpop.f32.mrb[43].mxu1  ;;  %v11371_v25 = vpop.f32.mrb[37].mxu0  ;;  %v3717_v45 = vadd.f32 %v3706_v30, %v14159_v16 }
 0x687   :  { %v13088_v2 = vpop.eup %13087  ;;  %v10177_v22 = vmul.f32 -1.442695, %v3710_v58  ;;  %v10178_v13 = vmul.f32 -1.442695, %v3717_v45  ;;  %v14314_v45 = vrot.slane %v13804_v7, %v13639_v18 }
 0x688   :  { %v3561_v3 = vmul.f32 %v13088_v2, %v3558_v5  ;;  %v410_v2 = vcombine.high %v13793_v52, %v13793_v52 }
 0x689   :  { %13089 = vpow2.f32 %v10177_v22  ;;  %v672_v52 = vcombine.high %v14314_v45, %v14314_v45 }
 0x68a   :  { %v3562_v6 = vadd.f32 %v3561_v3, %v557_v4 }
 0x68c   :  { %13091 = vtanh.f32 %v3562_v6  ;;  %v3790_v59 = vpop.f32.mrb[44].mxu1 }
 0x68d   :  { %v11382_v12 = vpop.f32.mrb[45].mxu1  ;;  %13093 = vrcp.f32 %v3488_v14  ;;  %v3791_v49 = vadd.f32 %v13856_v8, %v3790_v59 }
 0x68e   :  { %13095 = vpow2.f32 %v10178_v13  ;;  %v542_v12 = vcombine.high %v13799_v61, %v13799_v61 }
 0x693   :  { %v13090_v34 = vpop.eup %13089 }
 0x694   :  { %v3714_v31 = vadd.f32 1.0, %v13090_v34 }
 0x696   :  { %v13092_v11 = vpop.eup %13091  ;;  %13097 = vrcp.f32 %v3714_v31 }
 0x697   :  { %v3564_v33 = vsub.f32 %v14171_v56, %v13092_v11  ;;  %v13094_v36 = vpop.eup %13093 }
 0x698   :  { %v13096_v16 = vpop.eup %13095 }
 0x699   :  { %v3565_v17 = vmul.f32 %v13094_v36, %v3564_v33  ;;  %v3721_v41 = vadd.f32 1.0, %v13096_v16 }
 0x69b   :  { %v14245_v38 = vadd.f32 %v13092_v11, %v3565_v17 }
 0x69d   :  { %11392 = vmatmul.mubr.msk.f32.vlgmr.msra.gmra.mrb[38].mxu0 %vm179_vm0, %v14245_v38  ;;  %11403 = vmatmul.mubr.msk.f32.vlgmr.msra.gmra.mrb[46].mxu1 %vm179_vm0, %v14245_v38 }
 0x69e   :  { %12488 = vmatpush3.bf16.msra.mxu0 %v13691_v60  ;;  %11413 = vmatprep.mubr.msk.f32.mxu0 %vm13462_vm1, %v13463_v54 }
 0x69f   :  { %12489 = vmatprep.subr.bf16.mxu0 %v13461_v48  ;;  %12494 = vmatpush3.bf16.msra.mxu1 %v13744_v26 }
 0x6a0   :  { %v13098_v50 = vpop.eup %13097  ;;  %12495 = vmatprep.subr.bf16.mxu1 %v13461_v48  ;;  %11424 = vmatprep.mubr.msk.f32.mxu1 %vm13462_vm1, %v13463_v54 }
 0x6a1   :  { %v3794_v39 = vmul.f32 %v13098_v50, %v3791_v49  ;;  %v14323_v49 = vrot.slane %v13782_v44, %v13639_v18  ;;  %v14326_v50 = vrot.slane %v542_v12, %v13639_v18  ;;  %v5089_v12 = vld [vmem:[#allocation9 + $0x20] sm:$0xff] }
 0x6a2   :  { %12491 = vmatpush3.bf16.msra.mxu0 %v13699_v1 }
 0x6a3   :  { %v3795_v42 = vadd.f32 %v3794_v39, %v14174_v57  ;;  %12498 = vmatprep.subr.bf16.mxu0 %v13461_v48  ;;  %12497 = vmatpush3.bf16.msra.mxu1 %v13749_v29 }
 0x6a4   :  { %12504 = vmatprep.subr.bf16.mxu1 %v13461_v48 }
 0x6a5   :  { %13099 = vtanh.f32 %v3795_v42  ;;  %11414 = vmatmul.mubr.msk.f32.vlgmr.msra.gmra.mrb[40].mxu0 %vm179_vm0, %v14245_v38  ;;  %v804_v42 = vcombine.high %v14323_v49, %v14323_v49 }
 0x6a6   :  { %12500 = vmatpush3.bf16.msra.mxu0 %v13706_v9  ;;  %11435 = vmatprep.mubr.msk.f32.mxu0 %vm13462_vm1, %v13463_v54  ;;  %13101 = vrcp.f32 %v3721_v41 }
 0x6a7   :  { %12501 = vmatprep.subr.bf16.mxu0 %v13461_v48 }
 0x6aa   :  { %12503 = vmatpush3.bf16.msra.mxu0 %v13714_v15 }
 0x6ab   :  { %12510 = vmatprep.subr.bf16.mxu0 %v13461_v48 }
 0x6af   :  { %v13100_v8 = vpop.eup %13099 }
 0x6b0   :  { %v3797_v57 = vsub.f32 %v14204_v10, %v13100_v8  ;;  %v13102_v21 = vpop.eup %13101 }
 0x6b2   :  { %v3798_v30 = vmul.f32 %v13102_v21, %v3797_v57 }
 0x6b4   :  { %v14274_v58 = vadd.f32 %v13100_v8, %v3798_v30 }
 0x6b6   :  { %11425 = vmatmul.mubr.msk.f32.vlgmr.msra.gmra.mrb[48].mxu1 %vm179_vm0, %v14274_v58  ;;  %11436 = vmatmul.mubr.msk.f32.vlgmr.msra.gmra.mrb[42].mxu0 %vm179_vm0, %v14274_v58 }
 0x6b7   :  { %12506 = vmatpush3.bf16.msra.mxu1 %v13755_v32  ;;  %11446 = vmatprep.mubr.msk.f32.mxu1 %vm13462_vm1, %v13463_v54 }
 0x6b8   :  { %12507 = vmatprep.subr.bf16.mxu1 %v13461_v48  ;;  %12512 = vmatpush3.bf16.msra.mxu0 %v13668_v43  ;;  %v278_v43 = vcombine.high %v13780_v40, %v13780_v40 }
 0x6b9   :  { %12513 = vmatprep.subr.bf16.mxu0 %v13461_v48  ;;  %11457 = vmatprep.mubr.msk.f32.mxu0 %vm13462_vm1, %v13463_v54 }
 0x6bb   :  { %12509 = vmatpush3.bf16.msra.mxu1 %v13760_v35 }
 0x6bc   :  { %12516 = vmatprep.subr.bf16.mxu1 %v13461_v48  ;;  %12515 = vmatpush3.bf16.msra.mxu0 %v13682_v51  ;;  %v14303_v51 = vrot.slane %v278_v43, %v13639_v18 }
 0x6bd   :  { %12522 = vmatprep.subr.bf16.mxu0 %v13461_v48 }
 0x6be   :  { %11447 = vmatmul.mubr.msk.f32.vlgmr.msra.gmra.mrb[50].mxu1 %vm179_vm0, %v14274_v58 }
 0x6bf   :  { %12518 = vmatpush3.bf16.msra.mxu1 %v13730_v20  ;;  %11468 = vmatprep.mubr.msk.f32.mxu1 %vm13462_vm1, %v13463_v54 }
 0x6c0   :  { %12519 = vmatprep.subr.bf16.mxu1 %v13461_v48 }
 0x6c3   :  { %12521 = vmatpush3.bf16.msra.mxu1 %v13738_v23  ;;  %v14309_v23 = vrot.slane %v410_v2, %v13639_v18  ;;  %v14336_v2 = vrot.slane %v13817_v19, %v13639_v18 }
 0x6c4   :  { %12528 = vmatprep.subr.bf16.mxu1 %v13461_v48 }
 0x770   :  { %v3869_v55 = vpop.f32.mrb[38].mxu0  ;;  %v3939_v25 = vpop.f32.mrb[46].mxu1 }
 0x771   :  { %v3943_v63 = vadd.f32 %v3869_v55, %v14303_v51  ;;  %v11393_v20 = vpop.f32.mrb[39].mxu0  ;;  %v11404_v5 = vpop.f32.mrb[47].mxu1  ;;  %v3950_v40 = vadd.f32 %v3939_v25, %v14309_v23 }
 0x773   :  { %v10182_v22 = vmul.f32 -1.442695, %v3943_v63  ;;  %v10183_v14 = vmul.f32 -1.442695, %v3950_v40 }
 0x775   :  { %13103 = vpow2.f32 %v10182_v22 }
 0x776   :  { %13105 = vpow2.f32 %v10183_v14 }
 0x778   :  { %v4023_v4 = vpop.f32.mrb[40].mxu0 }
 0x779   :  { %v11415_v3 = vpop.f32.mrb[41].mxu0  ;;  %v4024_v17 = vadd.f32 %v14238_v0, %v4023_v4  ;;  %v14348_v4 = vld [vmem:[%s15296_s4 + $0x1] ss:$0 sm:$0xff]  ;;  %s13464_s4 = smov 32  }
 0x77f   :  { %v13104_v6 = vpop.eup %13103 }
 0x780   :  { %v3947_v59 = vadd.f32 1.0, %v13104_v6  ;;  %v13106_v36 = vpop.eup %13105 }
 0x781   :  { %v3954_v61 = vadd.f32 1.0, %v13106_v36 }
 0x782   :  { %13107 = vrcp.f32 %v3947_v59 }
 0x789   :  { %v4102_v13 = vpop.f32.mrb[48].mxu1  ;;  %v4172_v34 = vpop.f32.mrb[42].mxu0 }
 0x78a   :  { %v4176_v31 = vadd.f32 %v4102_v13, %v672_v52  ;;  %v11426_v11 = vpop.f32.mrb[49].mxu1  ;;  %v11437_v33 = vpop.f32.mrb[43].mxu0  ;;  %v4183_v57 = vadd.f32 %v4172_v34, %v804_v42  ;;  %v5090_v34 = vld [vmem:[#allocation9 + $0x28] sm:$0xff] }
 0x78b   :  { %v4867_v11 = vld [vmem:[#allocation9 + $0x18] sm:$0xff]  ;;  %v12562_v33 = vpack.c.bf16 %v5090_v34, %v5089_v12 }
 0x78c   :  { %v13108_v16 = vpop.eup %13107  ;;  %v10187_v7 = vmul.f32 -1.442695, %v4176_v31  ;;  %v10188_v30 = vmul.f32 -1.442695, %v4183_v57  ;;  %v4866_v31 = vld [vmem:[#allocation9 + $0x10] sm:$0xff] }
 0x78d   :  { %v4027_v39 = vmul.f32 %v13108_v16, %v4024_v17  ;;  %v12550_v36 = vpack.c.bf16 %v4867_v11, %v4866_v31  ;;  %v5092_v17 = vld [vmem:[#allocation9 + $0x38] sm:$0xff] }
 0x78e   :  { %13109 = vpow2.f32 %v10187_v7  ;;  %v4861_v7 = vld [vmem:[#allocation8 + $0x8] sm:$0xff] }
 0x78f   :  { %v4028_v41 = vadd.f32 %v4027_v39, %v14326_v50  ;;  %v5084_v39 = vld [vmem:[#allocation8 + $0x20] sm:$0xff] }
 0x791   :  { %13111 = vtanh.f32 %v4028_v41  ;;  %v4256_v8 = vpop.f32.mrb[50].mxu1  ;;  %v5085_v41 = vld [vmem:[#allocation8 + $0x28] sm:$0xff] }
 0x792   :  { %v11448_v21 = vpop.f32.mrb[51].mxu1  ;;  %13113 = vrcp.f32 %v3954_v61  ;;  %v4257_v19 = vadd.f32 %v14348_v4, %v4256_v8  ;;  %v14385_v42 = vpack.c.bf16 %v5085_v41, %v5084_v39  ;;  %v294_v8 = vcombine.high %v14303_v51, %v14303_v51 }
 0x793   :  { %13115 = vpow2.f32 %v10188_v30 }
 0x798   :  { %v13110_v44 = vpop.eup %13109 }
 0x799   :  { %v4180_v43 = vadd.f32 1.0, %v13110_v44 }
 0x79b   :  { %v13112_v55 = vpop.eup %13111  ;;  %13117 = vrcp.f32 %v4180_v43 }
 0x79c   :  { %v4030_v25 = vsub.f32 %v14245_v38, %v13112_v55  ;;  %v13114_v63 = vpop.eup %13113 }
 0x79d   :  { %v13116_v22 = vpop.eup %13115 }
 0x79e   :  { %v4031_v20 = vmul.f32 %v13114_v63, %v4030_v25  ;;  %v4187_v14 = vadd.f32 1.0, %v13116_v22  ;;  %v426_v25 = vcombine.high %v14309_v23, %v14309_v23  ;;  %v558_v23 = vcombine.high %v14326_v50, %v14326_v50 }
 0x7a0   :  { %v14332_v5 = vadd.f32 %v13112_v55, %v4031_v20 }
 0x7a2   :  { %11458 = vmatmul.mubr.msk.f32.vlgmr.msra.gmra.mrb[44].mxu0 %vm179_vm0, %v14332_v5  ;;  %11469 = vmatmul.mubr.msk.f32.vlgmr.msra.gmra.mrb[52].mxu1 %vm179_vm0, %v14332_v5 }
 0x7a3   :  { %12524 = vmatpush3.bf16.msra.mxu0 %v13691_v60  ;;  %11479 = vmatprep.mubr.msk.f32.mxu0 %vm13462_vm1, %v13463_v54  ;;  %v936_v60 = vcombine.high %v14336_v2, %v14336_v2 }
 0x7a4   :  { %12525 = vmatprep.subr.bf16.mxu0 %v13461_v48  ;;  %12530 = vmatpush3.bf16.msra.mxu1 %v13744_v26 }
 0x7a5   :  { %v13118_v40 = vpop.eup %13117  ;;  %12531 = vmatprep.subr.bf16.mxu1 %v13461_v48  ;;  %11490 = vmatprep.mubr.msk.f32.mxu1 %vm13462_vm1, %v13463_v54 }
 0x7a6   :  { %v4260_v3 = vmul.f32 %v13118_v40, %v4257_v19 }
 0x7a7   :  { %12527 = vmatpush3.bf16.msra.mxu0 %v13699_v1 }
 0x7a8   :  { %v4261_v6 = vadd.f32 %v4260_v3, %v936_v60  ;;  %12534 = vmatprep.subr.bf16.mxu0 %v13461_v48  ;;  %12533 = vmatpush3.bf16.msra.mxu1 %v13749_v29 }
 0x7a9   :  { %12540 = vmatprep.subr.bf16.mxu1 %v13461_v48 }
 0x7aa   :  { %13119 = vtanh.f32 %v4261_v6  ;;  %11480 = vmatmul.mubr.msk.f32.vlgmr.msra.gmra.mrb[46].mxu0 %vm179_vm0, %v14332_v5 }
 0x7ab   :  { %12536 = vmatpush3.bf16.msra.mxu0 %v13706_v9  ;;  %11501 = vmatprep.mubr.msk.f32.mxu0 %vm13462_vm1, %v13463_v54  ;;  %13121 = vrcp.f32 %v4187_v14  ;;  %v4864_v9 = vld [vmem:[#allocation9] sm:$0xff] }
 0x7ac   :  { %12537 = vmatprep.subr.bf16.mxu0 %v13461_v48 }
 0x7af   :  { %12539 = vmatpush3.bf16.msra.mxu0 %v13714_v15  ;;  %v4865_v15 = vld [vmem:[#allocation9 + $0x8] sm:$0xff] }
 0x7b0   :  { %v12546_v13 = vpack.c.bf16 %v4865_v15, %v4864_v9 }
 0x7b2   :  { %12547 = vmatprep.subr.bf16.mxu0 %v12546_v13 }
 0x7b4   :  { %v13120_v1 = vpop.eup %13119 }
 0x7b5   :  { %v4263_v26 = vsub.f32 %v14274_v58, %v13120_v1  ;;  %v13122_v29 = vpop.eup %13121 }
 0x7b7   :  { %v4264_v59 = vmul.f32 %v13122_v29, %v4263_v26 }
 0x7b9   :  { %v14370_v52 = vadd.f32 %v13120_v1, %v4264_v59 }
 0x7bb   :  { %11491 = vmatmul.mubr.msk.f32.vlgmr.msra.gmra.mrb[54].mxu1 %vm179_vm0, %v14370_v52  ;;  %11502 = vmatmul.mubr.msk.f32.vlgmr.msra.gmra.mrb[48].mxu0 %vm179_vm0, %v14370_v52 }
 0x7bc   :  { %12542 = vmatpush3.bf16.msra.mxu1 %v13755_v32  ;;  %11512 = vmatprep.mubr.msk.f32.mxu1 %vm13462_vm1, %v13463_v54  ;;  %v5091_v32 = vld [vmem:[#allocation9 + $0x30] sm:$0xff] }
 0x7bd   :  { %12543 = vmatprep.subr.bf16.mxu1 %v13461_v48  ;;  %v12566_v16 = vpack.c.bf16 %v5092_v17, %v5091_v32  ;;  %12549 = vmatpush3.bf16.msra.mxu0 %v12546_v13 }
 0x7be   :  { %12551 = vmatprep.subr.bf16.mxu0 %v12550_v36 }
 0x7c0   :  { %12545 = vmatpush3.bf16.msra.mxu1 %v13760_v35  ;;  %v4860_v35 = vld [vmem:[#allocation8] sm:$0xff] }
 0x7c1   :  { %12563 = vmatprep.subr.bf16.mxu1 %v12562_v33  ;;  %12553 = vmatpush3.bf16.msra.mxu0 %v12550_v36  ;;  %v14383_v61 = vpack.c.bf16 %v4861_v7, %v4860_v35 }
 0x7c3   :  { %11513 = vmatmul.mubr.msk.f32.vlgmr.msra.gmra.mrb[56].mxu1 %vm179_vm0, %v14370_v52  ;;  %12555 = vmatprep.subr.bf16.mxu0 %v14383_v61 }
 0x7c4   :  { %12565 = vmatpush3.bf16.msra.mxu1 %v12562_v33 }
 0x7c5   :  { %12567 = vmatprep.subr.bf16.mxu1 %v12566_v16 }
 0x7c8   :  { %12569 = vmatpush3.bf16.msra.mxu1 %v12566_v16 }
 0x7c9   :  { %12571 = vmatprep.subr.bf16.mxu1 %v14385_v42 }
 0x875   :  { %v4335_v57 = vpop.f32.mrb[44].mxu0  ;;  %v4405_v21 = vpop.f32.mrb[52].mxu1 }
 0x876   :  { %v4409_v30 = vadd.f32 %v4335_v57, %v294_v8  ;;  %v11459_v44 = vpop.f32.mrb[45].mxu0  ;;  %v11470_v43 = vpop.f32.mrb[53].mxu1  ;;  %v4416_v20 = vadd.f32 %v4405_v21, %v426_v25  ;;  %v4826_v57 = vcombine.low %v14047_v53, %v14047_v53  ;;  %v4844_v21 = vcombine.low %v13890_v37, %v13890_v37 }
 0x877   :  { %v4750_v43 = vcombine.low %v14083_v27, %v14083_v27  ;;  %v4732_v37 = vcombine.low %v13926_v62, %v13926_v62 }
 0x878   :  { %v10192_v55 = vmul.f32 -1.442695, %v4409_v30  ;;  %v10193_v19 = vmul.f32 -1.442695, %v4416_v20  ;;  %v4816_v30 = vcombine.low %v14204_v10, %v14204_v10  ;;  %v4833_v53 = vrot.slane %v4826_v57, %v13639_v18 }
 0x879   :  { %v4813_v10 = vrot.slane %v14274_v58, %v13639_v18  ;;  %v4739_v58 = vrot.slane %v4732_v37, %v13639_v18 }
 0x87a   :  { %13123 = vpow2.f32 %v10192_v55  ;;  %v4798_v55 = vcombine.low %v14370_v52, %v14370_v52  ;;  %v4823_v27 = vrot.slane %v4816_v30, %v13639_v18  ;;  %v4857_v20 = vsel %vm4789_vm2, %v14112_v28, %v4833_v53  ;;  %v5298_v30 = vld [vmem:[#allocation8 + $0x40] sm:$0xff]  ;;  %v5513_v53 = vld [vmem:[#allocation8 + $0x68] sm:$0xff] }
 0x87b   :  { %13125 = vpow2.f32 %v10193_v19  ;;  %v4757_v19 = vrot.slane %v4750_v43, %v13639_v18 }
 0x87d   :  { %v4489_v63 = vpop.f32.mrb[46].mxu0 }
 0x87e   :  { %v11481_v22 = vpop.f32.mrb[47].mxu0  ;;  %v4490_v29 = vadd.f32 %v14238_v0, %v4489_v63 }
 0x884   :  { %v13124_v40 = vpop.eup %13123 }
 0x885   :  { %v4413_v60 = vadd.f32 1.0, %v13124_v40  ;;  %v13126_v26 = vpop.eup %13125  ;;  %v4805_v40 = vrot.slane %v4798_v55, %v13639_v18  ;;  %v5512_v55 = vld [vmem:[#allocation8 + $0x60] sm:$0xff] }
 0x886   :  { %v4420_v12 = vadd.f32 1.0, %v13126_v26  ;;  %v12602_v37 = vpack.c.bf16 %v5513_v53, %v5512_v55  ;;  %v6193_v55 = vld [vmem:[#allocation11 + $0xa0] sm:$0xff]  ;;  %v6194_v53 = vld [vmem:[#allocation11 + $0xa8] sm:$0xff] }
 0x887   :  { %13127 = vrcp.f32 %v4413_v60  ;;  %v4814_v60 = vcombine.low %v4813_v10, %v4813_v10  ;;  %v5301_v10 = vld [vmem:[#allocation8 + $0x58] sm:$0xff] }
 0x88e   :  { %v4568_v3 = vpop.f32.mrb[54].mxu1  ;;  %v4638_v51 = vpop.f32.mrb[48].mxu0 }
 0x88f   :  { %v4642_v14 = vadd.f32 %v4568_v3, %v14314_v45  ;;  %v11492_v6 = vpop.f32.mrb[55].mxu1  ;;  %v11503_v1 = vpop.f32.mrb[49].mxu0  ;;  %v4649_v31 = vadd.f32 %v4638_v51, %v14323_v49 }
 0x890   :  { %v4824_v1 = vcombine.low %v4823_v27, %v4823_v27 }
 0x891   :  { %v13128_v59 = vpop.eup %13127  ;;  %v10197_v9 = vmul.f32 -1.442695, %v4642_v14  ;;  %v10198_v45 = vmul.f32 -1.442695, %v4649_v31  ;;  %v4862_v14 = vld [vmem:[#allocation8 + $0x10] sm:$0xff]  ;;  %v4790_v31 = vsel %vm4789_vm2, %v13858_v24, %v4739_v58 }
 0x892   :  { %v4493_v15 = vmul.f32 %v13128_v59, %v4490_v29  ;;  %v4863_v29 = vld [vmem:[#allocation8 + $0x18] sm:$0xff]  ;;  %v5086_v59 = vld [vmem:[#allocation8 + $0x30] sm:$0xff] }
 0x893   :  { %13129 = vpow2.f32 %v10197_v9  ;;  %v5087_v9 = vld [vmem:[#allocation8 + $0x38] sm:$0xff] }
 0x894   :  { %v4494_v13 = vadd.f32 %v4493_v15, %v558_v23  ;;  %v4758_v15 = vcombine.low %v4757_v19, %v4757_v19  ;;  %v5945_v19 = vld [vmem:[#allocation9 + $0xa0] sm:$0xff] }
 0x896   :  { %13131 = vtanh.f32 %v4494_v13  ;;  %v4722_v34 = vpop.f32.mrb[56].mxu1 }
 0x897   :  { %v11514_v11 = vpop.f32.mrb[57].mxu1  ;;  %13133 = vrcp.f32 %v4420_v12  ;;  %v4723_v7 = vadd.f32 %v14348_v4, %v4722_v34  ;;  %v4841_v4 = vrot.slane %v13955_v47, %v13639_v18  ;;  %v4851_v47 = vrot.slane %v4844_v21, %v13639_v18 }
 0x898   :  { %13135 = vpow2.f32 %v10198_v45  ;;  %v4760_v12 = vcombine.low %v14245_v38, %v14245_v38  ;;  %v5303_v11 = vld [vmem:[#allocation9 + $0x40] sm:$0xff]  ;;  %v4775_v45 = vrot.slane %v14332_v5, %v13639_v18  ;;  %v12558_v38 = vpack.c.bf16 %v4863_v29, %v4862_v14  ;;  %v5948_v14 = vld [vmem:[#allocation9 + $0xb8] sm:$0xff]  ;;  %v5941_v29 = vld [vmem:[#allocation8 + $0xa8] sm:$0xff] }
 0x899   :  { %v4842_v22 = vcombine.low %v4841_v4, %v4841_v4  ;;  %v4852_v3 = vcombine.low %v4851_v47, %v4851_v47  ;;  %v5514_v47 = vld [vmem:[#allocation8 + $0x70] sm:$0xff] }
 0x89b   :  { %v4858_v51 = vsel %vm4791_vm3, %v4857_v20, %v4842_v22  ;;  %v5732_v22 = vld [vmem:[#allocation9 + $0x88] sm:$0xff] }
 0x89c   :  { %v14442_v34 = vsel %vm4793_vm4, %v4858_v51, %v4852_v3  ;;  %v5734_v3 = vld [vmem:[#allocation9 + $0x98] sm:$0xff]  ;;  %v5947_v51 = vld [vmem:[#allocation9 + $0xb0] sm:$0xff] }
 0x89d   :  { %v13130_v33 = vpop.eup %13129 }
 0x89e   :  { %v4646_v36 = vadd.f32 1.0, %v13130_v33  ;;  %v12574_v33 = vpack.c.bf16 %v5087_v9, %v5086_v59 }
 0x8a0   :  { %v13132_v0 = vpop.eup %13131  ;;  %13137 = vrcp.f32 %v4646_v36  ;;  %v5304_v36 = vld [vmem:[#allocation9 + $0x48] sm:$0xff] }
 0x8a1   :  { %v4496_v32 = vsub.f32 %v14332_v5, %v13132_v0  ;;  %v13134_v17 = vpop.eup %13133 }
 0x8a2   :  { %v13136_v35 = vpop.eup %13135 }
 0x8a3   :  { %v4497_v50 = vmul.f32 %v13134_v17, %v4496_v32  ;;  %v4653_v49 = vadd.f32 1.0, %v13136_v35  ;;  %v5518_v32 = vld [vmem:[#allocation9 + $0x68] sm:$0xff]  ;;  %v12578_v35 = vpack.c.bf16 %v5304_v36, %v5303_v11 }
 0x8a4   :  { %v6174_v36 = vld [vmem:[#allocation11 + $0x28] sm:$0xff] }
 0x8a5   :  { %v14399_v16 = vadd.f32 %v13132_v0, %v4497_v50  ;;  %v5517_v0 = vld [vmem:[#allocation9 + $0x60] sm:$0xff]  ;;  %v4767_v50 = vrot.slane %v4760_v12, %v13639_v18  ;;  %v5942_v12 = vld [vmem:[#allocation8 + $0xb0] sm:$0xff] }
 0x8a7   :  { %v4779_v28 = vcombine.low %v14399_v16, %v14399_v16  ;;  %v4795_v57 = vsel %vm4789_vm2, %v14171_v56, %v4767_v50  ;;  %v6176_v50 = vld [vmem:[#allocation11 + $0x38] sm:$0xff] }
 0x8a9   :  { %v4786_v17 = vrot.slane %v4779_v28, %v13639_v18 }
 0x8aa   :  { %v13138_v39 = vpop.eup %13137 }
 0x8ab   :  { %v4726_v41 = vmul.f32 %v13138_v39, %v4723_v7  ;;  %v12594_v7 = vpack.c.bf16 %v5518_v32, %v5517_v0  ;;  %v4776_v39 = vcombine.low %v4775_v45, %v4775_v45  ;;  %v6170_v32 = vld [vmem:[#allocation11 + $0x10] sm:$0xff] }
 0x8ad   :  { %v4727_v8 = vadd.f32 %v4726_v41, %v14336_v2  ;;  %v4787_v41 = vcombine.low %v4786_v17, %v4786_v17  ;;  %v4796_v21 = vsel %vm4791_vm3, %v4795_v57, %v4776_v39  ;;  %v6171_v17 = vld [vmem:[#allocation11 + $0x18] sm:$0xff]  ;;  %v6179_v39 = vld [vmem:[#allocation11 + $0x48] sm:$0xff] }
 0x8ae   :  { %v6181_v57 = vld [vmem:[#allocation11 + $0x58] sm:$0xff] }
 0x8af   :  { %13139 = vtanh.f32 %v4727_v8  ;;  %v5520_v8 = vld [vmem:[#allocation9 + $0x78] sm:$0xff] }
 0x8b0   :  { %13141 = vrcp.f32 %v4653_v49  ;;  %v5306_v49 = vld [vmem:[#allocation9 + $0x58] sm:$0xff] }
 0x8b9   :  { %v13140_v44 = vpop.eup %13139 }
 0x8ba   :  { %v4729_v2 = vsub.f32 %v14370_v52, %v13140_v44  ;;  %v13142_v25 = vpop.eup %13141  ;;  %v4747_v52 = vrot.slane %v14013_v46, %v13639_v18 }
 0x8bc   :  { %v4730_v63 = vmul.f32 %v13142_v25, %v4729_v2  ;;  %v4748_v26 = vcombine.low %v4747_v52, %v4747_v52  ;;  %v5299_v2 = vld [vmem:[#allocation8 + $0x48] sm:$0xff]  ;;  %v5300_v25 = vld [vmem:[#allocation8 + $0x50] sm:$0xff]  ;;  %v5731_v52 = vld [vmem:[#allocation9 + $0x80] sm:$0xff] }
 0x8bd   :  { %v12586_v56 = vpack.c.bf16 %v5299_v2, %v5298_v30  ;;  %v12590_v27 = vpack.c.bf16 %v5301_v10, %v5300_v25  ;;  %v6186_v30 = vld [vmem:[#allocation11 + $0x78] sm:$0xff]  ;;  %v6189_v2 = vld [vmem:[#allocation11 + $0x88] sm:$0xff]  ;;  %v14556_v10 = vpack.c.bf16 %v6194_v53, %v6193_v55 }
 0x8be   :  { %v4731_v62 = vadd.f32 %v13140_v44, %v4730_v63  ;;  %v4792_v24 = vsel %vm4791_vm3, %v4790_v31, %v4748_v26  ;;  %v14472_v44 = vsel %vm4793_vm4, %v4796_v21, %v4787_v41  ;;  %v5515_v63 = vld [vmem:[#allocation8 + $0x78] sm:$0xff]  ;;  %v5940_v26 = vld [vmem:[#allocation8 + $0xa0] sm:$0xff]  ;;  %v6185_v21 = vld [vmem:[#allocation11 + $0x70] sm:$0xff] }
 0x8bf   :  { %v14461_v5 = vsel %vm4793_vm4, %v4792_v24, %v4758_v15  ;;  %v12606_v20 = vpack.c.bf16 %v5515_v63, %v5514_v47  ;;  %v12634_v9 = vpack.c.bf16 %v5941_v29, %v5940_v26  ;;  %v5729_v15 = vld [vmem:[#allocation8 + $0x98] sm:$0xff]  ;;  %v6175_v24 = vld [vmem:[#allocation11 + $0x30] sm:$0xff]  ;;  %v6183_v41 = vld [vmem:[#allocation11 + $0x60] sm:$0xff] }
 0x8c0   :  { %v9926_v6 = vrot.slane %v4731_v62, %v13639_v18  ;;  %v4854_v46 = vsel %vm4789_vm2, %v4731_v62, %v4805_v40  ;;  %v5946_v62 = vld [vmem:[#allocation9 + $0xa8] sm:$0xff]  ;;  %v12610_v40 = vpack.c.bf16 %v5732_v22, %v5731_v52  ;;  %v5943_v31 = vld [vmem:[#allocation8 + $0xb8] sm:$0xff]  ;;  %v6195_v47 = vld [vmem:[#allocation11 + $0xb0] sm:$0xff] }
 0x8c1   :  { %v4855_v23 = vsel %vm4791_vm3, %v4854_v46, %v4814_v60  ;;  %v12626_v58 = vpack.c.bf16 %v5946_v62, %v5945_v19  ;;  %v5733_v60 = vld [vmem:[#allocation9 + $0x90] sm:$0xff]  ;;  %v5727_v46 = vld [vmem:[#allocation8 + $0x88] sm:$0xff]  ;;  %v12638_v45 = vpack.c.bf16 %v5943_v31, %v5942_v12  ;;  %v6191_v25 = vld [vmem:[#allocation11 + $0x98] sm:$0xff] }
 0x8c2   :  { %9927 = vrot.lane.b32.xlu0 %v9926_v6, %s13464_s4  ;;  %v14439_v13 = vsel %vm4793_vm4, %v4855_v23, %v4824_v1  ;;  %v12614_v28 = vpack.c.bf16 %v5734_v3, %v5733_v60  ;;  %v5726_v6 = vld [vmem:[#allocation8 + $0x80] sm:$0xff]  ;;  %v12630_v1 = vpack.c.bf16 %v5948_v14, %v5947_v51  ;;  %v5728_v23 = vld [vmem:[#allocation8 + $0x90] sm:$0xff]  ;;  %v6196_v63 = vld [vmem:[#allocation11 + $0xb8] sm:$0xff] }
 0x8c3   :  { %11523 = vmatprep.mubr.msk.f32.mxu0 %vm179_vm0, %v14439_v13  ;;  %11545 = vmatprep.mubr.msk.f32.mxu1 %vm179_vm0, %v14439_v13  ;;  %v12618_v59 = vpack.c.bf16 %v5727_v46, %v5726_v6  ;;  %v12622_v11 = vpack.c.bf16 %v5729_v15, %v5728_v23  ;;  %v10204_v52 = vld [vmem:[%s15300_s8] ss:$0 sm:$0xff]  ;;  %v10210_v22 = vld [vmem:[%s15300_s8 + $0x1] ss:$0 sm:$0xff]  ;;  %v10216_v51 = vld [vmem:[%s15300_s8 + $0x2] ss:$0 sm:$0xff] }
 0x8c4   :  { %11524 = vmatmul.mubr.msk.f32.vlgmr.msra.gmra.mrb[50].mxu0 %vm179_vm0, %v14442_v34  ;;  %11546 = vmatmul.mubr.msk.f32.vlgmr.msra.gmra.mrb[58].mxu1 %vm179_vm0, %v14442_v34  ;;  %v10234_v23 = vld [vmem:[%s15300_s8 + $0x5] ss:$0 sm:$0xff] }
 0x8c5   :  { %12557 = vmatpush3.bf16.msra.mxu0 %v14383_v61  ;;  %12573 = vmatpush3.bf16.msra.mxu1 %v14385_v42  ;;  %v5305_v61 = vld [vmem:[#allocation9 + $0x50] sm:$0xff] }
 0x8c6   :  { %11534 = vmatprep.mubr.msk.f32.mxu0 %vm179_vm0, %v14461_v5  ;;  %11556 = vmatprep.mubr.msk.f32.mxu1 %vm179_vm0, %v14461_v5  ;;  %v5519_v42 = vld [vmem:[#allocation9 + $0x70] sm:$0xff]  ;;  %v12582_v4 = vpack.c.bf16 %v5306_v49, %v5305_v61  ;;  %v6184_v61 = vld [vmem:[#allocation11 + $0x68] sm:$0xff] }
 0x8c7   :  { %12559 = vmatprep.subr.bf16.mxu0 %v12558_v38  ;;  %12575 = vmatprep.subr.bf16.mxu1 %v12574_v33  ;;  %v12598_v43 = vpack.c.bf16 %v5520_v8, %v5519_v42  ;;  %v14533_v42 = vpack.c.bf16 %v6184_v61, %v6183_v41  ;;  %v6180_v8 = vld [vmem:[#allocation11 + $0x50] sm:$0xff] }
 0x8c9   :  { %12561 = vmatpush3.bf16.msra.mxu0 %v12558_v38  ;;  %12577 = vmatpush3.bf16.msra.mxu1 %v12574_v33  ;;  %v6169_v38 = vld [vmem:[#allocation11 + $0x8] sm:$0xff]  ;;  %v6173_v33 = vld [vmem:[#allocation11 + $0x20] sm:$0xff] }
 0x8ca   :  { %12579 = vmatprep.subr.bf16.mxu0 %v12578_v35  ;;  %12595 = vmatprep.subr.bf16.mxu1 %v12594_v7 }
 0x8cc   :  { %11535 = vmatmul.mubr.msk.f32.vlgmr.msra.gmra.mrb[50].mxu0 %vm179_vm0, %v14472_v44  ;;  %11557 = vmatmul.mubr.msk.f32.vlgmr.msra.gmra.mrb[58].mxu1 %vm179_vm0, %v14472_v44 }
 0x8cd   :  { %12581 = vmatpush3.bf16.msra.mxu0 %v12578_v35  ;;  %12597 = vmatpush3.bf16.msra.mxu1 %v12594_v7  ;;  %v14521_v35 = vpack.c.bf16 %v6176_v50, %v6175_v24  ;;  %v6178_v7 = vld [vmem:[#allocation11 + $0x40] sm:$0xff] }
 0x8ce   :  { %11567 = vmatprep.mubr.msk.f32.mxu0 %vm179_vm0, %v14439_v13  ;;  %11589 = vmatprep.mubr.msk.f32.mxu1 %vm179_vm0, %v14439_v13  ;;  %v14529_v49 = vpack.c.bf16 %v6179_v39, %v6178_v7 }
 0x8cf   :  { %12583 = vmatprep.subr.bf16.mxu0 %v12582_v4  ;;  %12599 = vmatprep.subr.bf16.mxu1 %v12598_v43 }
 0x8d1   :  { %12585 = vmatpush3.bf16.msra.mxu0 %v12582_v4  ;;  %12601 = vmatpush3.bf16.msra.mxu1 %v12598_v43  ;;  %v14543_v4 = vpack.c.bf16 %v6186_v30, %v6185_v21  ;;  %v6188_v43 = vld [vmem:[#allocation11 + $0x80] sm:$0xff] }
 0x8d2   :  { %12587 = vmatprep.subr.bf16.mxu0 %v12586_v56  ;;  %12603 = vmatprep.subr.bf16.mxu1 %v12602_v37 }
 0x8d4   :  { %11568 = vmatmul.mubr.msk.f32.vlgmr.msra.gmra.mrb[52].mxu0 %vm179_vm0, %v14442_v34  ;;  %11590 = vmatmul.mubr.msk.f32.vlgmr.msra.gmra.mrb[60].mxu1 %vm179_vm0, %v14442_v34 }
 0x8d5   :  { %12589 = vmatpush3.bf16.msra.mxu0 %v12586_v56  ;;  %11578 = vmatprep.mubr.msk.f32.mxu0 %vm179_vm0, %v14461_v5  ;;  %v14551_v56 = vpack.c.bf16 %v6189_v2, %v6188_v43 }
 0x8d6   :  { %12605 = vmatpush3.bf16.msra.mxu1 %v12602_v37  ;;  %11600 = vmatprep.mubr.msk.f32.mxu1 %vm179_vm0, %v14461_v5  ;;  %v6190_v37 = vld [vmem:[#allocation11 + $0x90] sm:$0xff] }
 0x8d7   :  { %12591 = vmatprep.subr.bf16.mxu0 %v12590_v27  ;;  %12607 = vmatprep.subr.bf16.mxu1 %v12606_v20 }
 0x8d9   :  { %12593 = vmatpush3.bf16.msra.mxu0 %v12590_v27  ;;  %v14561_v27 = vpack.c.bf16 %v6191_v25, %v6190_v37 }
 0x8da   :  { %12609 = vmatpush3.bf16.msra.mxu1 %v12606_v20  ;;  %12611 = vmatprep.subr.bf16.mxu0 %v12610_v40  ;;  %v14567_v20 = vpack.c.bf16 %v6196_v63, %v6195_v47 }
 0x8db   :  { %12627 = vmatprep.subr.bf16.mxu1 %v12626_v58 }
 0x8dc   :  { %11579 = vmatmul.mubr.msk.f32.vlgmr.msra.gmra.mrb[52].mxu0 %vm179_vm0, %v14472_v44 }
 0x8dd   :  { %11601 = vmatmul.mubr.msk.f32.vlgmr.msra.gmra.mrb[60].mxu1 %vm179_vm0, %v14472_v44  ;;  %12613 = vmatpush3.bf16.msra.mxu0 %v12610_v40 }
 0x8de   :  { %11611 = vmatprep.mubr.msk.f32.mxu0 %vm179_vm0, %v14439_v13  ;;  %12629 = vmatpush3.bf16.msra.mxu1 %v12626_v58 }
 0x8df   :  { %11633 = vmatprep.mubr.msk.f32.mxu1 %vm179_vm0, %v14439_v13  ;;  %12615 = vmatprep.subr.bf16.mxu0 %v12614_v28  ;;  %v6168_v13 = vld [vmem:[#allocation11] sm:$0xff] }
 0x8e0   :  { %12631 = vmatprep.subr.bf16.mxu1 %v12630_v1  ;;  %v14506_v0 = vpack.c.bf16 %v6169_v38, %v6168_v13 }
 0x8e1   :  { %12617 = vmatpush3.bf16.msra.mxu0 %v12614_v28  ;;  %v10222_v28 = vld [vmem:[%s15300_s8 + $0x3] ss:$0 sm:$0xff] }
 0x8e2   :  { %12633 = vmatpush3.bf16.msra.mxu1 %v12630_v1  ;;  %12619 = vmatprep.subr.bf16.mxu0 %v12618_v59 }
 0x8e3   :  { %12635 = vmatprep.subr.bf16.mxu1 %v12634_v9 }
 0x8e4   :  { %11612 = vmatmul.mubr.msk.f32.vlgmr.msra.gmra.mrb[54].mxu0 %vm179_vm0, %v14442_v34 }
 0x8e5   :  { %11634 = vmatmul.mubr.msk.f32.vlgmr.msra.gmra.mrb[62].mxu1 %vm179_vm0, %v14442_v34  ;;  %12621 = vmatpush3.bf16.msra.mxu0 %v12618_v59  ;;  %v14509_v34 = vpack.c.bf16 %v6174_v36, %v6173_v33  ;;  %v10228_v59 = vld [vmem:[%s15300_s8 + $0x4] ss:$0 sm:$0xff] }
 0x8e6   :  { %11622 = vmatprep.mubr.msk.f32.mxu0 %vm179_vm0, %v14461_v5  ;;  %12637 = vmatpush3.bf16.msra.mxu1 %v12634_v9 }
 0x8e7   :  { %11644 = vmatprep.mubr.msk.f32.mxu1 %vm179_vm0, %v14461_v5  ;;  %12623 = vmatprep.subr.bf16.mxu0 %v12622_v11  ;;  %v14517_v5 = vpack.c.bf16 %v6171_v17, %v6170_v32 }
 0x8e8   :  { %12639 = vmatprep.subr.bf16.mxu1 %v12638_v45 }
 0x8e9   :  { %12625 = vmatpush3.bf16.msra.mxu0 %v12622_v11 }
 0x8ea   :  { %12641 = vmatpush3.bf16.msra.mxu1 %v12638_v45  ;;  %12642 = vmatprep.subr.bf16.mxu0 %v13461_v48 }
 0x8eb   :  { %12648 = vmatprep.subr.bf16.mxu1 %v13461_v48 }
 0x8ec   :  { %11623 = vmatmul.mubr.msk.f32.vlgmr.msra.gmra.mrb[54].mxu0 %vm179_vm0, %v14472_v44 }
 0x8ed   :  { %11645 = vmatmul.mubr.msk.f32.vlgmr.msra.gmra.mrb[62].mxu1 %vm179_vm0, %v14472_v44  ;;  %12644 = vmatpush3.bf16.msra.mxu0 %v14506_v0  ;;  %v14539_v44 = vpack.c.bf16 %v6181_v57, %v6180_v8 }
 0x8ee   :  { %12650 = vmatpush3.bf16.msra.mxu1 %v14509_v34  ;;  %12645 = vmatprep.subr.bf16.mxu0 %v13461_v48 }
 0x8ef   :  { %12651 = vmatprep.subr.bf16.mxu1 %v13461_v48  ;;  %11655 = vmatprep.mubr.msk.f32.mxu0 %vm13462_vm1, %v13463_v54 }
 0x8f0   :  { %11666 = vmatprep.mubr.msk.f32.mxu1 %vm13462_vm1, %v13463_v54 }
 0x8f1   :  { %12647 = vmatpush3.bf16.msra.mxu0 %v14517_v5 }
 0x8f2   :  { %12653 = vmatpush3.bf16.msra.mxu1 %v14521_v35  ;;  %12654 = vmatprep.subr.bf16.mxu0 %v13461_v48 }
 0x8f3   :  { %12660 = vmatprep.subr.bf16.mxu1 %v13461_v48 }
 0x8f4   :  { %11656 = vmatmul.mubr.f32.vlgmr.msra.gmra.mrb[56].mxu0 %v13463_v54 }
 0x8f5   :  { %11667 = vmatmul.mubr.f32.vlgmr.msra.gmra.mrb[64].mxu1 %v13463_v54  ;;  %12656 = vmatpush3.bf16.msra.mxu0 %v14529_v49 }
 0x8f6   :  { %12662 = vmatpush3.bf16.msra.mxu1 %v14533_v42  ;;  %12657 = vmatprep.subr.bf16.mxu0 %v13461_v48 }
 0x8f7   :  { %12663 = vmatprep.subr.bf16.mxu1 %v13461_v48  ;;  %11688 = vmatprep.mubr.msk.f32.mxu1 %vm13462_vm1, %v13463_v54 }
 0x8f8   :  { %11677 = vmatprep.mubr.msk.f32.mxu0 %vm13462_vm1, %v13463_v54 }
 0x8f9   :  { %12659 = vmatpush3.bf16.msra.mxu0 %v14539_v44 }
 0x8fa   :  { %12665 = vmatpush3.bf16.msra.mxu1 %v14543_v4  ;;  %12666 = vmatprep.subr.bf16.mxu0 %v13461_v48 }
 0x8fb   :  { %12672 = vmatprep.subr.bf16.mxu1 %v13461_v48 }
 0x8fc   :  { %11678 = vmatmul.mubr.f32.vlgmr.msra.gmra.mrb[58].mxu0 %v13463_v54 }
 0x8fd   :  { %11689 = vmatmul.mubr.f32.vlgmr.msra.gmra.mrb[66].mxu1 %v13463_v54  ;;  %12668 = vmatpush3.bf16.msra.mxu0 %v14551_v56 }
 0x8fe   :  { %12669 = vmatprep.subr.bf16.mxu0 %v13461_v48  ;;  %11699 = vmatprep.mubr.msk.f32.mxu0 %vm13462_vm1, %v13463_v54 }
 0x8ff   :  { %12674 = vmatpush3.bf16.msra.mxu1 %v14556_v10  ;;  %11710 = vmatprep.mubr.msk.f32.mxu1 %vm13462_vm1, %v13463_v54 }
 0x900   :  { %12675 = vmatprep.subr.bf16.mxu1 %v13461_v48 }
 0x901   :  { %12671 = vmatpush3.bf16.msra.mxu0 %v14561_v27 }
 0x902   :  { %12678 = vmatprep.subr.bf16.mxu0 %v13461_v48 }
 0x903   :  { %12677 = vmatpush3.bf16.msra.mxu1 %v14567_v20 }
 0x904   :  { %11700 = vmatmul.mubr.f32.vlgmr.msra.gmra.mrb[60].mxu0 %v13463_v54  ;;  %12684 = vmatprep.subr.bf16.mxu1 %v13461_v48 }
 0x905   :  { %12680 = vmatpush3.bf16.msra.mxu0 %v14506_v0  ;;  %11721 = vmatprep.mubr.msk.f32.mxu0 %vm13462_vm1, %v13463_v54 }
 0x906   :  { %11711 = vmatmul.mubr.f32.vlgmr.msra.gmra.mrb[68].mxu1 %v13463_v54  ;;  %12681 = vmatprep.subr.bf16.mxu0 %v13461_v48 }
 0x907   :  { %12686 = vmatpush3.bf16.msra.mxu1 %v14509_v34  ;;  %11732 = vmatprep.mubr.msk.f32.mxu1 %vm13462_vm1, %v13463_v54 }
 0x908   :  { %12687 = vmatprep.subr.bf16.mxu1 %v13461_v48 }
 0x909   :  { %12683 = vmatpush3.bf16.msra.mxu0 %v14517_v5 }
 0x90a   :  { %12690 = vmatprep.subr.bf16.mxu0 %v13461_v48 }
 0x90b   :  { %12689 = vmatpush3.bf16.msra.mxu1 %v14521_v35 }
 0x90c   :  { %12696 = vmatprep.subr.bf16.mxu1 %v13461_v48 }
 0x99f   :  { %v11536_v19 = vpop.f32.mrb[50].mxu0  ;;  %v11558_v62 = vpop.f32.mrb[58].mxu1 }
 0x9a0   :  { %v14596_v40 = vadd.f32 %v11536_v19, %v10204_v52  ;;  %v14598_v58 = vadd.f32 %v11558_v62, %v10210_v22  ;;  %v5021_v60 = vpop.f32.mrb[51].mxu0  ;;  %v5234_v3 = vpop.f32.mrb[59].mxu1 }
 0x9a1   :  { %v14618_v45 = vadd.f32 %v10204_v52, %v5021_v60  ;;  %v14622_v38 = vadd.f32 %v10210_v22, %v5234_v3 }
 0x9a3   :  { %v14628_v36 = vrot.slane %v14618_v45, %v13639_v18  ;;  %v14634_v24 = vrot.slane %v14622_v38, %v13639_v18 }
 0x9af   :  { %v11580_v14 = vpop.f32.mrb[52].mxu0 }
 0x9b0   :  { %v14606_v6 = vadd.f32 %v11580_v14, %v10216_v51  ;;  %v11602_v46 = vpop.f32.mrb[60].mxu1  ;;  %v5448_v1 = vpop.f32.mrb[53].mxu0 }
 0x9b1   :  { %v5662_v26 = vpop.f32.mrb[61].mxu1  ;;  %v14624_v33 = vadd.f32 %v11602_v46, %v10222_v28 }
 0x9b2   :  { %v14608_v29 = vadd.f32 %v10222_v28, %v5662_v26 }
 0x9b3   :  { %v5700_v32 = vcombine.high %v14624_v33, %v14624_v33 }
 0x9b5   :  { %v14641_v21 = vrot.slane %v5700_v32, %v13639_v18 }
 0x9b7   :  { %v5716_v43 = vcombine.high %v14641_v21, %v14641_v21 }
 0x9bf   :  { %v11624_v9 = vpop.f32.mrb[54].mxu0 }
 0x9c0   :  { %v11646_v15 = vpop.f32.mrb[62].mxu1  ;;  %v5876_v12 = vpop.f32.mrb[55].mxu0  ;;  %v14638_v57 = vadd.f32 %v11624_v9, %v10228_v59  ;;  %v14655_v9 = vld [vmem:[%s15301_s9] ss:$0 sm:$0xff] }
 0x9c1   :  { %v14616_v31 = vadd.f32 %v10228_v59, %v5876_v12  ;;  %v6090_v11 = vpop.f32.mrb[63].mxu1  ;;  %v14657_v12 = vadd.f32 %v10216_v51, %v5448_v1  ;;  %v14659_v32 = vadd.f32 %v11646_v15, %v10234_v23  ;;  %v14672_v1 = vld [vmem:[%s15301_s9 + $0x1] ss:$0 sm:$0xff] }
 0x9c2   :  { %v14620_v13 = vadd.f32 %v10234_v23, %v6090_v11  ;;  %v5914_v30 = vcombine.high %v14638_v57, %v14638_v57 }
 0x9c4   :  { %v14648_v63 = vrot.slane %v5914_v30, %v13639_v18 }
 0x9c6   :  { %v5930_v62 = vcombine.high %v14648_v63, %v14648_v63 }
 0x9c7   :  { %v6263_v17 = vpop.f32.mrb[56].mxu0 }
 0x9c8   :  { %v6337_v50 = vadd.f32 %v6263_v17, %v14628_v36  ;;  %v6333_v7 = vpop.f32.mrb[64].mxu1  ;;  %v11657_v39 = vpop.f32.mrb[57].mxu0 }
 0x9c9   :  { %v6344_v41 = vadd.f32 %v6333_v7, %v14634_v24  ;;  %v11668_v61 = vpop.f32.mrb[65].mxu1  ;;  %v14664_v39 = vrot.slane %v14657_v12, %v13639_v18 }
 0x9ca   :  { %v10238_v8 = vmul.f32 -1.442695, %v6337_v50  ;;  %v6128_v61 = vcombine.high %v14659_v32, %v14659_v32 }
 0x9cb   :  { %v10239_v52 = vmul.f32 -1.442695, %v6344_v41 }
 0x9cc   :  { %13143 = vpow2.f32 %v10238_v8  ;;  %v14675_v23 = vrot.slane %v6128_v61, %v13639_v18 }
 0x9cf   :  { %v6417_v2 = vpop.f32.mrb[58].mxu0 }
 0x9d0   :  { %v6493_v55 = vpop.f32.mrb[66].mxu1  ;;  %v11679_v53 = vpop.f32.mrb[59].mxu0  ;;  %v6418_v50 = vadd.f32 %v14655_v9, %v6417_v2  ;;  %v6144_v2 = vcombine.high %v14675_v23, %v14675_v23 }
 0x9d1   :  { %v6567_v37 = vadd.f32 %v6493_v55, %v5716_v43  ;;  %v11690_v25 = vpop.f32.mrb[67].mxu1 }
 0x9d3   :  { %v10240_v47 = vmul.f32 -1.442695, %v6567_v37 }
 0x9d5   :  { %13145 = vpow2.f32 %v10240_v47 }
 0x9d6   :  { %v13144_v22 = vpop.eup %13143  ;;  %13147 = vpow2.f32 %v10239_v52 }
 0x9d7   :  { %v6341_v19 = vadd.f32 1.0, %v13144_v22  ;;  %v6563_v60 = vpop.f32.mrb[60].mxu0 }
 0x9d8   :  { %v11701_v3 = vpop.f32.mrb[61].mxu0  ;;  %v6574_v14 = vadd.f32 %v6563_v60, %v5930_v62 }
 0x9d9   :  { %13149 = vrcp.f32 %v6341_v19  ;;  %v6647_v28 = vpop.f32.mrb[68].mxu1 }
 0x9da   :  { %v11712_v46 = vpop.f32.mrb[69].mxu1  ;;  %v10241_v26 = vmul.f32 -1.442695, %v6574_v14  ;;  %v6648_v15 = vadd.f32 %v14672_v1, %v6647_v28 }
 0x9db   :  { %v5056_v46 = vcombine.high %v14628_v36, %v14628_v36 }
 0x9dc   :  { %13151 = vpow2.f32 %v10241_v26  ;;  %v5270_v26 = vcombine.high %v14634_v24, %v14634_v24 }
 0x9df   :  { %v13146_v59 = vpop.eup %13145 }
 0x9e0   :  { %v6571_v11 = vadd.f32 1.0, %v13146_v59  ;;  %v13148_v17 = vpop.eup %13147 }
 0x9e1   :  { %v6348_v8 = vadd.f32 1.0, %v13148_v17 }
 0x9e2   :  { %13153 = vrcp.f32 %v6571_v11 }
 0x9e3   :  { %v13150_v7 = vpop.eup %13149 }
 0x9e4   :  { %v6421_v41 = vmul.f32 %v13150_v7, %v6418_v50 }
 0x9e6   :  { %v6422_v51 = vadd.f32 %v6421_v41, %v14664_v39  ;;  %v13152_v30 = vpop.eup %13151 }
 0x9e7   :  { %v6578_v53 = vadd.f32 1.0, %v13152_v30 }
 0x9e8   :  { %13155 = vtanh.f32 %v6422_v51 }
 0x9e9   :  { %13157 = vrcp.f32 %v6348_v8 }
 0x9ec   :  { %v13154_v43 = vpop.eup %13153 }
 0x9ed   :  { %v6651_v55 = vmul.f32 %v13154_v43, %v6648_v15 }
 0x9ef   :  { %v6652_v37 = vadd.f32 %v6651_v55, %v6144_v2 }
 0x9f1   :  { %13159 = vtanh.f32 %v6652_v37 }
 0x9f2   :  { %v13156_v25 = vpop.eup %13155  ;;  %13161 = vrcp.f32 %v6578_v53 }
 0x9f3   :  { %v6424_v47 = vsub.f32 0.0, %v13156_v25  ;;  %v13158_v52 = vpop.eup %13157 }
 0x9f5   :  { %v6425_v22 = vmul.f32 %v13158_v52, %v6424_v47 }
 0x9f7   :  { %v14680_v19 = vadd.f32 %v13156_v25, %v6425_v22 }
 0x9f9   :  { %11722 = vmatmul.mubr.msk.f32.vlgmr.msra.gmra.mrb[62].mxu0 %vm179_vm0, %v14680_v19  ;;  %11733 = vmatmul.mubr.msk.f32.vlgmr.msra.gmra.mrb[70].mxu1 %vm179_vm0, %v14680_v19 }
 0x9fa   :  { %12692 = vmatpush3.bf16.msra.mxu0 %v14529_v49  ;;  %12698 = vmatpush3.bf16.msra.mxu1 %v14533_v42 }
 0x9fb   :  { %v13160_v62 = vpop.eup %13159  ;;  %12693 = vmatprep.subr.bf16.mxu0 %v13461_v48  ;;  %12699 = vmatprep.subr.bf16.mxu1 %v13461_v48 }
 0x9fc   :  { %11743 = vmatprep.mubr.msk.f32.mxu0 %vm13462_vm1, %v13463_v54  ;;  %11754 = vmatprep.mubr.msk.f32.mxu1 %vm13462_vm1, %v13463_v54  ;;  %v6654_v60 = vsub.f32 0.0, %v13160_v62  ;;  %v13162_v3 = vpop.eup %13161 }
 0x9fe   :  { %12695 = vmatpush3.bf16.msra.mxu0 %v14539_v44  ;;  %12701 = vmatpush3.bf16.msra.mxu1 %v14543_v4  ;;  %v6655_v14 = vmul.f32 %v13162_v3, %v6654_v60 }
 0x9ff   :  { %12702 = vmatprep.subr.bf16.mxu0 %v13461_v48  ;;  %12708 = vmatprep.subr.bf16.mxu1 %v13461_v48 }
 0xa00   :  { %v14698_v28 = vadd.f32 %v13160_v62, %v6655_v14 }
 0xa01   :  { %11744 = vmatmul.mubr.msk.f32.vlgmr.msra.gmra.mrb[64].mxu0 %vm179_vm0, %v14680_v19 }
 0xa02   :  { %11755 = vmatmul.mubr.msk.f32.vlgmr.msra.gmra.mrb[72].mxu1 %vm179_vm0, %v14698_v28  ;;  %12704 = vmatpush3.bf16.msra.mxu0 %v14551_v56 }
 0xa03   :  { %12710 = vmatpush3.bf16.msra.mxu1 %v14556_v10  ;;  %12705 = vmatprep.subr.bf16.mxu0 %v13461_v48 }
 0xa04   :  { %12711 = vmatprep.subr.bf16.mxu1 %v13461_v48  ;;  %11765 = vmatprep.mubr.msk.f32.mxu0 %vm13462_vm1, %v13463_v54 }
 0xa05   :  { %11776 = vmatprep.mubr.msk.f32.mxu1 %vm13462_vm1, %v13463_v54 }
 0xa06   :  { %12707 = vmatpush3.bf16.msra.mxu0 %v14561_v27 }
 0xa07   :  { %12713 = vmatpush3.bf16.msra.mxu1 %v14567_v20  ;;  %12714 = vmatprep.subr.bf16.mxu0 %v13461_v48 }
 0xa08   :  { %12720 = vmatprep.subr.bf16.mxu1 %v13461_v48 }
 0xa09   :  { %11766 = vmatmul.mubr.msk.f32.vlgmr.msra.gmra.mrb[66].mxu0 %vm179_vm0, %v14698_v28 }
 0xa0a   :  { %11777 = vmatmul.mubr.msk.f32.vlgmr.msra.gmra.mrb[74].mxu1 %vm179_vm0, %v14698_v28  ;;  %12716 = vmatpush3.bf16.msra.mxu0 %v14506_v0 }
 0xa0b   :  { %12722 = vmatpush3.bf16.msra.mxu1 %v14509_v34  ;;  %12717 = vmatprep.subr.bf16.mxu0 %v13461_v48 }
 0xa0c   :  { %12723 = vmatprep.subr.bf16.mxu1 %v13461_v48  ;;  %11787 = vmatprep.mubr.msk.f32.mxu0 %vm13462_vm1, %v13463_v54 }
 0xa0d   :  { %11798 = vmatprep.mubr.msk.f32.mxu1 %vm13462_vm1, %v13463_v54 }
 0xa0e   :  { %12719 = vmatpush3.bf16.msra.mxu0 %v14517_v5 }
 0xa0f   :  { %12725 = vmatpush3.bf16.msra.mxu1 %v14521_v35  ;;  %12726 = vmatprep.subr.bf16.mxu0 %v13461_v48 }
 0xa10   :  { %12732 = vmatprep.subr.bf16.mxu1 %v13461_v48 }
 0xacc   :  { %v6726_v59 = vpop.f32.mrb[62].mxu0  ;;  %v6796_v11 = vpop.f32.mrb[70].mxu1 }
 0xacd   :  { %v6800_v17 = vadd.f32 %v6726_v59, %v5056_v46  ;;  %v6807_v50 = vadd.f32 %v6796_v11, %v5270_v26  ;;  %v11723_v7 = vpop.f32.mrb[63].mxu0  ;;  %v11734_v41 = vpop.f32.mrb[71].mxu1  ;;  %v5484_v46 = vcombine.high %v14664_v39, %v14664_v39 }
 0xacf   :  { %v10244_v61 = vmul.f32 -1.442695, %v6800_v17  ;;  %v10245_v55 = vmul.f32 -1.442695, %v6807_v50 }
 0xad1   :  { %13163 = vpow2.f32 %v10244_v61 }
 0xad4   :  { %v6880_v8 = vpop.f32.mrb[64].mxu0 }
 0xad5   :  { %v11745_v51 = vpop.f32.mrb[65].mxu0  ;;  %v6959_v15 = vpop.f32.mrb[72].mxu1 }
 0xad6   :  { %v7033_v30 = vadd.f32 %v6959_v15, %v14641_v21  ;;  %v11756_v43 = vpop.f32.mrb[73].mxu1  ;;  %v6881_v21 = vadd.f32 %v14655_v9, %v6880_v8 }
 0xad8   :  { %v10249_v2 = vmul.f32 -1.442695, %v7033_v30 }
 0xada   :  { %13165 = vpow2.f32 %v10249_v2 }
 0xadb   :  { %v13164_v36 = vpop.eup %13163  ;;  %13167 = vpow2.f32 %v10245_v55 }
 0xadc   :  { %v6804_v53 = vadd.f32 1.0, %v13164_v36  ;;  %v7029_v24 = vpop.f32.mrb[66].mxu0 }
 0xadd   :  { %v7113_v37 = vpop.f32.mrb[74].mxu1  ;;  %v11767_v25 = vpop.f32.mrb[67].mxu0  ;;  %v7040_v47 = vadd.f32 %v7029_v24, %v14648_v63 }
 0xade   :  { %13169 = vrcp.f32 %v6804_v53  ;;  %v11778_v52 = vpop.f32.mrb[75].mxu1  ;;  %v7114_v63 = vadd.f32 %v14672_v1, %v7113_v37 }
 0xadf   :  { %v10250_v22 = vmul.f32 -1.442695, %v7040_v47  ;;  %v5255_v52 = vcombine.high %v14622_v38, %v14622_v38  ;;  %v14817_v38 = vrot.slane %v14638_v57, %v13639_v18  ;;  %v5469_v57 = vcombine.high %v14657_v12, %v14657_v12 }
 0xae1   :  { %13171 = vpow2.f32 %v10250_v22 }
 0xae4   :  { %v13166_v62 = vpop.eup %13165 }
 0xae5   :  { %v7037_v60 = vadd.f32 1.0, %v13166_v62  ;;  %v13168_v3 = vpop.eup %13167  ;;  %v14807_v62 = vrot.slane %v14624_v33, %v13639_v18 }
 0xae6   :  { %v6811_v59 = vadd.f32 1.0, %v13168_v3 }
 0xae7   :  { %13173 = vrcp.f32 %v7037_v60  ;;  %v5715_v3 = vcombine.high %v14807_v62, %v14807_v62 }
 0xae8   :  { %v13170_v14 = vpop.eup %13169 }
 0xae9   :  { %v6884_v26 = vmul.f32 %v13170_v14, %v6881_v21 }
 0xaeb   :  { %v6885_v11 = vadd.f32 %v6884_v26, %v5484_v46  ;;  %v13172_v17 = vpop.eup %13171 }
 0xaec   :  { %v7044_v41 = vadd.f32 1.0, %v13172_v17 }
 0xaed   :  { %13175 = vtanh.f32 %v6885_v11 }
 0xaee   :  { %13177 = vrcp.f32 %v6811_v59 }
 0xaf1   :  { %v13174_v50 = vpop.eup %13173 }
 0xaf2   :  { %v7117_v7 = vmul.f32 %v13174_v50, %v7114_v63  ;;  %v5929_v50 = vcombine.high %v14817_v38, %v14817_v38 }
 0xaf4   :  { %v7118_v61 = vadd.f32 %v7117_v7, %v14675_v23 }
 0xaf6   :  { %13179 = vtanh.f32 %v7118_v61 }
 0xaf7   :  { %v13176_v8 = vpop.eup %13175  ;;  %13181 = vrcp.f32 %v7044_v41 }
 0xaf8   :  { %v6887_v51 = vsub.f32 %v14680_v19, %v13176_v8  ;;  %v13178_v15 = vpop.eup %13177 }
 0xafa   :  { %v6888_v39 = vmul.f32 %v13178_v15, %v6887_v51 }
 0xafc   :  { %v14744_v30 = vadd.f32 %v13176_v8, %v6888_v39 }
 0xafe   :  { %11788 = vmatmul.mubr.msk.f32.vlgmr.msra.gmra.mrb[68].mxu0 %vm179_vm0, %v14744_v30  ;;  %11799 = vmatmul.mubr.msk.f32.vlgmr.msra.gmra.mrb[76].mxu1 %vm179_vm0, %v14744_v30 }
 0xaff   :  { %12728 = vmatpush3.bf16.msra.mxu0 %v14529_v49  ;;  %12734 = vmatpush3.bf16.msra.mxu1 %v14533_v42 }
 0xb00   :  { %v13180_v23 = vpop.eup %13179  ;;  %12729 = vmatprep.subr.bf16.mxu0 %v13461_v48  ;;  %12735 = vmatprep.subr.bf16.mxu1 %v13461_v48 }
 0xb01   :  { %11809 = vmatprep.mubr.msk.f32.mxu0 %vm13462_vm1, %v13463_v54  ;;  %11820 = vmatprep.mubr.msk.f32.mxu1 %vm13462_vm1, %v13463_v54  ;;  %v7120_v19 = vsub.f32 %v14698_v28, %v13180_v23  ;;  %v13182_v43 = vpop.eup %13181  ;;  %v5041_v28 = vcombine.high %v14618_v45, %v14618_v45  ;;  %v14810_v45 = vrot.slane %v5255_v52, %v13639_v18 }
 0xb03   :  { %12731 = vmatpush3.bf16.msra.mxu0 %v14539_v44  ;;  %12737 = vmatpush3.bf16.msra.mxu1 %v14543_v4  ;;  %v7121_v2 = vmul.f32 %v13182_v43, %v7120_v19  ;;  %v14800_v36 = vrot.slane %v5041_v28, %v13639_v18  ;;  %v14825_v28 = vrot.slane %v5469_v57, %v13639_v18 }
 0xb04   :  { %12738 = vmatprep.subr.bf16.mxu0 %v13461_v48  ;;  %12744 = vmatprep.subr.bf16.mxu1 %v13461_v48 }
 0xb05   :  { %v14763_v55 = vadd.f32 %v13180_v23, %v7121_v2 }
 0xb06   :  { %11810 = vmatmul.mubr.msk.f32.vlgmr.msra.gmra.mrb[70].mxu0 %vm179_vm0, %v14744_v30 }
 0xb07   :  { %11821 = vmatmul.mubr.msk.f32.vlgmr.msra.gmra.mrb[78].mxu1 %vm179_vm0, %v14763_v55  ;;  %12740 = vmatpush3.bf16.msra.mxu0 %v14551_v56 }
 0xb08   :  { %12746 = vmatpush3.bf16.msra.mxu1 %v14556_v10  ;;  %12741 = vmatprep.subr.bf16.mxu0 %v13461_v48 }
 0xb09   :  { %12747 = vmatprep.subr.bf16.mxu1 %v13461_v48  ;;  %11831 = vmatprep.mubr.msk.f32.mxu0 %vm13462_vm1, %v13463_v54 }
 0xb0a   :  { %11842 = vmatprep.mubr.msk.f32.mxu1 %vm13462_vm1, %v13463_v54 }
 0xb0b   :  { %12743 = vmatpush3.bf16.msra.mxu0 %v14561_v27 }
 0xb0c   :  { %12749 = vmatpush3.bf16.msra.mxu1 %v14567_v20  ;;  %12750 = vmatprep.subr.bf16.mxu0 %v13461_v48 }
 0xb0d   :  { %12756 = vmatprep.subr.bf16.mxu1 %v13461_v48 }
 0xb0e   :  { %11832 = vmatmul.mubr.msk.f32.vlgmr.msra.gmra.mrb[72].mxu0 %vm179_vm0, %v14763_v55 }
 0xb0f   :  { %11843 = vmatmul.mubr.msk.f32.vlgmr.msra.gmra.mrb[80].mxu1 %vm179_vm0, %v14763_v55  ;;  %12752 = vmatpush3.bf16.msra.mxu0 %v14506_v0 }
 0xb10   :  { %12758 = vmatpush3.bf16.msra.mxu1 %v14509_v34  ;;  %12753 = vmatprep.subr.bf16.mxu0 %v13461_v48 }
 0xb11   :  { %12759 = vmatprep.subr.bf16.mxu1 %v13461_v48  ;;  %11853 = vmatprep.mubr.msk.f32.mxu0 %vm13462_vm1, %v13463_v54 }
 0xb12   :  { %11864 = vmatprep.mubr.msk.f32.mxu1 %vm13462_vm1, %v13463_v54 }
 0xb13   :  { %12755 = vmatpush3.bf16.msra.mxu0 %v14517_v5 }
 0xb14   :  { %12761 = vmatpush3.bf16.msra.mxu1 %v14521_v35  ;;  %12762 = vmatprep.subr.bf16.mxu0 %v13461_v48 }
 0xb15   :  { %12768 = vmatprep.subr.bf16.mxu1 %v13461_v48 }
 0xbd1   :  { %v7192_v53 = vpop.f32.mrb[68].mxu0  ;;  %v7262_v24 = vpop.f32.mrb[76].mxu1 }
 0xbd2   :  { %v7266_v37 = vadd.f32 %v7192_v53, %v14800_v36  ;;  %v11789_v25 = vpop.f32.mrb[69].mxu0  ;;  %v11800_v47 = vpop.f32.mrb[77].mxu1  ;;  %v7273_v21 = vadd.f32 %v7262_v24, %v14810_v45 }
 0xbd3   :  { %v14830_v25 = vrot.slane %v14659_v32, %v13639_v18 }
 0xbd4   :  { %v10254_v22 = vmul.f32 -1.442695, %v7266_v37  ;;  %v10255_v11 = vmul.f32 -1.442695, %v7273_v21 }
 0xbd6   :  { %13183 = vpow2.f32 %v10254_v22  ;;  %v6143_v22 = vcombine.high %v14830_v25, %v14830_v25 }
 0xbd9   :  { %v7346_v60 = vpop.f32.mrb[70].mxu0 }
 0xbda   :  { %v11811_v14 = vpop.f32.mrb[71].mxu0  ;;  %v7425_v46 = vpop.f32.mrb[78].mxu1  ;;  %v7347_v43 = vadd.f32 %v14655_v9, %v7346_v60 }
 0xbdb   :  { %v7499_v26 = vadd.f32 %v7425_v46, %v5715_v3  ;;  %v11822_v59 = vpop.f32.mrb[79].mxu1 }
 0xbdd   :  { %v10259_v33 = vmul.f32 -1.442695, %v7499_v26 }
 0xbdf   :  { %13185 = vpow2.f32 %v10259_v33 }
 0xbe0   :  { %v13184_v17 = vpop.eup %13183  ;;  %13187 = vpow2.f32 %v10255_v11 }
 0xbe1   :  { %v7270_v63 = vadd.f32 1.0, %v13184_v17  ;;  %v7495_v7 = vpop.f32.mrb[72].mxu0 }
 0xbe2   :  { %v7579_v41 = vpop.f32.mrb[80].mxu1  ;;  %v11833_v61 = vpop.f32.mrb[73].mxu0  ;;  %v7506_v8 = vadd.f32 %v7495_v7, %v5929_v50 }
 0xbe3   :  { %13189 = vrcp.f32 %v7270_v63  ;;  %v11844_v51 = vpop.f32.mrb[81].mxu1  ;;  %v7580_v47 = vadd.f32 %v14672_v1, %v7579_v41 }
 0xbe4   :  { %v10260_v15 = vmul.f32 -1.442695, %v7506_v8 }
 0xbe6   :  { %13191 = vpow2.f32 %v10260_v15  ;;  %v5271_v15 = vcombine.high %v14810_v45, %v14810_v45 }
 0xbe9   :  { %v13186_v39 = vpop.eup %13185 }
 0xbea   :  { %v7503_v23 = vadd.f32 1.0, %v13186_v39  ;;  %v13188_v19 = vpop.eup %13187 }
 0xbeb   :  { %v7277_v24 = vadd.f32 1.0, %v13188_v19 }
 0xbec   :  { %13193 = vrcp.f32 %v7503_v23 }
 0xbed   :  { %v13190_v2 = vpop.eup %13189 }
 0xbee   :  { %v7350_v53 = vmul.f32 %v13190_v2, %v7347_v43 }
 0xbf0   :  { %v7351_v37 = vadd.f32 %v7350_v53, %v14825_v28  ;;  %v13192_v12 = vpop.eup %13191 }
 0xbf1   :  { %v7510_v3 = vadd.f32 1.0, %v13192_v12 }
 0xbf2   :  { %13195 = vtanh.f32 %v7351_v37 }
 0xbf3   :  { %13197 = vrcp.f32 %v7277_v24 }
 0xbf6   :  { %v13194_v52 = vpop.eup %13193 }
 0xbf7   :  { %v7583_v60 = vmul.f32 %v13194_v52, %v7580_v47 }
 0xbf9   :  { %v7584_v21 = vadd.f32 %v7583_v60, %v6143_v22 }
 0xbfb   :  { %13199 = vtanh.f32 %v7584_v21 }
 0xbfc   :  { %v13196_v14 = vpop.eup %13195  ;;  %13201 = vrcp.f32 %v7510_v3 }
 0xbfd   :  { %v7353_v46 = vsub.f32 %v14744_v30, %v13196_v14  ;;  %v13198_v26 = vpop.eup %13197 }
 0xbff   :  { %v7354_v59 = vmul.f32 %v13198_v26, %v7353_v46  ;;  %v5485_v26 = vcombine.high %v14825_v28, %v14825_v28 }
 0xc01   :  { %v14836_v32 = vadd.f32 %v13196_v14, %v7354_v59 }
 0xc03   :  { %11854 = vmatmul.mubr.msk.f32.vlgmr.msra.gmra.mrb[74].mxu0 %vm179_vm0, %v14836_v32  ;;  %11865 = vmatmul.mubr.msk.f32.vlgmr.msra.gmra.mrb[82].mxu1 %vm179_vm0, %v14836_v32 }
 0xc04   :  { %12764 = vmatpush3.bf16.msra.mxu0 %v14529_v49  ;;  %12770 = vmatpush3.bf16.msra.mxu1 %v14533_v42 }
 0xc05   :  { %v13200_v33 = vpop.eup %13199  ;;  %12765 = vmatprep.subr.bf16.mxu0 %v13461_v48  ;;  %12771 = vmatprep.subr.bf16.mxu1 %v13461_v48 }
 0xc06   :  { %11875 = vmatprep.mubr.msk.f32.mxu0 %vm13462_vm1, %v13463_v54  ;;  %11886 = vmatprep.mubr.msk.f32.mxu1 %vm13462_vm1, %v13463_v54  ;;  %v7586_v30 = vsub.f32 %v14763_v55, %v13200_v33  ;;  %v13202_v11 = vpop.eup %13201  ;;  %v5057_v55 = vcombine.high %v14800_v36, %v14800_v36 }
 0xc08   :  { %12767 = vmatpush3.bf16.msra.mxu0 %v14539_v44  ;;  %12773 = vmatpush3.bf16.msra.mxu1 %v14543_v4  ;;  %v7587_v17 = vmul.f32 %v13202_v11, %v7586_v30 }
 0xc09   :  { %12774 = vmatprep.subr.bf16.mxu0 %v13461_v48  ;;  %12780 = vmatprep.subr.bf16.mxu1 %v13461_v48 }
 0xc0a   :  { %v14855_v63 = vadd.f32 %v13200_v33, %v7587_v17 }
 0xc0b   :  { %11876 = vmatmul.mubr.msk.f32.vlgmr.msra.gmra.mrb[76].mxu0 %vm179_vm0, %v14836_v32 }
 0xc0c   :  { %11887 = vmatmul.mubr.msk.f32.vlgmr.msra.gmra.mrb[84].mxu1 %vm179_vm0, %v14855_v63  ;;  %12776 = vmatpush3.bf16.msra.mxu0 %v14551_v56 }
 0xc0d   :  { %12782 = vmatpush3.bf16.msra.mxu1 %v14556_v10  ;;  %12777 = vmatprep.subr.bf16.mxu0 %v13461_v48 }
 0xc0e   :  { %12783 = vmatprep.subr.bf16.mxu1 %v13461_v48  ;;  %11897 = vmatprep.mubr.msk.f32.mxu0 %vm13462_vm1, %v13463_v54 }
 0xc0f   :  { %11908 = vmatprep.mubr.msk.f32.mxu1 %vm13462_vm1, %v13463_v54 }
 0xc10   :  { %12779 = vmatpush3.bf16.msra.mxu0 %v14561_v27 }
 0xc11   :  { %12785 = vmatpush3.bf16.msra.mxu1 %v14567_v20  ;;  %12786 = vmatprep.subr.bf16.mxu0 %v13461_v48 }
 0xc12   :  { %12792 = vmatprep.subr.bf16.mxu1 %v13461_v48 }
 0xc13   :  { %11898 = vmatmul.mubr.msk.f32.vlgmr.msra.gmra.mrb[78].mxu0 %vm179_vm0, %v14855_v63 }
 0xc14   :  { %11909 = vmatmul.mubr.msk.f32.vlgmr.msra.gmra.mrb[86].mxu1 %vm179_vm0, %v14855_v63  ;;  %12788 = vmatpush3.bf16.msra.mxu0 %v14506_v0 }
 0xc15   :  { %12794 = vmatpush3.bf16.msra.mxu1 %v14509_v34  ;;  %12789 = vmatprep.subr.bf16.mxu0 %v13461_v48 }
 0xc16   :  { %12795 = vmatprep.subr.bf16.mxu1 %v13461_v48  ;;  %11919 = vmatprep.mubr.msk.f32.mxu0 %vm13462_vm1, %v13463_v54 }
 0xc17   :  { %11930 = vmatprep.mubr.msk.f32.mxu1 %vm13462_vm1, %v13463_v54 }
 0xc18   :  { %12791 = vmatpush3.bf16.msra.mxu0 %v14517_v5 }
 0xc19   :  { %12797 = vmatpush3.bf16.msra.mxu1 %v14521_v35  ;;  %12798 = vmatprep.subr.bf16.mxu0 %v13461_v48 }
 0xc1a   :  { %12804 = vmatprep.subr.bf16.mxu1 %v13461_v48 }
 0xcd6   :  { %v7658_v50 = vpop.f32.mrb[74].mxu0  ;;  %v7728_v7 = vpop.f32.mrb[82].mxu1 }
 0xcd7   :  { %v7732_v41 = vadd.f32 %v7658_v50, %v5057_v55  ;;  %v11855_v61 = vpop.f32.mrb[75].mxu0  ;;  %v11866_v8 = vpop.f32.mrb[83].mxu1  ;;  %v7739_v57 = vadd.f32 %v7728_v7, %v5271_v15 }
 0xcd9   :  { %v10264_v51 = vmul.f32 -1.442695, %v7732_v41  ;;  %v10265_v24 = vmul.f32 -1.442695, %v7739_v57 }
 0xcdb   :  { %13203 = vpow2.f32 %v10264_v51 }
 0xcde   :  { %v7812_v39 = vpop.f32.mrb[76].mxu0 }
 0xcdf   :  { %v11877_v23 = vpop.f32.mrb[77].mxu0  ;;  %v7891_v19 = vpop.f32.mrb[84].mxu1 }
 0xce0   :  { %v7965_v43 = vadd.f32 %v7891_v19, %v14807_v62  ;;  %v11888_v2 = vpop.f32.mrb[85].mxu1  ;;  %v7813_v62 = vadd.f32 %v14655_v9, %v7812_v39  ;;  %v5683_v23 = vcombine.high %v14608_v29, %v14608_v29 }
 0xce2   :  { %v10269_v53 = vmul.f32 -1.442695, %v7965_v43 }
 0xce4   :  { %13205 = vpow2.f32 %v10269_v53 }
 0xce5   :  { %v13204_v36 = vpop.eup %13203  ;;  %13207 = vpow2.f32 %v10265_v24 }
 0xce6   :  { %v7736_v37 = vadd.f32 1.0, %v13204_v36  ;;  %v7961_v12 = vpop.f32.mrb[78].mxu0 }
 0xce7   :  { %v8045_v47 = vpop.f32.mrb[86].mxu1  ;;  %v11899_v52 = vpop.f32.mrb[79].mxu0  ;;  %v7972_v22 = vadd.f32 %v7961_v12, %v14817_v38  ;;  %v14966_v12 = vrot.slane %v14598_v58, %v13639_v18 }
 0xce8   :  { %13209 = vrcp.f32 %v7736_v37  ;;  %v11910_v45 = vpop.f32.mrb[87].mxu1  ;;  %v8046_v38 = vadd.f32 %v14672_v1, %v8045_v47  ;;  %v14962_v37 = vrot.slane %v5683_v23, %v13639_v18  ;;  %v5897_v47 = vcombine.high %v14616_v31, %v14616_v31 }
 0xce9   :  { %v10270_v60 = vmul.f32 -1.442695, %v7972_v22 }
 0xcea   :  { %v5699_v22 = vcombine.high %v14962_v37, %v14962_v37 }
 0xceb   :  { %13211 = vpow2.f32 %v10270_v60 }
 0xcee   :  { %v13206_v3 = vpop.eup %13205 }
 0xcef   :  { %v7969_v21 = vadd.f32 1.0, %v13206_v3  ;;  %v13208_v14 = vpop.eup %13207 }
 0xcf0   :  { %v7743_v33 = vadd.f32 1.0, %v13208_v14 }
 0xcf1   :  { %13213 = vrcp.f32 %v7969_v21 }
 0xcf2   :  { %v13210_v46 = vpop.eup %13209 }
 0xcf3   :  { %v7816_v59 = vmul.f32 %v13210_v46, %v7813_v62  ;;  %v14974_v46 = vrot.slane %v5897_v47, %v13639_v18 }
 0xcf5   :  { %v7817_v30 = vadd.f32 %v7816_v59, %v5485_v26  ;;  %v13212_v11 = vpop.eup %13211 }
 0xcf6   :  { %v7976_v50 = vadd.f32 1.0, %v13212_v11 }
 0xcf7   :  { %13215 = vtanh.f32 %v7817_v30  ;;  %v5913_v30 = vcombine.high %v14974_v46, %v14974_v46 }
 0xcf8   :  { %13217 = vrcp.f32 %v7743_v33 }
 0xcfb   :  { %v13214_v17 = vpop.eup %13213 }
 0xcfc   :  { %v8049_v55 = vmul.f32 %v13214_v17, %v8046_v38 }
 0xcfe   :  { %v8050_v7 = vadd.f32 %v8049_v55, %v14830_v25 }
 0xd00   :  { %13219 = vtanh.f32 %v8050_v7 }
 0xd01   :  { %v13216_v41 = vpop.eup %13215  ;;  %13221 = vrcp.f32 %v7976_v50 }
 0xd02   :  { %v7819_v61 = vsub.f32 %v14836_v32, %v13216_v41  ;;  %v13218_v8 = vpop.eup %13217 }
 0xd04   :  { %v7820_v28 = vmul.f32 %v13218_v8, %v7819_v61 }
 0xd06   :  { %v14901_v51 = vadd.f32 %v13216_v41, %v7820_v28 }
 0xd08   :  { %11920 = vmatmul.mubr.msk.f32.vlgmr.msra.gmra.mrb[80].mxu0 %vm179_vm0, %v14901_v51  ;;  %11931 = vmatmul.mubr.msk.f32.vlgmr.msra.gmra.mrb[88].mxu1 %vm179_vm0, %v14901_v51 }
 0xd09   :  { %12800 = vmatpush3.bf16.msra.mxu0 %v14529_v49  ;;  %12806 = vmatpush3.bf16.msra.mxu1 %v14533_v42 }
 0xd0a   :  { %v13220_v25 = vpop.eup %13219  ;;  %12801 = vmatprep.subr.bf16.mxu0 %v13461_v48  ;;  %12807 = vmatprep.subr.bf16.mxu1 %v13461_v48 }
 0xd0b   :  { %11941 = vmatprep.mubr.msk.f32.mxu0 %vm13462_vm1, %v13463_v54  ;;  %11952 = vmatprep.mubr.msk.f32.mxu1 %vm13462_vm1, %v13463_v54  ;;  %v8052_v32 = vsub.f32 %v14855_v63, %v13220_v25  ;;  %v13222_v15 = vpop.eup %13221  ;;  %v14956_v63 = vrot.slane %v14596_v40, %v13639_v18 }
 0xd0d   :  { %12803 = vmatpush3.bf16.msra.mxu0 %v14539_v44  ;;  %12809 = vmatpush3.bf16.msra.mxu1 %v14543_v4  ;;  %v8053_v39 = vmul.f32 %v13222_v15, %v8052_v32  ;;  %v14981_v32 = vrot.slane %v14606_v6, %v13639_v18 }
 0xd0e   :  { %12810 = vmatprep.subr.bf16.mxu0 %v13461_v48  ;;  %12816 = vmatprep.subr.bf16.mxu1 %v13461_v48 }
 0xd0f   :  { %v14920_v57 = vadd.f32 %v13220_v25, %v8053_v39  ;;  %v6111_v39 = vcombine.high %v14620_v13, %v14620_v13 }
 0xd10   :  { %11942 = vmatmul.mubr.msk.f32.vlgmr.msra.gmra.mrb[82].mxu0 %vm179_vm0, %v14901_v51 }
 0xd11   :  { %11953 = vmatmul.mubr.msk.f32.vlgmr.msra.gmra.mrb[90].mxu1 %vm179_vm0, %v14920_v57  ;;  %12812 = vmatpush3.bf16.msra.mxu0 %v14551_v56 }
 0xd12   :  { %12818 = vmatpush3.bf16.msra.mxu1 %v14556_v10  ;;  %12813 = vmatprep.subr.bf16.mxu0 %v13461_v48 }
 0xd13   :  { %12819 = vmatprep.subr.bf16.mxu1 %v13461_v48  ;;  %11963 = vmatprep.mubr.msk.f32.mxu0 %vm13462_vm1, %v13463_v54 }
 0xd14   :  { %11974 = vmatprep.mubr.msk.f32.mxu1 %vm13462_vm1, %v13463_v54 }
 0xd15   :  { %12815 = vmatpush3.bf16.msra.mxu0 %v14561_v27 }
 0xd16   :  { %12821 = vmatpush3.bf16.msra.mxu1 %v14567_v20  ;;  %12822 = vmatprep.subr.bf16.mxu0 %v13461_v48 }
 0xd17   :  { %12828 = vmatprep.subr.bf16.mxu1 %v13461_v48 }
 0xd18   :  { %11964 = vmatmul.mubr.msk.f32.vlgmr.msra.gmra.mrb[84].mxu0 %vm179_vm0, %v14920_v57 }
 0xd19   :  { %11975 = vmatmul.mubr.msk.f32.vlgmr.msra.gmra.mrb[92].mxu1 %vm179_vm0, %v14920_v57  ;;  %12824 = vmatpush3.bf16.msra.mxu0 %v14506_v0 }
 0xd1a   :  { %12830 = vmatpush3.bf16.msra.mxu1 %v14509_v34  ;;  %12825 = vmatprep.subr.bf16.mxu0 %v13461_v48 }
 0xd1b   :  { %12831 = vmatprep.subr.bf16.mxu1 %v13461_v48  ;;  %11985 = vmatprep.mubr.msk.f32.mxu0 %vm13462_vm1, %v13463_v54 }
 0xd1c   :  { %11996 = vmatprep.mubr.msk.f32.mxu1 %vm13462_vm1, %v13463_v54 }
 0xd1d   :  { %12827 = vmatpush3.bf16.msra.mxu0 %v14517_v5 }
 0xd1e   :  { %12833 = vmatpush3.bf16.msra.mxu1 %v14521_v35  ;;  %12834 = vmatprep.subr.bf16.mxu0 %v13461_v48 }
 0xd1f   :  { %12840 = vmatprep.subr.bf16.mxu1 %v13461_v48 }
 0xddb   :  { %v8124_v19 = vpop.f32.mrb[80].mxu0  ;;  %v8194_v43 = vpop.f32.mrb[88].mxu1 }
 0xddc   :  { %v8198_v2 = vadd.f32 %v8124_v19, %v14956_v63  ;;  %v11921_v53 = vpop.f32.mrb[81].mxu0  ;;  %v11932_v24 = vpop.f32.mrb[89].mxu1  ;;  %v8205_v45 = vadd.f32 %v8194_v43, %v14966_v12  ;;  %v14987_v43 = vrot.slane %v6111_v39, %v13639_v18 }
 0xdde   :  { %v10274_v36 = vmul.f32 -1.442695, %v8198_v2  ;;  %v10275_v26 = vmul.f32 -1.442695, %v8205_v45 }
 0xde0   :  { %13223 = vpow2.f32 %v10274_v36  ;;  %v6127_v36 = vcombine.high %v14987_v43, %v14987_v43 }
 0xde3   :  { %v8278_v52 = vpop.f32.mrb[82].mxu0 }
 0xde4   :  { %v11943_v60 = vpop.f32.mrb[83].mxu0  ;;  %v8357_v3 = vpop.f32.mrb[90].mxu1  ;;  %v8279_v28 = vadd.f32 %v14655_v9, %v8278_v52 }
 0xde5   :  { %v8431_v21 = vadd.f32 %v8357_v3, %v5699_v22  ;;  %v11954_v14 = vpop.f32.mrb[91].mxu1 }
 0xde7   :  { %v10279_v62 = vmul.f32 -1.442695, %v8431_v21 }
 0xde9   :  { %13225 = vpow2.f32 %v10279_v62 }
 0xdea   :  { %v13224_v59 = vpop.eup %13223  ;;  %13227 = vpow2.f32 %v10275_v26 }
 0xdeb   :  { %v8202_v33 = vadd.f32 1.0, %v13224_v59  ;;  %v8427_v11 = vpop.f32.mrb[84].mxu0 }
 0xdec   :  { %v8511_v38 = vpop.f32.mrb[92].mxu1  ;;  %v11965_v17 = vpop.f32.mrb[85].mxu0  ;;  %v8438_v55 = vadd.f32 %v8427_v11, %v5913_v30 }
 0xded   :  { %13229 = vrcp.f32 %v8202_v33  ;;  %v11976_v50 = vpop.f32.mrb[93].mxu1  ;;  %v8512_v53 = vadd.f32 %v14672_v1, %v8511_v38 }
 0xdee   :  { %v10280_v7 = vmul.f32 -1.442695, %v8438_v55 }
 0xdf0   :  { %13231 = vpow2.f32 %v10280_v7  ;;  %v5287_v7 = vcombine.high %v14966_v12, %v14966_v12 }
 0xdf3   :  { %v13226_v41 = vpop.eup %13225 }
 0xdf4   :  { %v8435_v61 = vadd.f32 1.0, %v13226_v41  ;;  %v13228_v8 = vpop.eup %13227 }
 0xdf5   :  { %v8209_v23 = vadd.f32 1.0, %v13228_v8 }
 0xdf6   :  { %13233 = vrcp.f32 %v8435_v61 }
 0xdf7   :  { %v13230_v25 = vpop.eup %13229 }
 0xdf8   :  { %v8282_v15 = vmul.f32 %v13230_v25, %v8279_v28 }
 0xdfa   :  { %v8283_v19 = vadd.f32 %v8282_v15, %v14981_v32  ;;  %v13232_v2 = vpop.eup %13231 }
 0xdfb   :  { %v8442_v52 = vadd.f32 1.0, %v13232_v2 }
 0xdfc   :  { %13235 = vtanh.f32 %v8283_v19 }
 0xdfd   :  { %13237 = vrcp.f32 %v8209_v23 }
 0xe00   :  { %v13234_v24 = vpop.eup %13233 }
 0xe01   :  { %v8515_v47 = vmul.f32 %v13234_v24, %v8512_v53 }
 0xe03   :  { %v8516_v22 = vadd.f32 %v8515_v47, %v6127_v36 }
 0xe05   :  { %13239 = vtanh.f32 %v8516_v22 }
 0xe06   :  { %v13236_v45 = vpop.eup %13235  ;;  %13241 = vrcp.f32 %v8442_v52 }
 0xe07   :  { %v8285_v60 = vsub.f32 %v14901_v51, %v13236_v45  ;;  %v13238_v3 = vpop.eup %13237 }
 0xe09   :  { %v8286_v21 = vmul.f32 %v13238_v3, %v8285_v60  ;;  %v5501_v3 = vcombine.high %v14981_v32, %v14981_v32 }
 0xe0b   :  { %v14993_v14 = vadd.f32 %v13236_v45, %v8286_v21 }
 0xe0d   :  { %11986 = vmatmul.mubr.msk.f32.vlgmr.msra.gmra.mrb[86].mxu0 %vm179_vm0, %v14993_v14  ;;  %11997 = vmatmul.mubr.msk.f32.vlgmr.msra.gmra.mrb[94].mxu1 %vm179_vm0, %v14993_v14 }
 0xe0e   :  { %12836 = vmatpush3.bf16.msra.mxu0 %v14529_v49  ;;  %12842 = vmatpush3.bf16.msra.mxu1 %v14533_v42 }
 0xe0f   :  { %v13240_v62 = vpop.eup %13239  ;;  %12837 = vmatprep.subr.bf16.mxu0 %v13461_v48  ;;  %12843 = vmatprep.subr.bf16.mxu1 %v13461_v48 }
 0xe10   :  { %12007 = vmatprep.mubr.msk.f32.mxu0 %vm13462_vm1, %v13463_v54  ;;  %12018 = vmatprep.mubr.msk.f32.mxu1 %vm13462_vm1, %v13463_v54  ;;  %v8518_v51 = vsub.f32 %v14920_v57, %v13240_v62  ;;  %v13242_v26 = vpop.eup %13241  ;;  %v5073_v57 = vcombine.high %v14956_v63, %v14956_v63 }
 0xe12   :  { %12839 = vmatpush3.bf16.msra.mxu0 %v14539_v44  ;;  %12845 = vmatpush3.bf16.msra.mxu1 %v14543_v4  ;;  %v8519_v59 = vmul.f32 %v13242_v26, %v8518_v51 }
 0xe13   :  { %12846 = vmatprep.subr.bf16.mxu0 %v13461_v48  ;;  %12852 = vmatprep.subr.bf16.mxu1 %v13461_v48 }
 0xe14   :  { %v15012_v33 = vadd.f32 %v13240_v62, %v8519_v59 }
 0xe15   :  { %12008 = vmatmul.mubr.msk.f32.vlgmr.msra.gmra.mrb[88].mxu0 %vm179_vm0, %v14993_v14 }
 0xe16   :  { %12019 = vmatmul.mubr.msk.f32.vlgmr.msra.gmra.mrb[96].mxu1 %vm179_vm0, %v15012_v33  ;;  %12848 = vmatpush3.bf16.msra.mxu0 %v14551_v56 }
 0xe17   :  { %12854 = vmatpush3.bf16.msra.mxu1 %v14556_v10  ;;  %12849 = vmatprep.subr.bf16.mxu0 %v13461_v48 }
 0xe18   :  { %12855 = vmatprep.subr.bf16.mxu1 %v13461_v48  ;;  %12029 = vmatprep.mubr.msk.f32.mxu0 %vm13462_vm1, %v13463_v54 }
 0xe19   :  { %12040 = vmatprep.mubr.msk.f32.mxu1 %vm13462_vm1, %v13463_v54 }
 0xe1a   :  { %12851 = vmatpush3.bf16.msra.mxu0 %v14561_v27 }
 0xe1b   :  { %12857 = vmatpush3.bf16.msra.mxu1 %v14567_v20  ;;  %12858 = vmatprep.subr.bf16.mxu0 %v13461_v48 }
 0xe1c   :  { %12864 = vmatprep.subr.bf16.mxu1 %v13461_v48 }
 0xe1d   :  { %12030 = vmatmul.mubr.msk.f32.vlgmr.msra.gmra.mrb[90].mxu0 %vm179_vm0, %v15012_v33 }
 0xe1e   :  { %12041 = vmatmul.mubr.msk.f32.vlgmr.msra.gmra.mrb[98].mxu1 %vm179_vm0, %v15012_v33  ;;  %12860 = vmatpush3.bf16.msra.mxu0 %v14506_v0 }
 0xe1f   :  { %12866 = vmatpush3.bf16.msra.mxu1 %v14509_v34  ;;  %12861 = vmatprep.subr.bf16.mxu0 %v13461_v48 }
 0xe20   :  { %12867 = vmatprep.subr.bf16.mxu1 %v13461_v48  ;;  %12051 = vmatprep.mubr.msk.f32.mxu0 %vm13462_vm1, %v13463_v54 }
 0xe21   :  { %12062 = vmatprep.mubr.msk.f32.mxu1 %vm13462_vm1, %v13463_v54 }
 0xe22   :  { %12863 = vmatpush3.bf16.msra.mxu0 %v14517_v5 }
 0xe23   :  { %12869 = vmatpush3.bf16.msra.mxu1 %v14521_v35  ;;  %12870 = vmatprep.subr.bf16.mxu0 %v13461_v48 }
 0xe24   :  { %12876 = vmatprep.subr.bf16.mxu1 %v13461_v48 }
 0xee0   :  { %v8590_v30 = vpop.f32.mrb[86].mxu0  ;;  %v8660_v11 = vpop.f32.mrb[94].mxu1 }
 0xee1   :  { %v8664_v38 = vadd.f32 %v8590_v30, %v5073_v57  ;;  %v11987_v17 = vpop.f32.mrb[87].mxu0  ;;  %v11998_v55 = vpop.f32.mrb[95].mxu1  ;;  %v8671_v61 = vadd.f32 %v8660_v11, %v5287_v7 }
 0xee3   :  { %v10284_v50 = vmul.f32 -1.442695, %v8664_v38  ;;  %v10285_v23 = vmul.f32 -1.442695, %v8671_v61 }
 0xee5   :  { %13243 = vpow2.f32 %v10284_v50 }
 0xee8   :  { %v8744_v41 = vpop.f32.mrb[88].mxu0 }
 0xee9   :  { %v12009_v8 = vpop.f32.mrb[89].mxu0  ;;  %v8823_v28 = vpop.f32.mrb[96].mxu1 }
 0xeea   :  { %v8897_v25 = vadd.f32 %v8823_v28, %v14962_v37  ;;  %v12020_v15 = vpop.f32.mrb[97].mxu1  ;;  %v8745_v37 = vadd.f32 %v14655_v9, %v8744_v41 }
 0xeec   :  { %v10289_v39 = vmul.f32 -1.442695, %v8897_v25  ;;  %v15121_v25 = vrot.slane %v14608_v29, %v13639_v18 }
 0xeee   :  { %13245 = vpow2.f32 %v10289_v39  ;;  %v5698_v39 = vcombine.high %v15121_v25, %v15121_v25 }
 0xeef   :  { %v13244_v63 = vpop.eup %13243  ;;  %13247 = vpow2.f32 %v10285_v23 }
 0xef0   :  { %v8668_v19 = vadd.f32 1.0, %v13244_v63  ;;  %v8893_v2 = vpop.f32.mrb[90].mxu0 }
 0xef1   :  { %v8977_v53 = vpop.f32.mrb[98].mxu1  ;;  %v12031_v24 = vpop.f32.mrb[91].mxu0  ;;  %v8904_v36 = vadd.f32 %v8893_v2, %v14974_v46 }
 0xef2   :  { %13249 = vrcp.f32 %v8668_v19  ;;  %v12042_v12 = vpop.f32.mrb[99].mxu1  ;;  %v8978_v46 = vadd.f32 %v14672_v1, %v8977_v53 }
 0xef3   :  { %v10290_v47 = vmul.f32 -1.442695, %v8904_v36 }
 0xef5   :  { %13251 = vpow2.f32 %v10290_v47 }
 0xef8   :  { %v13246_v52 = vpop.eup %13245 }
 0xef9   :  { %v8901_v22 = vadd.f32 1.0, %v13246_v52  ;;  %v13248_v45 = vpop.eup %13247 }
 0xefa   :  { %v8675_v62 = vadd.f32 1.0, %v13248_v45 }
 0xefb   :  { %13253 = vrcp.f32 %v8901_v22 }
 0xefc   :  { %v13250_v60 = vpop.eup %13249 }
 0xefd   :  { %v8748_v21 = vmul.f32 %v13250_v60, %v8745_v37 }
 0xeff   :  { %v8749_v51 = vadd.f32 %v8748_v21, %v5501_v3  ;;  %v13252_v26 = vpop.eup %13251 }
 0xf00   :  { %v8908_v30 = vadd.f32 1.0, %v13252_v26  ;;  %v15140_v26 = vld [vmem:[%s15301_s9] ss:$0 sm:$0xff] }
 0xf01   :  { %13255 = vtanh.f32 %v8749_v51 }
 0xf02   :  { %13257 = vrcp.f32 %v8675_v62 }
 0xf05   :  { %v13254_v59 = vpop.eup %13253 }
 0xf06   :  { %v8981_v57 = vmul.f32 %v13254_v59, %v8978_v46 }
 0xf08   :  { %v8982_v11 = vadd.f32 %v8981_v57, %v14987_v43 }
 0xf0a   :  { %13259 = vtanh.f32 %v8982_v11 }
 0xf0b   :  { %v13256_v9 = vpop.eup %13255  ;;  %13261 = vrcp.f32 %v8908_v30 }
 0xf0c   :  { %v8751_v38 = vsub.f32 %v14993_v14, %v13256_v9  ;;  %v13258_v17 = vpop.eup %13257 }
 0xf0e   :  { %v8752_v32 = vmul.f32 %v13258_v17, %v8751_v38  ;;  %v15154_v17 = vld [vmem:[%s15301_s9 + $0x1] ss:$0 sm:$0xff] }
 0xf10   :  { %v15058_v55 = vadd.f32 %v13256_v9, %v8752_v32 }
 0xf12   :  { %12052 = vmatmul.mubr.msk.f32.vlgmr.msra.gmra.mrb[92].mxu0 %vm179_vm0, %v15058_v55  ;;  %12063 = vmatmul.mubr.msk.f32.vlgmr.msra.gmra.mrb[100].mxu1 %vm179_vm0, %v15058_v55 }
 0xf13   :  { %12872 = vmatpush3.bf16.msra.mxu0 %v14529_v49  ;;  %12878 = vmatpush3.bf16.msra.mxu1 %v14533_v42 }
 0xf14   :  { %v13260_v1 = vpop.eup %13259  ;;  %12873 = vmatprep.subr.bf16.mxu0 %v13461_v48  ;;  %12879 = vmatprep.subr.bf16.mxu1 %v13461_v48 }
 0xf15   :  { %12073 = vmatprep.mubr.msk.f32.mxu0 %vm13462_vm1, %v13463_v54  ;;  %12084 = vmatprep.mubr.msk.f32.mxu1 %vm13462_vm1, %v13463_v54  ;;  %v8984_v43 = vsub.f32 %v15012_v33, %v13260_v1  ;;  %v13262_v14 = vpop.eup %13261 }
 0xf17   :  { %12875 = vmatpush3.bf16.msra.mxu0 %v14539_v44  ;;  %12881 = vmatpush3.bf16.msra.mxu1 %v14543_v4  ;;  %v8985_v50 = vmul.f32 %v13262_v14, %v8984_v43 }
 0xf18   :  { %12882 = vmatprep.subr.bf16.mxu0 %v13461_v48  ;;  %12888 = vmatprep.subr.bf16.mxu1 %v13461_v48 }
 0xf19   :  { %v15077_v7 = vadd.f32 %v13260_v1, %v8985_v50 }
 0xf1a   :  { %12074 = vmatmul.mubr.msk.f32.vlgmr.msra.gmra.mrb[94].mxu0 %vm179_vm0, %v15058_v55 }
 0xf1b   :  { %12085 = vmatmul.mubr.msk.f32.vlgmr.msra.gmra.mrb[102].mxu1 %vm179_vm0, %v15077_v7  ;;  %12884 = vmatpush3.bf16.msra.mxu0 %v14551_v56 }
 0xf1c   :  { %12890 = vmatpush3.bf16.msra.mxu1 %v14556_v10  ;;  %12885 = vmatprep.subr.bf16.mxu0 %v13461_v48 }
 0xf1d   :  { %12891 = vmatprep.subr.bf16.mxu1 %v13461_v48  ;;  %12095 = vmatprep.mubr.msk.f32.mxu0 %vm13462_vm1, %v13463_v54 }
 0xf1e   :  { %12106 = vmatprep.mubr.msk.f32.mxu1 %vm13462_vm1, %v13463_v54 }
 0xf1f   :  { %12887 = vmatpush3.bf16.msra.mxu0 %v14561_v27 }
 0xf20   :  { %12893 = vmatpush3.bf16.msra.mxu1 %v14567_v20  ;;  %12894 = vmatprep.subr.bf16.mxu0 %v13461_v48 }
 0xf21   :  { %12900 = vmatprep.subr.bf16.mxu1 %v13461_v48 }
 0xf22   :  { %12096 = vmatmul.mubr.msk.f32.vlgmr.msra.gmra.mrb[96].mxu0 %vm179_vm0, %v15077_v7 }
 0xf23   :  { %12107 = vmatmul.mubr.msk.f32.vlgmr.msra.gmra.mrb[104].mxu1 %vm179_vm0, %v15077_v7  ;;  %12896 = vmatpush3.bf16.msra.mxu0 %v14506_v0  ;;  %v5058_v0 = vcombine.high %v14596_v40, %v14596_v40 }
 0xf24   :  { %12902 = vmatpush3.bf16.msra.mxu1 %v14509_v34  ;;  %12897 = vmatprep.subr.bf16.mxu0 %v13461_v48 }
 0xf25   :  { %12903 = vmatprep.subr.bf16.mxu1 %v13461_v48  ;;  %12117 = vmatprep.mubr.msk.f32.mxu0 %vm13462_vm1, %v13463_v54  ;;  %v15114_v34 = vrot.slane %v5058_v0, %v13639_v18 }
 0xf26   :  { %12128 = vmatprep.mubr.msk.f32.mxu1 %vm13462_vm1, %v13463_v54 }
 0xf27   :  { %12899 = vmatpush3.bf16.msra.mxu0 %v14517_v5  ;;  %v5272_v5 = vcombine.high %v14598_v58, %v14598_v58  ;;  %v15131_v58 = vrot.slane %v14616_v31, %v13639_v18  ;;  %v5486_v31 = vcombine.high %v14606_v6, %v14606_v6  ;;  %v15149_v6 = vrot.slane %v14620_v13, %v13639_v18 }
 0xf28   :  { %12905 = vmatpush3.bf16.msra.mxu1 %v14521_v35  ;;  %12906 = vmatprep.subr.bf16.mxu0 %v13461_v48 }
 0xf29   :  { %12912 = vmatprep.subr.bf16.mxu1 %v13461_v48  ;;  %v15124_v40 = vrot.slane %v5272_v5, %v13639_v18  ;;  %v5912_v47 = vcombine.high %v15131_v58, %v15131_v58  ;;  %v15144_v57 = vrot.slane %v5486_v31, %v13639_v18  ;;  %v6126_v43 = vcombine.high %v15149_v6, %v15149_v6 }
 0xfe5   :  { %v9056_v33 = vpop.f32.mrb[92].mxu0  ;;  %v9126_v41 = vpop.f32.mrb[100].mxu1 }
 0xfe6   :  { %v9130_v61 = vadd.f32 %v9056_v33, %v15114_v34  ;;  %v12053_v8 = vpop.f32.mrb[93].mxu0  ;;  %v12064_v28 = vpop.f32.mrb[101].mxu1  ;;  %v9137_v23 = vadd.f32 %v9126_v41, %v15124_v40 }
 0xfe8   :  { %v10294_v35 = vmul.f32 -1.442695, %v9130_v61  ;;  %v10295_v24 = vmul.f32 -1.442695, %v9137_v23 }
 0xfea   :  { %13263 = vpow2.f32 %v10294_v35 }
 0xfed   :  { %v9210_v15 = vpop.f32.mrb[94].mxu0 }
 0xfee   :  { %v12075_v63 = vpop.f32.mrb[95].mxu0  ;;  %v9289_v19 = vpop.f32.mrb[102].mxu1  ;;  %v9211_v46 = vadd.f32 %v15140_v26, %v9210_v15  ;;  %v9963_v15 = vld [vmem:[%s15302_s10 + $0x30] sm:$0xff] }
 0xfef   :  { %v9363_v2 = vadd.f32 %v9289_v19, %v5698_v39  ;;  %v12086_v53 = vpop.f32.mrb[103].mxu1  ;;  %v9964_v39 = vld [vmem:[%s15302_s10 + $0x38] sm:$0xff]  ;;  %v9965_v63 = vld [vmem:[%s15302_s10 + $0x40] sm:$0xff]  ;;  %v9966_v19 = vld [vmem:[%s15302_s10 + $0x48] sm:$0xff] }
 0xff0   :  { %v12940_v23 = vpack.c.bf16 %v9964_v39, %v9963_v15  ;;  %v9967_v53 = vld [vmem:[%s15302_s10 + $0x50] sm:$0xff] }
 0xff1   :  { %v10299_v29 = vmul.f32 -1.442695, %v9363_v2  ;;  %v12943_v2 = vpack.c.bf16 %v9966_v19, %v9965_v63 }
 0xff3   :  { %13265 = vpow2.f32 %v10299_v29  ;;  %v9968_v29 = vld [vmem:[%s15302_s10 + $0x58] sm:$0xff] }
 0xff4   :  { %v13264_v36 = vpop.eup %13263  ;;  %13267 = vpow2.f32 %v10295_v24  ;;  %v12946_v24 = vpack.c.bf16 %v9968_v29, %v9967_v53 }
 0xff5   :  { %v9134_v12 = vadd.f32 1.0, %v13264_v36  ;;  %v9359_v52 = vpop.f32.mrb[96].mxu0  ;;  %v5074_v36 = vcombine.high %v15114_v34, %v15114_v34 }
 0xff6   :  { %v9443_v22 = vpop.f32.mrb[104].mxu1  ;;  %v12097_v45 = vpop.f32.mrb[97].mxu0  ;;  %v9370_v37 = vadd.f32 %v9359_v52, %v5912_v47 }
 0xff7   :  { %13269 = vrcp.f32 %v9134_v12  ;;  %v12108_v60 = vpop.f32.mrb[105].mxu1  ;;  %v9444_v32 = vadd.f32 %v15154_v17, %v9443_v22 }
 0xff8   :  { %v10300_v3 = vmul.f32 -1.442695, %v9370_v37  ;;  %v5288_v60 = vcombine.high %v15124_v40, %v15124_v40 }
 0xffa   :  { %13271 = vpow2.f32 %v10300_v3 }
 0xffd   :  { %v13266_v21 = vpop.eup %13265 }
 0xffe   :  { %v9367_v62 = vadd.f32 1.0, %v13266_v21  ;;  %v13268_v51 = vpop.eup %13267 }
 0xfff   :  { %v9141_v11 = vadd.f32 1.0, %v13268_v51 }
0x1000   :  { %13273 = vrcp.f32 %v9367_v62 }
0x1001   :  { %v13270_v59 = vpop.eup %13269 }
0x1002   :  { %v9214_v30 = vmul.f32 %v13270_v59, %v9211_v46 }
0x1004   :  { %v9215_v9 = vadd.f32 %v9214_v30, %v15144_v57  ;;  %v13272_v38 = vpop.eup %13271 }
0x1005   :  { %v9374_v50 = vadd.f32 1.0, %v13272_v38 }
0x1006   :  { %13275 = vtanh.f32 %v9215_v9 }
0x1007   :  { %13277 = vrcp.f32 %v9141_v11 }
0x100a   :  { %v13274_v1 = vpop.eup %13273 }
0x100b   :  { %v9447_v14 = vmul.f32 %v13274_v1, %v9444_v32 }
0x100d   :  { %v9448_v0 = vadd.f32 %v9447_v14, %v6126_v43 }
0x100f   :  { %13279 = vtanh.f32 %v9448_v0 }
0x1010   :  { %v13276_v33 = vpop.eup %13275  ;;  %13281 = vrcp.f32 %v9374_v50 }
0x1011   :  { %v9217_v13 = vsub.f32 %v15058_v55, %v13276_v33  ;;  %v13278_v41 = vpop.eup %13277 }
0x1013   :  { %v9218_v61 = vmul.f32 %v13278_v41, %v9217_v13  ;;  %v5502_v13 = vcombine.high %v15144_v57, %v15144_v57  ;;  %v9971_v57 = vld [vmem:[%s15302_s10 + $0x70] sm:$0xff] }
0x1015   :  { %v15160_v8 = vadd.f32 %v13276_v33, %v9218_v61 }
0x1017   :  { %12118 = vmatmul.mubr.msk.f32.vlgmr.msra.gmra.mrb[98].mxu0 %vm179_vm0, %v15160_v8  ;;  %12129 = vmatmul.mubr.msk.f32.vlgmr.msra.gmra.mrb[106].mxu1 %vm179_vm0, %v15160_v8 }
0x1018   :  { %12908 = vmatpush3.bf16.msra.mxu0 %v14529_v49  ;;  %12914 = vmatpush3.bf16.msra.mxu1 %v14533_v42 }
0x1019   :  { %v13280_v28 = vpop.eup %13279  ;;  %12909 = vmatprep.subr.bf16.mxu0 %v13461_v48  ;;  %12915 = vmatprep.subr.bf16.mxu1 %v13461_v48 }
0x101a   :  { %12139 = vmatprep.mubr.msk.f32.mxu0 %vm13462_vm1, %v13463_v54  ;;  %12150 = vmatprep.mubr.msk.f32.mxu1 %vm13462_vm1, %v13463_v54  ;;  %v9450_v55 = vsub.f32 %v15077_v7, %v13280_v28  ;;  %v13282_v5 = vpop.eup %13281  ;;  %v9962_v7 = vld [vmem:[%s15302_s10 + $0x28] sm:$0xff] }
0x101c   :  { %12911 = vmatpush3.bf16.msra.mxu0 %v14539_v44  ;;  %12917 = vmatpush3.bf16.msra.mxu1 %v14543_v4  ;;  %v9451_v49 = vmul.f32 %v13282_v5, %v9450_v55  ;;  %v9957_v44 = vld [vmem:[%s15302_s10] sm:$0xff]  ;;  %v9958_v4 = vld [vmem:[%s15302_s10 + $0x8] sm:$0xff] }
0x101d   :  { %12918 = vmatprep.subr.bf16.mxu0 %v13461_v48  ;;  %12924 = vmatprep.subr.bf16.mxu1 %v13461_v48 }
0x101e   :  { %v15179_v42 = vadd.f32 %v13280_v28, %v9451_v49 }
0x101f   :  { %12140 = vmatmul.mubr.msk.f32.vlgmr.msra.gmra.mrb[100].mxu0 %vm179_vm0, %v15160_v8 }
0x1020   :  { %12151 = vmatmul.mubr.msk.f32.vlgmr.msra.gmra.mrb[108].mxu1 %vm179_vm0, %v15179_v42  ;;  %12920 = vmatpush3.bf16.msra.mxu0 %v14551_v56  ;;  %v9959_v56 = vld [vmem:[%s15302_s10 + $0x10] sm:$0xff] }
0x1021   :  { %12926 = vmatpush3.bf16.msra.mxu1 %v14556_v10  ;;  %12921 = vmatprep.subr.bf16.mxu0 %v13461_v48  ;;  %v12931_v10 = vpack.c.bf16 %v9958_v4, %v9957_v44  ;;  %v9969_v44 = vld [vmem:[%s15302_s10 + $0x60] sm:$0xff] }
0x1022   :  { %12927 = vmatprep.subr.bf16.mxu1 %v13461_v48  ;;  %12161 = vmatprep.mubr.msk.f32.mxu0 %vm13462_vm1, %v13463_v54 }
0x1023   :  { %12172 = vmatprep.mubr.msk.f32.mxu1 %vm13462_vm1, %v13463_v54 }
0x1024   :  { %12923 = vmatpush3.bf16.msra.mxu0 %v14561_v27  ;;  %v9960_v27 = vld [vmem:[%s15302_s10 + $0x18] sm:$0xff] }
0x1025   :  { %12929 = vmatpush3.bf16.msra.mxu1 %v14567_v20  ;;  %12930 = vmatprep.subr.bf16.mxu0 %v13461_v48  ;;  %v12934_v20 = vpack.c.bf16 %v9960_v27, %v9959_v56 }
0x1027   :  { %12162 = vmatmul.mubr.msk.f32.vlgmr.msra.gmra.mrb[102].mxu0 %vm179_vm0, %v15179_v42 }
0x1028   :  { %12173 = vmatmul.mubr.msk.f32.vlgmr.msra.gmra.mrb[110].mxu1 %vm179_vm0, %v15179_v42  ;;  %12207 = vmatprep.mubr.msk.f32.mxu0 %vm13462_vm1, %v13463_v54  ;;  %v9961_v54 = vld [vmem:[%s15302_s10 + $0x20] sm:$0xff] }
0x1029   :  { %12932 = vmatpush3.bf16.msra.mxu0 %v12931_v10  ;;  %v12937_v35 = vpack.c.bf16 %v9962_v7, %v9961_v54 }
0x102a   :  { %12933 = vmatprep.subr.bf16.mxu0 %v13461_v48 }
0x102d   :  { %12935 = vmatpush3.bf16.msra.mxu0 %v12934_v20 }
0x102e   :  { %12936 = vmatprep.subr.bf16.mxu0 %v13461_v48 }
0x1031   :  { %12938 = vmatpush3.bf16.msra.mxu0 %v12937_v35 }
0x1032   :  { %12939 = vmatprep.subr.bf16.mxu0 %v13461_v48 }
0x1035   :  { %12941 = vmatpush3.bf16.msra.mxu0 %v12940_v23 }
0x1036   :  { %12942 = vmatprep.subr.bf16.mxu0 %v13461_v48 }
0x1039   :  { %12944 = vmatpush3.bf16.msra.mxu0 %v12943_v2 }
0x103a   :  { %12945 = vmatprep.subr.bf16.mxu0 %v13461_v48 }
0x103d   :  { %12947 = vmatpush3.bf16.msra.mxu0 %v12946_v24 }
0x103e   :  { %12948 = vmatprep.subr.bf16.mxu0 %v13461_v48 }
0x10ea   :  { %v9522_v12 = vpop.f32.mrb[98].mxu0  ;;  %v9592_v47 = vpop.f32.mrb[106].mxu1 }
0x10eb   :  { %v9596_v52 = vadd.f32 %v9522_v12, %v5074_v36  ;;  %v12119_v22 = vpop.f32.mrb[99].mxu0  ;;  %v12130_v45 = vpop.f32.mrb[107].mxu1  ;;  %v9603_v21 = vadd.f32 %v9592_v47, %v5288_v60  ;;  %v13467_v60 = vmov 0  }
0x10ec   :  { %v10313_v22 = vld [vmem:[%s15304_s12] ss:$0 sm:$0xff]  ;;  %12982 = vset.pattern.permute.xlu0 %v13467_v60 }
0x10ed   :  { %v10304_v37 = vmul.f32 -1.442695, %v9596_v52  ;;  %v10305_v30 = vmul.f32 -1.442695, %v9603_v21 }
0x10ef   :  { %13283 = vpow2.f32 %v10304_v37 }
0x10f2   :  { %v9676_v3 = vpop.f32.mrb[100].mxu0 }
0x10f3   :  { %v12141_v31 = vpop.f32.mrb[101].mxu0  ;;  %v9755_v62 = vpop.f32.mrb[108].mxu1 }
0x10f4   :  { %v9829_v51 = vadd.f32 %v9755_v62, %v15121_v25  ;;  %v12152_v46 = vpop.f32.mrb[109].mxu1  ;;  %v9677_v25 = vadd.f32 %v15140_v26, %v9676_v3  ;;  %v9970_v26 = vld [vmem:[%s15302_s10 + $0x68] sm:$0xff]  ;;  %v10314_v3 = vld [vmem:[#allocation2] ss:$0 sm:$0xff] }
0x10f5   :  { %v12949_v10 = vpack.c.bf16 %v9970_v26, %v9969_v44 }
0x10f6   :  { %v10309_v59 = vmul.f32 -1.442695, %v9829_v51 }
0x10f7   :  { %12950 = vmatpush3.bf16.msra.mxu0 %v12949_v10 }
0x10f8   :  { %13285 = vpow2.f32 %v10309_v59  ;;  %12951 = vmatprep.subr.bf16.mxu0 %v13461_v48  ;;  %v9928_v48 = vpop.permute.xlu0 %9927 }
0x10f9   :  { %v13284_v34 = vpop.eup %13283  ;;  %13287 = vpow2.f32 %v10305_v30  ;;  %v9952_v29 = vsel %vm179_vm0, %v14399_v16, %v9928_v48 }
0x10fa   :  { %v9600_v11 = vadd.f32 1.0, %v13284_v34  ;;  %v9825_v9 = vpop.f32.mrb[102].mxu0 }
0x10fb   :  { %v9909_v38 = vpop.f32.mrb[110].mxu1  ;;  %v12163_v32 = vpop.f32.mrb[103].mxu0  ;;  %v9836_v1 = vadd.f32 %v9825_v9, %v15131_v58 }
0x10fc   :  { %13289 = vrcp.f32 %v9600_v11  ;;  %v12174_v40 = vpop.f32.mrb[111].mxu1  ;;  %v9910_v58 = vadd.f32 %v15154_v17, %v9909_v38  ;;  %v9972_v17 = vld [vmem:[%s15302_s10 + $0x78] sm:$0xff]  ;;  %s13466_s10 = smov 96  }
0x10fd   :  { %v10310_v43 = vmul.f32 -1.442695, %v9836_v1  ;;  %v12952_v27 = vpack.c.bf16 %v9972_v17, %v9971_v57 }
0x10ff   :  { %13291 = vpow2.f32 %v10310_v43  ;;  %12953 = vmatpush3.bf16.msra.mxu0 %v12952_v27 }
0x1102   :  { %v13286_v14 = vpop.eup %13285 }
0x1103   :  { %v9833_v50 = vadd.f32 1.0, %v13286_v14  ;;  %v13288_v0 = vpop.eup %13287 }
0x1104   :  { %v9607_v61 = vadd.f32 1.0, %v13288_v0 }
0x1105   :  { %13293 = vrcp.f32 %v9833_v50 }
0x1106   :  { %v13290_v33 = vpop.eup %13289 }
0x1107   :  { %v9680_v41 = vmul.f32 %v13290_v33, %v9677_v25 }
0x1109   :  { %v9681_v28 = vadd.f32 %v9680_v41, %v5502_v13  ;;  %v13292_v55 = vpop.eup %13291 }
0x110a   :  { %v9840_v4 = vadd.f32 1.0, %v13292_v55 }
0x110b   :  { %13295 = vtanh.f32 %v9681_v28 }
0x110c   :  { %13297 = vrcp.f32 %v9607_v61 }
0x110f   :  { %v13294_v5 = vpop.eup %13293 }
0x1110   :  { %v9913_v49 = vmul.f32 %v13294_v5, %v9910_v58 }
0x1112   :  { %v9914_v56 = vadd.f32 %v9913_v49, %v15149_v6 }
0x1114   :  { %13299 = vtanh.f32 %v9914_v56 }
0x1115   :  { %v13296_v20 = vpop.eup %13295  ;;  %13301 = vrcp.f32 %v9840_v4 }
0x1116   :  { %v9683_v54 = vsub.f32 %v15160_v8, %v13296_v20  ;;  %v13298_v7 = vpop.eup %13297 }
0x1118   :  { %v9684_v35 = vmul.f32 %v13298_v7, %v9683_v54 }
0x111a   :  { %v9685_v15 = vadd.f32 %v13296_v20, %v9684_v35 }
0x111c   :  { %v9937_v6 = vrot.slane %v9685_v15, %v13639_v18 }
0x111e   :  { %v13300_v39 = vpop.eup %13299  ;;  %9938 = vrot.lane.b32.xlu0 %v9937_v6, %s13465_s19 }
0x111f   :  { %v9916_v23 = vsub.f32 %v15179_v42, %v13300_v39  ;;  %v13302_v63 = vpop.eup %13301  ;;  %v10312_v42 = vld [vmem:[%s15303_s11] ss:$0 sm:$0xff]  ;;  %s13468_s11 = smov [#allocation12]  }
0x1120   :  { %s10089_s18 = sshll.u32 %s13468_s11, 4  ;;  %s10090_s18 = int_to_ptr.vmem [resolvable:$true] %s10089_s18 }
0x1121   :  { %v9917_v19 = vmul.f32 %v13302_v63, %v9916_v23  ;;  %s13423_s12 = scalar_lea.vmem %s10090_s18, 32  ;;  %p13428_p13 = scmp.lt.s32.totalorder %s10090_s18, %s10090_s18 }
0x1122   :  { %p13424_p12 = scmp.ne.s32.totalorder %s10090_s18, %s13423_s12  ;;  %p13429_p0 = scmp.lt.s32.totalorder %s13423_s12, %s13423_s12 }
0x1123   :  { %v9918_v2 = vadd.f32 %v13300_v39, %v9917_v19 }
0x1124   :  { %p13430_p1 = por %p13429_p0, %p13428_p13 }
0x1125   :  { %v9948_v53 = vrot.slane %v9918_v2, %v13639_v18 }
0x1126   :  { %p13431_p2 = pnand %p13430_p1, %p13424_p12 }
0x1127   :  { %9949 = vrot.lane.b32.xlu1 %v9948_v53, %s13466_s10 }
0x1190   :  { %v9939_v8 = vpop.permute.xlu0 %9938 }
0x1191   :  { %v9954_v24 = vsel %vm9953_vm5, %v9952_v29, %v9939_v8 }
0x1199   :  { %v9950_v36 = vpop.permute.xlu1 %9949 }
0x119a   :  { %v9956_v12 = vsel %vm9955_vm6, %v9954_v24, %v9950_v36 }
0x119b   :  { %12208 = vmatmul.mubr.f32.vlgmr.msra.gmra.mrb[104].mxu0 %v9956_v12 }
0x126e   :  { %v10046_v47 = vpop.f32.mrb[104].mxu0 }
0x126f   :  { %v10047_v52 = vadd.f32 %v10312_v42, %v10046_v47  ;;  %v12209_v18 = vpop.f32.mrb[105].mxu0 }
0x1271   :  { %13303 = vtanh.f32 %v10047_v52 }
0x127b   :  { %v13304_v45 = vpop.eup %13303 }
0x127c   :  { %v10058_v37 = vmul.f32 %v13304_v45, %v10313_v22 }
0x127e   :  { %v10060_v16 = vsel %vm10059_vm7, %v10058_v37, 0.0 }
0x127f   :  { %10061 = vadd.xlane.f32.xlu1 %v10060_v16 }
0x130c   :  { %v10062_v21 = vpop.xlane.xlu1 %10061 }
0x130d   :  { %v10070_v31 = vadd.f32 %v10314_v3, %v10062_v21 }
0x130f   :  { %v10315_v62 = vmul.f32 -1.442695, %v10070_v31 }
0x1311   :  { %13305 = vpow2.f32 %v10315_v62 }
0x131b   :  { %v13306_v51 = vpop.eup %13305 }
0x131c   :  { %v10074_v46 = vadd.f32 1.0, %v13306_v51 }
0x131e   :  { %13307 = vrcp.f32 %v10074_v46 }
0x1328   :  { %v13308_v59 = vpop.eup %13307 }
0x1329   :  { %10079 = vperm.xlu0 %12982, %v13308_v59  }
0x13a8   :  { %v10080_v30 = vpop.permute.xlu0 %10079 }
0x13a9   :  { %10082 = vst [vmem:[#allocation12] sm:$0x3] %v10080_v30 }
0x13aa   :  { %13434 = shalt.err (!%p13431_p2)
}
0x13ab   :  { %s13435_s23 = scalar_lea.hbm %s15306_s14, 32 }
0x13ac   :  { %p13436_p3 = scmp.ne.s32.totalorder %s15306_s14, %s13435_s23  ;;  %p13439_p4 = scmp.lt.u32.totalorder %s13435_s23, %s15306_s14 }
0x13ae   :  { %p13441_p5 = pnand %p13439_p4, %p13436_p3 }
0x13b0   :  { %13444 = shalt.err (!%p13441_p5)
}
0x13b1   :  { %10092 = dma.vmem_to_hbm [thread:$0]  %s10090_s18, 32, %s15306_s14, [#allocation5]  }
0x13b2   :  { %13451 = dma.done.wait [#allocation5], 32  }
0x13b3   :  { %13452 = vsyncadd [#allocation5], 4294967264 }
0x13b4   :  { %10096 = vsyncpa [#allocation4], 1 }
0x13b5   :  { %10097 = vsyncpa [#allocation7], 1 }
0x13b6   :  { %10098 = vsyncpa [#allocation10], 1 }
0x13b7   :  { %10099 = vsyncpa [#allocation5], 1 }

</bundles_post_ra>
